<compile_context>
chip_gen: v5e
topology: v5e:2x2
jax: 0.10.0
libtpu: 0.0.40
codegen_flags: <defaults>
</compile_context>

<pallas_src>
import functools

import jax
import jax.numpy as jnp
from jax.experimental import pallas as pl
from jax.experimental.pallas import tpu as pltpu


HIDDEN = 750   # nn.Linear(..., 750) in the PyTorch module
H_PAD = 768    # 6 * 128 -- MXU/lane aligned hidden width
LANE = 128


def _round_up(x, m):
    return (x + m - 1) // m * m


# ---------------------------------------------------------------------------
# Kernel
# ---------------------------------------------------------------------------
def _vae_kernel(ma_ref, sa_ref, eps_ref,
                e1_w_ref, e1_b_ref, e2_w_ref, e2_b_ref,
                head_w_ref, head_b_ref,
                d1_ws_ref, d1_wz_ref, d1_b_ref,
                d2_w_ref, d2_b_ref, d3_w_ref, d3_b_ref,
                u_ref, mean_ref, std_ref, *, state_dim):
    f32 = jnp.float32
    bf16 = jnp.bfloat16
    LP = mean_ref.shape[1]          # padded latent width (128)

    sa = sa_ref[...]                # (TB, S + A) f32
    state = sa[:, :state_dim]       # decoder reuses the state columns

    # ---- encoder: h = relu(e2(relu(e1([state, action])))) ----
    h = (jnp.dot(sa.astype(bf16), e1_w_ref[...],
                 preferred_element_type=f32) + e1_b_ref[...])
    h = jnp.maximum(h, 0.0)
    h = (jnp.dot(h.astype(bf16), e2_w_ref[...],
                 preferred_element_type=f32) + e2_b_ref[...])
    h = jnp.maximum(h, 0.0)

    # ---- fused mean|log_std head + reparameterization ----
    heads = (jnp.dot(h.astype(bf16), head_w_ref[...],
                     preferred_element_type=f32) + head_b_ref[...])
    mean = heads[:, :LP]
    log_std = jnp.clip(heads[:, LP:], -4.0, 15.0)
    std = jnp.exp(log_std)
    # padded lanes: mean=0, std=exp(0)=1, eps=0  ->  z pad lanes = 0
    z = mean + std * eps_ref[...]

    # ---- decoder: u = max_action * tanh(d3(relu(d2(relu(d1([state, z])))))) ----
    a = (jnp.dot(state.astype(bf16), d1_ws_ref[...],
                 preferred_element_type=f32)
         + jnp.dot(z.astype(bf16), d1_wz_ref[...],
                   preferred_element_type=f32)
         + d1_b_ref[...])
    a = jnp.maximum(a, 0.0)
    a = (jnp.dot(a.astype(bf16), d2_w_ref[...],
                 preferred_element_type=f32) + d2_b_ref[...])
    a = jnp.maximum(a, 0.0)
    u = ma_ref[0] * jnp.tanh(
        jnp.dot(a.astype(bf16), d3_w_ref[...],
                preferred_element_type=f32) + d3_b_ref[...])

    u_ref[...] = u
    mean_ref[...] = mean
    std_ref[...] = std


# ---------------------------------------------------------------------------
# Parameter preparation (padding / fusing / bf16 cast) -- done once, in XLA.
# ---------------------------------------------------------------------------
def prepare_params(params, state_dim, action_dim, latent_dim):
    LP = _round_up(latent_dim, LANE)
    AP = _round_up(action_dim, LANE)
    dh = H_PAD - HIDDEN

    def pad2(x, rows, cols):
        return jnp.pad(x, ((0, rows), (0, cols)))

    def w(x):                       # weights -> bf16
        return x.astype(jnp.bfloat16)

    def b(x, width):                # biases -> (1, width) f32, zero padded
        return jnp.pad(x.reshape(1, -1), ((0, 0), (0, width - x.shape[0])))

    mean_w = pad2(params["mean_w"], dh, LP - latent_dim)
    ls_w = pad2(params["ls_w"], dh, LP - latent_dim)
    head_w = jnp.concatenate([mean_w, ls_w], axis=1)                # (HP, 2*LP)
    head_b = jnp.concatenate([b(params["mean_b"], LP),
                              b(params["ls_b"], LP)], axis=1)       # (1, 2*LP)

    d1_ws = pad2(params["d1_w"][:state_dim], 0, dh)                 # (S, HP)
    d1_wz = pad2(params["d1_w"][state_dim:], LP - latent_dim, dh)   # (LP, HP)

    return {
        "e1_w": w(pad2(params["e1_w"], 0, dh)),
        "e1_b": b(params["e1_b"], H_PAD),
        "e2_w": w(pad2(params["e2_w"], dh, dh)),
        "e2_b": b(params["e2_b"], H_PAD),
        "head_w": w(head_w),
        "head_b": head_b,
        "d1_ws": w(d1_ws),
        "d1_wz": w(d1_wz),
        "d1_b": b(params["d1_b"], H_PAD),
        "d2_w": w(pad2(params["d2_w"], dh, dh)),
        "d2_b": b(params["d2_b"], H_PAD),
        "d3_w": w(pad2(params["d3_w"], dh, AP - action_dim)),
        "d3_b": b(params["d3_b"], AP),
    }


# ---------------------------------------------------------------------------
# Wrapper
# ---------------------------------------------------------------------------
def vae_forward(prepped, state, action, eps, max_action, *, block_b=256):
    """Pallas implementation of VAE_.forward -> (u, mean, std)."""
    B, S = state.shape
    A = action.shape[1]
    L = eps.shape[1]
    LP = prepped["head_w"].shape[1] // 2
    AP = prepped["d3_w"].shape[1]

    # batch tile: multiple of 8 sublanes, 256 rows for big batches
    tb = block_b if B >= block_b else _round_up(max(B, 1), 8)
    Bp = _round_up(B, tb)
    pad_b = Bp - B

    sa = jnp.pad(jnp.concatenate([state, action], axis=1).astype(jnp.float32),
                 ((0, pad_b), (0, 0)))
    eps_p = jnp.pad(eps.astype(jnp.float32), ((0, pad_b), (0, LP - L)))
    ma = jnp.asarray([max_action], dtype=jnp.float32)

    weight_names = ("e1_w", "e1_b", "e2_w", "e2_b", "head_w", "head_b",
                    "d1_ws", "d1_wz", "d1_b", "d2_w", "d2_b", "d3_w", "d3_b")
    weights = [prepped[n] for n in weight_names]

    def row_spec(width):
        return pl.BlockSpec((tb, width), lambda i: (i, 0))

    def resident_spec(arr):
        # same block every grid step -> loaded once, stays VMEM-resident
        return pl.BlockSpec(arr.shape, lambda i: (0, 0))

    in_specs = [pl.BlockSpec(memory_space=pltpu.MemorySpace.SMEM),   # max_action
                row_spec(S + A), row_spec(LP)]
    in_specs += [resident_spec(w_) for w_ in weights]

    out_specs = (row_spec(AP), row_spec(LP), row_spec(LP))
    out_shape = (jax.ShapeDtypeStruct((Bp, AP), jnp.float32),
                 jax.ShapeDtypeStruct((Bp, LP), jnp.float32),
                 jax.ShapeDtypeStruct((Bp, LP), jnp.float32))

    kernel = functools.partial(_vae_kernel, state_dim=S)

    u_p, mean_p, std_p = pl.pallas_call(
        kernel,
        grid=(Bp // tb,),
        in_specs=in_specs,
        out_specs=out_specs,
        out_shape=out_shape,
        compiler_params=pltpu.CompilerParams(
            dimension_semantics=("parallel",),
            vmem_limit_bytes=32 << 20),
    )(ma, sa, eps_p, *weights)

    return u_p[:B, :A], mean_p[:B, :L], std_p[:B, :L]


# ---------------------------------------------------------------------------
# References & synthetic params
# ---------------------------------------------------------------------------
def _reference_forward(params, state, action, eps, max_action,
                       compute_dtype=jnp.float32):
    """Plain-JAX reference; compute_dtype=bf16 mirrors the kernel's precision."""
    cd = compute_dtype

    def lin(x, w, b):
        return jnp.dot(x.astype(cd), w.astype(cd),
                       preferred_element_type=jnp.float32) + b

    sa = jnp.concatenate([state, action], axis=1)
    h = jax.nn.relu(lin(sa, params["e1_w"], params["e1_b"]))
    h = jax.nn.relu(lin(h, params["e2_w"], params["e2_b"]))
    mean = lin(h, params["mean_w"], params["mean_b"])
    log_std = jnp.clip(lin(h, params["ls_w"], params["ls_b"]), -4.0, 15.0)
    std = jnp.exp(log_std)
    z = mean + std * eps
    sz = jnp.concatenate([state, z], axis=1)
    a = jax.nn.relu(lin(sz, params["d1_w"], params["d1_b"]))
    a = jax.nn.relu(lin(a, params["d2_w"], params["d2_b"]))
    u = max_action * jnp.tanh(lin(a, params["d3_w"], params["d3_b"]))
    return u, mean, std


def init_params(key, state_dim, action_dim, latent_dim):
    """Synthetic parameters at the module's natural sizes, (in, out) layout."""
    ks = jax.random.split(key, 14)
    s = 0.05

    def w(k, shape):
        return (s * jax.random.normal(k, shape)).astype(jnp.float32)

    H = HIDDEN
    return {
        "e1_w": w(ks[0], (state_dim + action_dim, H)),
        "e1_b": w(ks[1], (H,)),
        "e2_w": w(ks[2], (H, H)),
        "e2_b": w(ks[3], (H,)),
        "mean_w": w(ks[4], (H, latent_dim)),
        "mean_b": w(ks[5], (latent_dim,)),
        "ls_w": w(ks[6], (H, latent_dim)),
        "ls_b": w(ks[7], (latent_dim,)),
        "d1_w": w(ks[8], (state_dim + latent_dim, H)),
        "d1_b": w(ks[9], (H,)),
        "d2_w": w(ks[10], (H, H)),
        "d2_b": w(ks[11], (H,)),
        "d3_w": w(ks[12], (H, action_dim)),
        "d3_b": w(ks[13], (action_dim,)),
    }


if __name__ == "__main__":
    batch, state_dim, action_dim, latent_dim = 2, 8, 4, 6
    max_action = 1.0

    root = jax.random.PRNGKey(0)
    k_param, k_state, k_action, k_eps = jax.random.split(root, 4)

    params = init_params(k_param, state_dim, action_dim, latent_dim)
    prepped = prepare_params(params, state_dim, action_dim, latent_dim)

    state = jax.random.normal(k_state, (batch, state_dim), dtype=jnp.float32)
    action = jax.random.normal(k_action, (batch, action_dim), dtype=jnp.float32)
    # eps plays the role of torch.randn_like(std) in the reparameterization.
    eps = jax.random.normal(k_eps, (batch, latent_dim), dtype=jnp.float32)

    u, mean, std = vae_forward(prepped, state, action, eps, max_action)
    jax.block_until_ready((u, mean, std))

    # Precision-matched reference (bf16 matmul operands, f32 accumulation).
    u16, m16, s16 = _reference_forward(params, state, action, eps, max_action,
                                       compute_dtype=jnp.bfloat16)
    # Full-f32 semantic reference (looser tolerance due to bf16 weights).
    u32, m32, s32 = _reference_forward(params, state, action, eps, max_action,
                                       compute_dtype=jnp.float32)

    assert u.shape == (batch, action_dim)
    assert mean.shape == (batch, latent_dim)
    assert std.shape == (batch, latent_dim)

    assert jnp.max(jnp.abs(u - u16)) < 5e-3
    assert jnp.max(jnp.abs(mean - m16)) < 5e-3
    assert jnp.max(jnp.abs(std - s16)) < 5e-3

    assert jnp.max(jnp.abs(u - u32)) < 5e-2
    assert jnp.max(jnp.abs(mean - m32)) < 5e-2
    assert jnp.max(jnp.abs(std - s32)) < 5e-2

    print("KERNEL_OK")
</pallas_src>

<mosaic_0001>
module attributes {stable_mosaic.version = 11 : i64} {
  func.func @_vae_kernel(%arg0: i32, %arg1: memref<1xf32, #tpu.memory_space<smem>>, %arg2: memref<8x12xf32, #tpu.memory_space<vmem>>, %arg3: memref<8x128xf32, #tpu.memory_space<vmem>>, %arg4: memref<12x768xbf16, #tpu.memory_space<vmem>>, %arg5: memref<1x768xf32, #tpu.memory_space<vmem>>, %arg6: memref<768x768xbf16, #tpu.memory_space<vmem>>, %arg7: memref<1x768xf32, #tpu.memory_space<vmem>>, %arg8: memref<768x256xbf16, #tpu.memory_space<vmem>>, %arg9: memref<1x256xf32, #tpu.memory_space<vmem>>, %arg10: memref<8x768xbf16, #tpu.memory_space<vmem>>, %arg11: memref<128x768xbf16, #tpu.memory_space<vmem>>, %arg12: memref<1x768xf32, #tpu.memory_space<vmem>>, %arg13: memref<768x768xbf16, #tpu.memory_space<vmem>>, %arg14: memref<1x768xf32, #tpu.memory_space<vmem>>, %arg15: memref<768x128xbf16, #tpu.memory_space<vmem>>, %arg16: memref<1x128xf32, #tpu.memory_space<vmem>>, %arg17: memref<8x128xf32, #tpu.memory_space<vmem>>, %arg18: memref<8x128xf32, #tpu.memory_space<vmem>>, %arg19: memref<8x128xf32, #tpu.memory_space<vmem>>) attributes {dimension_semantics = [#tpu.dimension_semantics<parallel>], iteration_bounds = array<i64: 1>, scalar_prefetch = 0 : i64, scratch_operands = 0 : i64, tpu.core_type = #tpu.core_type<tc>, window_params = [{transform_indices = @transform_0, window_bounds = array<i64: 1>}, {transform_indices = @transform_1, window_bounds = array<i64: 8, 12>}, {transform_indices = @transform_2, window_bounds = array<i64: 8, 128>}, {pipeline_mode = #tpu.pipeline_mode<synchronous>, transform_indices = @transform_3, window_bounds = array<i64: 12, 768>}, {pipeline_mode = #tpu.pipeline_mode<synchronous>, transform_indices = @transform_4, window_bounds = array<i64: 1, 768>}, {pipeline_mode = #tpu.pipeline_mode<synchronous>, transform_indices = @transform_5, window_bounds = array<i64: 768, 768>}, {pipeline_mode = #tpu.pipeline_mode<synchronous>, transform_indices = @transform_6, window_bounds = array<i64: 1, 768>}, {pipeline_mode = #tpu.pipeline_mode<synchronous>, transform_indices = @transform_7, window_bounds = array<i64: 768, 256>}, {pipeline_mode = #tpu.pipeline_mode<synchronous>, transform_indices = @transform_8, window_bounds = array<i64: 1, 256>}, {pipeline_mode = #tpu.pipeline_mode<synchronous>, transform_indices = @transform_9, window_bounds = array<i64: 8, 768>}, {pipeline_mode = #tpu.pipeline_mode<synchronous>, transform_indices = @transform_10, window_bounds = array<i64: 128, 768>}, {pipeline_mode = #tpu.pipeline_mode<synchronous>, transform_indices = @transform_11, window_bounds = array<i64: 1, 768>}, {pipeline_mode = #tpu.pipeline_mode<synchronous>, transform_indices = @transform_12, window_bounds = array<i64: 768, 768>}, {pipeline_mode = #tpu.pipeline_mode<synchronous>, transform_indices = @transform_13, window_bounds = array<i64: 1, 768>}, {pipeline_mode = #tpu.pipeline_mode<synchronous>, transform_indices = @transform_14, window_bounds = array<i64: 768, 128>}, {pipeline_mode = #tpu.pipeline_mode<synchronous>, transform_indices = @transform_15, window_bounds = array<i64: 1, 128>}, {transform_indices = @transform_16, window_bounds = array<i64: 8, 128>}, {transform_indices = @transform_17, window_bounds = array<i64: 8, 128>}, {transform_indices = @transform_18, window_bounds = array<i64: 8, 128>}]} {
    %c0 = arith.constant 0 : index
    %c0_0 = arith.constant 0 : index
    %0 = vector.load %arg2[%c0, %c0_0] : memref<8x12xf32, #tpu.memory_space<vmem>>, vector<8x12xf32>
    %1 = vector.extract_strided_slice %0 {offsets = [0, 0], sizes = [8, 8], strides = [1, 1]} : vector<8x12xf32> to vector<8x8xf32>
    %2 = arith.truncf %0 : vector<8x12xf32> to vector<8x12xbf16>
    %c0_1 = arith.constant 0 : index
    %c0_2 = arith.constant 0 : index
    %3 = vector.load %arg4[%c0_1, %c0_2] : memref<12x768xbf16, #tpu.memory_space<vmem>>, vector<12x768xbf16>
    %cst = arith.constant dense<0.000000e+00> : vector<8x768xf32>
    %4 = tpu.matmul %2, %3, %cst {dimension_numbers = #tpu.dot_dimension_numbers<[1], [0], [0], [1], [0, 0, 1, 1], [], []>} : vector<8x12xbf16>, vector<12x768xbf16>, vector<8x768xf32> -> vector<8x768xf32>
    %c0_3 = arith.constant 0 : index
    %c0_4 = arith.constant 0 : index
    %5 = vector.load %arg5[%c0_3, %c0_4] : memref<1x768xf32, #tpu.memory_space<vmem>>, vector<1x768xf32>
    %6 = vector.broadcast %5 : vector<1x768xf32> to vector<8x768xf32>
    %7 = arith.addf %4, %6 : vector<8x768xf32>
    %cst_5 = arith.constant 0.000000e+00 : f32
    %8 = vector.broadcast %cst_5 : f32 to vector<8x768xf32>
    %9 = arith.maximumf %7, %8 : vector<8x768xf32>
    %10 = arith.truncf %9 : vector<8x768xf32> to vector<8x768xbf16>
    %c0_6 = arith.constant 0 : index
    %c0_7 = arith.constant 0 : index
    %11 = vector.load %arg6[%c0_6, %c0_7] : memref<768x768xbf16, #tpu.memory_space<vmem>>, vector<768x768xbf16>
    %cst_8 = arith.constant dense<0.000000e+00> : vector<8x768xf32>
    %12 = tpu.matmul %10, %11, %cst_8 {dimension_numbers = #tpu.dot_dimension_numbers<[1], [0], [0], [1], [0, 0, 1, 1], [], []>} : vector<8x768xbf16>, vector<768x768xbf16>, vector<8x768xf32> -> vector<8x768xf32>
    %c0_9 = arith.constant 0 : index
    %c0_10 = arith.constant 0 : index
    %13 = vector.load %arg7[%c0_9, %c0_10] : memref<1x768xf32, #tpu.memory_space<vmem>>, vector<1x768xf32>
    %14 = vector.broadcast %13 : vector<1x768xf32> to vector<8x768xf32>
    %15 = arith.addf %12, %14 : vector<8x768xf32>
    %cst_11 = arith.constant 0.000000e+00 : f32
    %16 = vector.broadcast %cst_11 : f32 to vector<8x768xf32>
    %17 = arith.maximumf %15, %16 : vector<8x768xf32>
    %18 = arith.truncf %17 : vector<8x768xf32> to vector<8x768xbf16>
    %c0_12 = arith.constant 0 : index
    %c0_13 = arith.constant 0 : index
    %19 = vector.load %arg8[%c0_12, %c0_13] : memref<768x256xbf16, #tpu.memory_space<vmem>>, vector<768x256xbf16>
    %cst_14 = arith.constant dense<0.000000e+00> : vector<8x256xf32>
    %20 = tpu.matmul %18, %19, %cst_14 {dimension_numbers = #tpu.dot_dimension_numbers<[1], [0], [0], [1], [0, 0, 1, 1], [], []>} : vector<8x768xbf16>, vector<768x256xbf16>, vector<8x256xf32> -> vector<8x256xf32>
    %c0_15 = arith.constant 0 : index
    %c0_16 = arith.constant 0 : index
    %21 = vector.load %arg9[%c0_15, %c0_16] : memref<1x256xf32, #tpu.memory_space<vmem>>, vector<1x256xf32>
    %22 = vector.broadcast %21 : vector<1x256xf32> to vector<8x256xf32>
    %23 = arith.addf %20, %22 : vector<8x256xf32>
    %24 = vector.extract_strided_slice %23 {offsets = [0, 0], sizes = [8, 128], strides = [1, 1]} : vector<8x256xf32> to vector<8x128xf32>
    %25 = vector.extract_strided_slice %23 {offsets = [0, 128], sizes = [8, 128], strides = [1, 1]} : vector<8x256xf32> to vector<8x128xf32>
    %cst_17 = arith.constant -4.000000e+00 : f32
    %cst_18 = arith.constant 1.500000e+01 : f32
    %26 = vector.broadcast %cst_17 : f32 to vector<8x128xf32>
    %27 = arith.maximumf %26, %25 : vector<8x128xf32>
    %28 = vector.broadcast %cst_18 : f32 to vector<8x128xf32>
    %29 = arith.minimumf %28, %27 : vector<8x128xf32>
    %30 = math.exp %29 : vector<8x128xf32>
    %c0_19 = arith.constant 0 : index
    %c0_20 = arith.constant 0 : index
    %31 = vector.load %arg3[%c0_19, %c0_20] : memref<8x128xf32, #tpu.memory_space<vmem>>, vector<8x128xf32>
    %32 = arith.mulf %30, %31 : vector<8x128xf32>
    %33 = arith.addf %24, %32 : vector<8x128xf32>
    %34 = arith.truncf %1 : vector<8x8xf32> to vector<8x8xbf16>
    %c0_21 = arith.constant 0 : index
    %c0_22 = arith.constant 0 : index
    %35 = vector.load %arg10[%c0_21, %c0_22] : memref<8x768xbf16, #tpu.memory_space<vmem>>, vector<8x768xbf16>
    %cst_23 = arith.constant dense<0.000000e+00> : vector<8x768xf32>
    %36 = tpu.matmul %34, %35, %cst_23 {dimension_numbers = #tpu.dot_dimension_numbers<[1], [0], [0], [1], [0, 0, 1, 1], [], []>} : vector<8x8xbf16>, vector<8x768xbf16>, vector<8x768xf32> -> vector<8x768xf32>
    %37 = arith.truncf %33 : vector<8x128xf32> to vector<8x128xbf16>
    %c0_24 = arith.constant 0 : index
    %c0_25 = arith.constant 0 : index
    %38 = vector.load %arg11[%c0_24, %c0_25] : memref<128x768xbf16, #tpu.memory_space<vmem>>, vector<128x768xbf16>
    %cst_26 = arith.constant dense<0.000000e+00> : vector<8x768xf32>
    %39 = tpu.matmul %37, %38, %cst_26 {dimension_numbers = #tpu.dot_dimension_numbers<[1], [0], [0], [1], [0, 0, 1, 1], [], []>} : vector<8x128xbf16>, vector<128x768xbf16>, vector<8x768xf32> -> vector<8x768xf32>
    %40 = arith.addf %36, %39 : vector<8x768xf32>
    %c0_27 = arith.constant 0 : index
    %c0_28 = arith.constant 0 : index
    %41 = vector.load %arg12[%c0_27, %c0_28] : memref<1x768xf32, #tpu.memory_space<vmem>>, vector<1x768xf32>
    %42 = vector.broadcast %41 : vector<1x768xf32> to vector<8x768xf32>
    %43 = arith.addf %40, %42 : vector<8x768xf32>
    %cst_29 = arith.constant 0.000000e+00 : f32
    %44 = vector.broadcast %cst_29 : f32 to vector<8x768xf32>
    %45 = arith.maximumf %43, %44 : vector<8x768xf32>
    %46 = arith.truncf %45 : vector<8x768xf32> to vector<8x768xbf16>
    %c0_30 = arith.constant 0 : index
    %c0_31 = arith.constant 0 : index
    %47 = vector.load %arg13[%c0_30, %c0_31] : memref<768x768xbf16, #tpu.memory_space<vmem>>, vector<768x768xbf16>
    %cst_32 = arith.constant dense<0.000000e+00> : vector<8x768xf32>
    %48 = tpu.matmul %46, %47, %cst_32 {dimension_numbers = #tpu.dot_dimension_numbers<[1], [0], [0], [1], [0, 0, 1, 1], [], []>} : vector<8x768xbf16>, vector<768x768xbf16>, vector<8x768xf32> -> vector<8x768xf32>
    %c0_33 = arith.constant 0 : index
    %c0_34 = arith.constant 0 : index
    %49 = vector.load %arg14[%c0_33, %c0_34] : memref<1x768xf32, #tpu.memory_space<vmem>>, vector<1x768xf32>
    %50 = vector.broadcast %49 : vector<1x768xf32> to vector<8x768xf32>
    %51 = arith.addf %48, %50 : vector<8x768xf32>
    %cst_35 = arith.constant 0.000000e+00 : f32
    %52 = vector.broadcast %cst_35 : f32 to vector<8x768xf32>
    %53 = arith.maximumf %51, %52 : vector<8x768xf32>
    %c0_36 = arith.constant 0 : index
    %54 = memref.load %arg1[%c0_36] : memref<1xf32, #tpu.memory_space<smem>>
    %55 = arith.truncf %53 : vector<8x768xf32> to vector<8x768xbf16>
    %c0_37 = arith.constant 0 : index
    %c0_38 = arith.constant 0 : index
    %56 = vector.load %arg15[%c0_37, %c0_38] : memref<768x128xbf16, #tpu.memory_space<vmem>>, vector<768x128xbf16>
    %cst_39 = arith.constant dense<0.000000e+00> : vector<8x128xf32>
    %57 = tpu.matmul %55, %56, %cst_39 {dimension_numbers = #tpu.dot_dimension_numbers<[1], [0], [0], [1], [0, 0, 1, 1], [], []>} : vector<8x768xbf16>, vector<768x128xbf16>, vector<8x128xf32> -> vector<8x128xf32>
    %c0_40 = arith.constant 0 : index
    %c0_41 = arith.constant 0 : index
    %58 = vector.load %arg16[%c0_40, %c0_41] : memref<1x128xf32, #tpu.memory_space<vmem>>, vector<1x128xf32>
    %59 = vector.broadcast %58 : vector<1x128xf32> to vector<8x128xf32>
    %60 = arith.addf %57, %59 : vector<8x128xf32>
    %61 = math.tanh %60 : vector<8x128xf32>
    %62 = vector.broadcast %54 : f32 to vector<8x128xf32>
    %63 = arith.mulf %62, %61 : vector<8x128xf32>
    %c0_42 = arith.constant 0 : index
    %c0_43 = arith.constant 0 : index
    %64 = vector.load %arg17[%c0_42, %c0_43] : memref<8x128xf32, #tpu.memory_space<vmem>>, vector<8x128xf32>
    tpu.vector_store %arg17[%c0_42, %c0_43], %63 {strides = array<i32>} : memref<8x128xf32, #tpu.memory_space<vmem>>, vector<8x128xf32>,
    %c0_44 = arith.constant 0 : index
    %c0_45 = arith.constant 0 : index
    %65 = vector.load %arg18[%c0_44, %c0_45] : memref<8x128xf32, #tpu.memory_space<vmem>>, vector<8x128xf32>
    tpu.vector_store %arg18[%c0_44, %c0_45], %24 {strides = array<i32>} : memref<8x128xf32, #tpu.memory_space<vmem>>, vector<8x128xf32>,
    %c0_46 = arith.constant 0 : index
    %c0_47 = arith.constant 0 : index
    %66 = vector.load %arg19[%c0_46, %c0_47] : memref<8x128xf32, #tpu.memory_space<vmem>>, vector<8x128xf32>
    tpu.vector_store %arg19[%c0_46, %c0_47], %30 {strides = array<i32>} : memref<8x128xf32, #tpu.memory_space<vmem>>, vector<8x128xf32>,
    return
  }
  func.func @transform_0(%arg0: i32) -> i32 {
    %c0_i32 = arith.constant 0 : i32
    %c0_i32_0 = arith.constant 0 : i32
    return %c0_i32 : i32
  }
  func.func @transform_1(%arg0: i32) -> (i32, i32) {
    %c0_i32 = arith.constant 0 : i32
    %c0_i32_0 = arith.constant 0 : i32
    return %arg0, %c0_i32 : i32, i32
  }
  func.func @transform_2(%arg0: i32) -> (i32, i32) {
    %c0_i32 = arith.constant 0 : i32
    %c0_i32_0 = arith.constant 0 : i32
    return %arg0, %c0_i32 : i32, i32
  }
  func.func @transform_3(%arg0: i32) -> (i32, i32) {
    %c0_i32 = arith.constant 0 : i32
    %c0_i32_0 = arith.constant 0 : i32
    %c0_i32_1 = arith.constant 0 : i32
    return %c0_i32, %c0_i32_0 : i32, i32
  }
  func.func @transform_4(%arg0: i32) -> (i32, i32) {
    %c0_i32 = arith.constant 0 : i32
    %c0_i32_0 = arith.constant 0 : i32
    %c0_i32_1 = arith.constant 0 : i32
    return %c0_i32, %c0_i32_0 : i32, i32
  }
  func.func @transform_5(%arg0: i32) -> (i32, i32) {
    %c0_i32 = arith.constant 0 : i32
    %c0_i32_0 = arith.constant 0 : i32
    %c0_i32_1 = arith.constant 0 : i32
    return %c0_i32, %c0_i32_0 : i32, i32
  }
  func.func @transform_6(%arg0: i32) -> (i32, i32) {
    %c0_i32 = arith.constant 0 : i32
    %c0_i32_0 = arith.constant 0 : i32
    %c0_i32_1 = arith.constant 0 : i32
    return %c0_i32, %c0_i32_0 : i32, i32
  }
  func.func @transform_7(%arg0: i32) -> (i32, i32) {
    %c0_i32 = arith.constant 0 : i32
    %c0_i32_0 = arith.constant 0 : i32
    %c0_i32_1 = arith.constant 0 : i32
    return %c0_i32, %c0_i32_0 : i32, i32
  }
  func.func @transform_8(%arg0: i32) -> (i32, i32) {
    %c0_i32 = arith.constant 0 : i32
    %c0_i32_0 = arith.constant 0 : i32
    %c0_i32_1 = arith.constant 0 : i32
    return %c0_i32, %c0_i32_0 : i32, i32
  }
  func.func @transform_9(%arg0: i32) -> (i32, i32) {
    %c0_i32 = arith.constant 0 : i32
    %c0_i32_0 = arith.constant 0 : i32
    %c0_i32_1 = arith.constant 0 : i32
    return %c0_i32, %c0_i32_0 : i32, i32
  }
  func.func @transform_10(%arg0: i32) -> (i32, i32) {
    %c0_i32 = arith.constant 0 : i32
    %c0_i32_0 = arith.constant 0 : i32
    %c0_i32_1 = arith.constant 0 : i32
    return %c0_i32, %c0_i32_0 : i32, i32
  }
  func.func @transform_11(%arg0: i32) -> (i32, i32) {
    %c0_i32 = arith.constant 0 : i32
    %c0_i32_0 = arith.constant 0 : i32
    %c0_i32_1 = arith.constant 0 : i32
    return %c0_i32, %c0_i32_0 : i32, i32
  }
  func.func @transform_12(%arg0: i32) -> (i32, i32) {
    %c0_i32 = arith.constant 0 : i32
    %c0_i32_0 = arith.constant 0 : i32
    %c0_i32_1 = arith.constant 0 : i32
    return %c0_i32, %c0_i32_0 : i32, i32
  }
  func.func @transform_13(%arg0: i32) -> (i32, i32) {
    %c0_i32 = arith.constant 0 : i32
    %c0_i32_0 = arith.constant 0 : i32
    %c0_i32_1 = arith.constant 0 : i32
    return %c0_i32, %c0_i32_0 : i32, i32
  }
  func.func @transform_14(%arg0: i32) -> (i32, i32) {
    %c0_i32 = arith.constant 0 : i32
    %c0_i32_0 = arith.constant 0 : i32
    %c0_i32_1 = arith.constant 0 : i32
    return %c0_i32, %c0_i32_0 : i32, i32
  }
  func.func @transform_15(%arg0: i32) -> (i32, i32) {
    %c0_i32 = arith.constant 0 : i32
    %c0_i32_0 = arith.constant 0 : i32
    %c0_i32_1 = arith.constant 0 : i32
    return %c0_i32, %c0_i32_0 : i32, i32
  }
  func.func @transform_16(%arg0: i32) -> (i32, i32) {
    %c0_i32 = arith.constant 0 : i32
    %c0_i32_0 = arith.constant 0 : i32
    return %arg0, %c0_i32 : i32, i32
  }
  func.func @transform_17(%arg0: i32) -> (i32, i32) {
    %c0_i32 = arith.constant 0 : i32
    %c0_i32_0 = arith.constant 0 : i32
    return %arg0, %c0_i32 : i32, i32
  }
  func.func @transform_18(%arg0: i32) -> (i32, i32) {
    %c0_i32 = arith.constant 0 : i32
    %c0_i32_0 = arith.constant 0 : i32
    return %arg0, %c0_i32 : i32, i32
  }
}

</mosaic_0001>

<bundles_post_ra>
// kernel: tpu_custom_call.1
= control target key start
LH: loop header
LB: loop body
LE: loop exit
PB: predicated region body
PF: predicated region fallthrough
CT: control target
= control target key end

     0   :  { %s11513_s0 = inlined_call_operand.<no memory space> [shape: f32[1], index: 0, kind: input, shape index: {}]   ;;  %s11514_s1 = inlined_call_operand.hbm [shape: f32[8,12], index: 1, kind: input, shape index: {}]   ;;  %s11515_s2 = inlined_call_operand.hbm [shape: f32[8,128], index: 2, kind: input, shape index: {}]   ;;  %s11516_s3 = inlined_call_operand.hbm [shape: bf16[12,768], index: 3, kind: input, shape index: {}]   ;;  %s11517_s4 = inlined_call_operand.hbm [shape: f32[1,768], index: 4, kind: input, shape index: {}]   ;;  %s11518_s5 = inlined_call_operand.hbm [shape: bf16[768,768], index: 5, kind: input, shape index: {}]   ;;  %s11519_s6 = inlined_call_operand.hbm [shape: f32[1,768], index: 6, kind: input, shape index: {}]   ;;  %s11520_s7 = inlined_call_operand.hbm [shape: bf16[768,256], index: 7, kind: input, shape index: {}]   ;;  %s11521_s8 = inlined_call_operand.hbm [shape: f32[1,256], index: 8, kind: input, shape index: {}]   ;;  %s11522_s9 = inlined_call_operand.hbm [shape: bf16[8,768], index: 9, kind: input, shape index: {}]   ;;  %s11523_s10 = inlined_call_operand.hbm [shape: bf16[128,768], index: 10, kind: input, shape index: {}]   ;;  %s11524_s11 = inlined_call_operand.hbm [shape: f32[1,768], index: 11, kind: input, shape index: {}]   ;;  %s11525_s12 = inlined_call_operand.hbm [shape: bf16[768,768], index: 12, kind: input, shape index: {}]   ;;  %s11526_s13 = inlined_call_operand.hbm [shape: f32[1,768], index: 13, kind: input, shape index: {}]   ;;  %s11527_s14 = inlined_call_operand.hbm [shape: bf16[768,128], index: 14, kind: input, shape index: {}]   ;;  %s11528_s15 = inlined_call_operand.hbm [shape: f32[1,128], index: 15, kind: input, shape index: {}]   ;;  %s11529_s16 = inlined_call_operand.hbm [shape: f32[8,128], index: 16, kind: output, shape index: {0}]   ;;  %s11530_s17 = inlined_call_operand.hbm [shape: f32[8,128], index: 17, kind: output, shape index: {1}]   ;;  %s11531_s18 = inlined_call_operand.hbm [shape: f32[8,128], index: 18, kind: output, shape index: {2}]  }
   0x1   :  { %11532 = sst [smem:[#allocation41_spill]] %s11513_s0 }
   0x2   :  { %11533 = sst [smem:[#allocation42_spill]] %s11514_s1 }
   0x3   :  { %11534 = sst [smem:[#allocation43_spill]] %s11515_s2 }
   0x4   :  { %25 = vsyncpa [#allocation4], 0 }
   0x5   :  { %26 = vsyncpa [#allocation7], 0 }
   0x6   :  { %27 = vsyncpa [#allocation10], 0 }
   0x7   :  { %28 = vsyncpa [#allocation13], 0 }
   0x8   :  { %29 = vsyncpa [#allocation16], 0 }
   0x9   :  { %30 = vsyncpa [#allocation19], 0 }
   0xa   :  { %31 = vsyncpa [#allocation22], 0 }
   0xb   :  { %32 = vsyncpa [#allocation25], 0 }
   0xc   :  { %33 = vsyncpa [#allocation5], 0  ;;  %s11535_s29 = sld [smem:[#allocation43_spill]] }
  0x12   :  { %s53_s30 = sshll.u32 %s11535_s29, 4  ;;  %s54_s30 = int_to_ptr.hbm [resolvable:$true] %s53_s30 }
  0x13   :  { %34 = vsyncpa [#allocation29], 0  ;;  %s11033_s0 = smov [#allocation6]   ;;  %s77_s21 = sshll.u32 %s11517_s4, 4  ;;  %s78_s21 = int_to_ptr.hbm [resolvable:$true] %s77_s21 }
  0x14   :  { %s55_s19 = sshll.u32 %s11033_s0, 4  ;;  %s11034_s22 = smov [#allocation9]   ;;  %s56_s19 = int_to_ptr.vmem [resolvable:$true] %s55_s19 }
  0x15   :  { %58 = dma.hbm_to_vmem [thread:$0]  %s54_s30, 128, %s56_s19, [#allocation7]  }
  0x16   :  { %s79_s2 = sshll.u32 %s11034_s22, 4  ;;  %s101_s25 = sshll.u32 %s11519_s6, 4  ;;  %s80_s2 = int_to_ptr.vmem [resolvable:$true] %s79_s2  ;;  %s102_s25 = int_to_ptr.hbm [resolvable:$true] %s101_s25 }
  0x17   :  { %82 = dma.hbm_to_vmem [thread:$0]  %s78_s21, 96, %s80_s2, [#allocation10]  }
  0x18   :  { %s125_s28 = sshll.u32 %s11521_s8, 4  ;;  %s11035_s29 = smov [#allocation12]   ;;  %s126_s28 = int_to_ptr.hbm [resolvable:$true] %s125_s28 }
  0x19   :  { %s103_s0 = sshll.u32 %s11035_s29, 4  ;;  %s11036_s4 = smov [#allocation15]   ;;  %s104_s0 = int_to_ptr.vmem [resolvable:$true] %s103_s0 }
  0x1a   :  { %106 = dma.hbm_to_vmem [thread:$0]  %s102_s25, 96, %s104_s0, [#allocation13]  }
  0x1b   :  { %s127_s30 = sshll.u32 %s11036_s4, 4  ;;  %s146_s6 = sshll.u32 %s11523_s10, 4  ;;  %s128_s30 = int_to_ptr.vmem [resolvable:$true] %s127_s30  ;;  %s147_s6 = int_to_ptr.hbm [resolvable:$true] %s146_s6 }
  0x1c   :  { %130 = dma.hbm_to_vmem [thread:$0]  %s126_s28, 32, %s128_s30, [#allocation16]  }
  0x1d   :  { %s11037_s20 = smov [#allocation18]   ;;  %s170_s8 = sshll.u32 %s11525_s12, 4  ;;  %s171_s8 = int_to_ptr.hbm [resolvable:$true] %s170_s8 }
  0x1e   :  { %s148_s21 = sshll.u32 %s11037_s20, 4  ;;  %s11038_s23 = smov 384   ;;  %s149_s21 = int_to_ptr.vmem [resolvable:$true] %s148_s21 }
  0x1f   :  { %s11039_s24 = smov 24   ;;  %s11040_s25 = smov [#allocation21]  }
  0x20   :  { %154 = dma.hbm_to_vmem [thread:$0]  %s147_s6, 6144, %s149_s21, [#allocation19], %s11038_s23, %s11038_s23, %s11039_s24  }
  0x21   :  { %s172_s26 = sshll.u32 %s11040_s25, 4  ;;  %s194_s10 = sshll.u32 %s11527_s14, 4  ;;  %s173_s26 = int_to_ptr.vmem [resolvable:$true] %s172_s26  ;;  %s195_s10 = int_to_ptr.hbm [resolvable:$true] %s194_s10 }
  0x22   :  { %178 = dma.hbm_to_vmem [thread:$0]  %s171_s8, 36864, %s173_s26, [#allocation22], %s11038_s23, %s11038_s23, %s11039_s24  }
  0x23   :  { %s11041_s12 = smov [#allocation24]   ;;  %s11536_s30 = sld [smem:[#allocation42_spill]] }
  0x24   :  { %s196_s29 = sshll.u32 %s11041_s12, 4  ;;  %s11042_s1 = smov 64   ;;  %s197_s29 = int_to_ptr.vmem [resolvable:$true] %s196_s29 }
  0x25   :  { %s11043_s6 = smov 4   ;;  %s11044_s20 = smov [#allocation3]  }
  0x26   :  { %202 = dma.hbm_to_vmem [thread:$0]  %s195_s10, 6144, %s197_s29, [#allocation25], %s11042_s1, %s11042_s1, %s11043_s6  }
  0x27   :  { %s44_s21 = sshll.u32 %s11044_s20, 4  ;;  %s63_s2 = sshll.u32 %s11516_s3, 4  ;;  %s45_s21 = int_to_ptr.vmem [resolvable:$true] %s44_s21  ;;  %s64_s2 = int_to_ptr.hbm [resolvable:$true] %s63_s2 }
  0x28   :  { %s87_s26 = sshll.u32 %s11518_s5, 4  ;;  %s11045_s27 = smov [#allocation8]   ;;  %s88_s26 = int_to_ptr.hbm [resolvable:$true] %s87_s26 }
  0x29   :  { %s42_s19 = sshll.u32 %s11536_s30, 4  ;;  %s65_s28 = sshll.u32 %s11045_s27, 4  ;;  %s43_s19 = int_to_ptr.hbm [resolvable:$true] %s42_s19  ;;  %s66_s28 = int_to_ptr.vmem [resolvable:$true] %s65_s28 }
  0x2a   :  { %47 = dma.hbm_to_vmem [thread:$0]  %s43_s19, 128, %s45_s21, [#allocation4]  }
  0x2b   :  { %71 = dma.hbm_to_vmem [thread:$0]  %s64_s2, 768, %s66_s28, [#allocation7], %s11038_s23, %s11038_s23, %s11039_s24  }
  0x2c   :  { %s11046_s10 = smov [#allocation11]   ;;  %s111_s3 = sshll.u32 %s11520_s7, 4  ;;  %s112_s3 = int_to_ptr.hbm [resolvable:$true] %s111_s3 }
  0x2d   :  { %s89_s12 = sshll.u32 %s11046_s10, 4  ;;  %s11047_s5 = smov [#allocation14]   ;;  %s90_s12 = int_to_ptr.vmem [resolvable:$true] %s89_s12 }
  0x2e   :  { %95 = dma.hbm_to_vmem [thread:$0]  %s88_s26, 36864, %s90_s12, [#allocation10], %s11038_s23, %s11038_s23, %s11039_s24  }
  0x2f   :  { %s113_s4 = sshll.u32 %s11047_s5, 4  ;;  %s136_s1 = sshll.u32 %s11522_s9, 4  ;;  %s114_s4 = int_to_ptr.vmem [resolvable:$true] %s113_s4  ;;  %s137_s1 = int_to_ptr.hbm [resolvable:$true] %s136_s1 }
  0x30   :  { %s11048_s6 = smov 128   ;;  %s11049_s20 = smov 8  }
  0x31   :  { %119 = dma.hbm_to_vmem [thread:$0]  %s112_s3, 12288, %s114_s4, [#allocation13], %s11048_s6, %s11048_s6, %s11049_s20  }
  0x32   :  { %s11050_s21 = smov [#allocation17]   ;;  %s160_s2 = sshll.u32 %s11524_s11, 4  ;;  %s161_s2 = int_to_ptr.hbm [resolvable:$true] %s160_s2 }
  0x33   :  { %s138_s14 = sshll.u32 %s11050_s21, 4  ;;  %s184_s8 = sshll.u32 %s11526_s13, 4  ;;  %s139_s14 = int_to_ptr.vmem [resolvable:$true] %s138_s14  ;;  %s185_s8 = int_to_ptr.hbm [resolvable:$true] %s184_s8 }
  0x34   :  { %141 = dma.hbm_to_vmem [thread:$0]  %s137_s1, 384, %s139_s14, [#allocation16]  }
  0x35   :  { %s11051_s25 = smov [#allocation20]   ;;  %s11052_s9 = smov [#allocation23]  }
  0x36   :  { %s162_s26 = sshll.u32 %s11051_s25, 4  ;;  %s186_s27 = sshll.u32 %s11052_s9, 4  ;;  %s163_s26 = int_to_ptr.vmem [resolvable:$true] %s162_s26  ;;  %s187_s27 = int_to_ptr.vmem [resolvable:$true] %s186_s27 }
  0x37   :  { %165 = dma.hbm_to_vmem [thread:$0]  %s161_s2, 96, %s163_s26, [#allocation19]  }
  0x38   :  { %s208_s12 = sshll.u32 %s11528_s15, 4  ;;  %s11053_s11 = smov [#allocation26]   ;;  %s209_s12 = int_to_ptr.hbm [resolvable:$true] %s208_s12 }
  0x39   :  { %189 = dma.hbm_to_vmem [thread:$0]  %s185_s8, 96, %s187_s27, [#allocation22]  }
  0x3a   :  { %s210_s29 = sshll.u32 %s11053_s11, 4  ;;  %s211_s29 = int_to_ptr.vmem [resolvable:$true] %s210_s29 }
  0x3b   :  { %213 = dma.hbm_to_vmem [thread:$0]  %s209_s12, 16, %s211_s29, [#allocation25]  }
  0x3c   :  { %11013 = dma.done.wait [#allocation4], 128  }
  0x3d   :  { %11014 = vsyncadd [#allocation4], 4294967168 }
  0x3e   :  { %11015 = dma.done.wait [#allocation7], 896  }
  0x3f   :  { %11016 = vsyncadd [#allocation7], 4294966400 }
  0x40   :  { %11017 = dma.done.wait [#allocation10], 36960  }
  0x41   :  { %11018 = vsyncadd [#allocation10], 4294930336 }
  0x42   :  { %11019 = dma.done.wait [#allocation13], 12384  }
  0x43   :  { %11020 = vsyncadd [#allocation13], 4294954912 }
  0x44   :  { %11021 = dma.done.wait [#allocation16], 416  }
  0x45   :  { %11022 = vsyncadd [#allocation16], 4294966880 }
  0x46   :  { %11023 = dma.done.wait [#allocation19], 6240  }
  0x47   :  { %11024 = vsyncadd [#allocation19], 4294961056 }
  0x48   :  { %11025 = dma.done.wait [#allocation22], 36960  }
  0x49   :  { %11026 = vsyncadd [#allocation22], 4294930336 }
  0x4a   :  { %11027 = dma.done.wait [#allocation25], 6160  }
  0x4b   :  { %11028 = vsyncadd [#allocation25], 4294961136  ;;  %vm325_vm0 = vcmask 1045504   ;;  %v6670_v0 = vld [vmem:[#allocation8] sm:$0xf]  ;;  %v275_v5 = vld [vmem:[#allocation3] sm:$0xff] }
  0x4c   :  { %v9779_v1 = vld [vmem:[#allocation8 + $0x14] sm:$0x30]  ;;  %v9776_v2 = vld [vmem:[#allocation8 + $0x4] sm:$0xf]  ;;  %v6672_v4 = vld [vmem:[#allocation8 + $0x18] sm:$0x30]  ;;  %v11210_v12 = vpack.c.bf16 %v275_v5, %v275_v5 }
  0x4d   :  { %v6671_v3 = vor.u32 %v9779_v1, %v6670_v0  ;;  %v6678_v6 = vld [vmem:[#allocation8 + $0x8] sm:$0xf]  ;;  %v6675_v7 = vor.u32 %v9776_v2, %v6672_v4  ;;  %v9780_v8 = vld [vmem:[#allocation8 + $0x1c] sm:$0x30]  ;;  %v9777_v9 = vld [vmem:[#allocation8 + $0xc] sm:$0xf] }
  0x4e   :  { %v6680_v10 = vld [vmem:[#allocation8 + $0x20] sm:$0x30]  ;;  %v6679_v13 = vor.u32 %v9780_v8, %v6678_v6  ;;  %v6686_v15 = vld [vmem:[#allocation8 + $0x10] sm:$0xf]  ;;  %v9781_v16 = vld [vmem:[#allocation8 + $0x24] sm:$0x30] }
  0x4f   :  { %v327_v11 = vsel %vm325_vm0, %v6671_v3, 0  ;;  %v6683_v14 = vor.u32 %v9777_v9, %v6680_v10  ;;  %v330_v17 = vsel %vm325_vm0, %v6675_v7, 0  ;;  %vm321_vm1 = vcmask 97280   ;;  %v9778_v19 = vld [vmem:[#allocation8 + $0x14] sm:$0xf]  ;;  %s6631_s0 = sshll.u32 %s11530_s17, 4  ;;  %s6632_s0 = int_to_ptr.hbm [resolvable:$true] %s6631_s0 }
  0x50   :  { %351 = vmatpush.bf16.msra.mxu2 %v327_v11  ;;  %v6687_v18 = vor.u32 %v9781_v16, %v6686_v15  ;;  %v6688_v20 = vld [vmem:[#allocation8 + $0x28] sm:$0x30]  ;;  %364 = vmatpush.bf16.msra.mxu3 %v330_v17  ;;  %v333_v21 = vsel %vm325_vm0, %v6679_v13, 0  ;;  %v6868_v24 = vld [vmem:[#allocation11 + $0x150] sm:$0xf]  ;;  %vm3789_vm2 = vcmask 1043456  }
  0x51   :  { %v336_v22 = vsel %vm325_vm0, %v6683_v14, 0  ;;  %v6691_v23 = vor.u32 %v9778_v19, %v6688_v20  ;;  %v9827_v25 = vld [vmem:[#allocation11 + $0x164] sm:$0xf0]  ;;  %v7060_v28 = vld [vmem:[#allocation11 + $0x2d0] sm:$0xf]  ;;  %vm3786_vm3 = vcmask 64512  }
  0x52   :  { %v339_v26 = vsel %vm325_vm0, %v6687_v18, 0  ;;  %v6869_v27 = vor.u32 %v9827_v25, %v6868_v24  ;;  %v9875_v29 = vld [vmem:[#allocation11 + $0x2e4] sm:$0xf0]  ;;  %v6844_v32 = vld [vmem:[#allocation11 + $0x120] sm:$0xf]  ;;  %s11054_s3 = smov [#allocation28]  }
  0x53   :  { %6692 = vmatmul.msk.bf16.vlgmr.msra.gmra.mxu2 %vm321_vm1, %v11210_v12  ;;  %403 = vmatpush.bf16.msra.mxu0 %v339_v26  ;;  %v342_v30 = vsel %vm325_vm0, %v6691_v23, 0  ;;  %v7061_v31 = vor.u32 %v9875_v29, %v7060_v28  ;;  %v9821_v33 = vld [vmem:[#allocation11 + $0x134] sm:$0xf0]  ;;  %v7036_v34 = vld [vmem:[#allocation11 + $0x2a0] sm:$0xf]  ;;  %s6629_s5 = sshll.u32 %s11054_s3, 4  ;;  %s6630_s5 = int_to_ptr.vmem [resolvable:$true] %s6629_s5 }
  0x54   :  { %377 = vmatpush.bf16.msrb.mxu2 %v333_v21  ;;  %390 = vmatpush.bf16.msrb.mxu3 %v336_v22  ;;  %v9869_v35 = vld [vmem:[#allocation11 + $0x2b4] sm:$0xf0]  ;;  %v6845_v36 = vor.u32 %v9821_v33, %v6844_v32  ;;  %v6820_v38 = vld [vmem:[#allocation11 + $0xf0] sm:$0xf]  ;;  %v9815_v39 = vld [vmem:[#allocation11 + $0x104] sm:$0xf0] }
  0x55   :  { %6693 = vmatmul.msk.bf16.vlgmr.msra.gmra.mxu3 %vm321_vm1, %v11210_v12  ;;  %416 = vmatpush.bf16.msra.mxu1 %v342_v30  ;;  %v7037_v37 = vor.u32 %v9869_v35, %v7036_v34  ;;  %v7012_v40 = vld [vmem:[#allocation11 + $0x270] sm:$0xf]  ;;  %v9863_v41 = vld [vmem:[#allocation11 + $0x284] sm:$0xf0]  ;;  %v6796_v42 = vld [vmem:[#allocation11 + $0xc0] sm:$0xf]  ;;  %v6821_v44 = vor.u32 %v9815_v39, %v6820_v38 }
  0x56   :  { %6696 = vmatmul.msk.bf16.vlgmr.msra.gmra.mxu0 %vm321_vm1, %v11210_v12  ;;  %v7252_v43 = vld [vmem:[#allocation11 + $0x450] sm:$0xf]  ;;  %v7013_v45 = vor.u32 %v9863_v41, %v7012_v40  ;;  %v9923_v46 = vld [vmem:[#allocation11 + $0x464] sm:$0xf0]  ;;  %v9809_v49 = vld [vmem:[#allocation11 + $0xd4] sm:$0xf0] }
  0x57   :  { %v7444_v47 = vld [vmem:[#allocation11 + $0x5d0] sm:$0xf]  ;;  %v9971_v48 = vld [vmem:[#allocation11 + $0x5e4] sm:$0xf0]  ;;  %v6988_v50 = vld [vmem:[#allocation11 + $0x240] sm:$0xf]  ;;  %v7253_v52 = vor.u32 %v9923_v46, %v7252_v43  ;;  %v6797_v59 = vor.u32 %v9809_v49, %v6796_v42 }
  0x58   :  { %2176 = vmatpush.bf16.msra.mxu2 %v6869_v27  ;;  %2189 = vmatpush.bf16.msra.mxu3 %v7061_v31  ;;  %v9857_v51 = vld [vmem:[#allocation11 + $0x254] sm:$0xf0]  ;;  %v7445_v53 = vor.u32 %v9971_v48, %v7444_v47  ;;  %v7228_v54 = vld [vmem:[#allocation11 + $0x420] sm:$0xf]  ;;  %v6772_v61 = vld [vmem:[#allocation11 + $0x90] sm:$0xf] }
  0x59   :  { %6697 = vmatmul.msk.bf16.vlgmr.msra.gmra.mxu1 %vm321_vm1, %v11210_v12  ;;  %v9917_v55 = vld [vmem:[#allocation11 + $0x434] sm:$0xf0]  ;;  %2202 = vmatpush.bf16.msrb.mxu0 %v7253_v52  ;;  %v7420_v57 = vld [vmem:[#allocation11 + $0x5a0] sm:$0xf]  ;;  %v6989_v60 = vor.u32 %v9857_v51, %v6988_v50  ;;  %v9803_v62 = vld [vmem:[#allocation11 + $0xa4] sm:$0xf0] }
  0x5a   :  { %2215 = vmatpush.bf16.msrb.mxu1 %v7445_v53  ;;  %v7229_v56 = vor.u32 %v9917_v55, %v7228_v54  ;;  %v9965_v58 = vld [vmem:[#allocation11 + $0x5b4] sm:$0xf0]  ;;  %v6964_v63 = vld [vmem:[#allocation11 + $0x210] sm:$0xf]  ;;  %v9851_v1 = vld [vmem:[#allocation11 + $0x224] sm:$0xf0]  ;;  %v6773_v7 = vor.u32 %v9803_v62, %v6772_v61 }
  0x5b   :  { %v7421_v0 = vor.u32 %v9965_v58, %v7420_v57  ;;  %v7204_v2 = vld [vmem:[#allocation11 + $0x3f0] sm:$0xf]  ;;  %v9911_v3 = vld [vmem:[#allocation11 + $0x404] sm:$0xf0]  ;;  %v6965_v8 = vor.u32 %v9851_v1, %v6964_v63  ;;  %v6748_v9 = vld [vmem:[#allocation11 + $0x60] sm:$0xf] }
  0x5c   :  { %2177 = vmatpush.bf16.msra.mxu2 %v6845_v36  ;;  %2190 = vmatpush.bf16.msra.mxu3 %v7037_v37  ;;  %v7396_v4 = vld [vmem:[#allocation11 + $0x570] sm:$0xf]  ;;  %v9959_v5 = vld [vmem:[#allocation11 + $0x584] sm:$0xf0]  ;;  %v7205_v6 = vor.u32 %v9911_v3, %v7204_v2  ;;  %v7180_v10 = vld [vmem:[#allocation11 + $0x3c0] sm:$0xf] }
  0x5d   :  { %2203 = vmatpush.bf16.msrb.mxu0 %v7229_v56  ;;  %v9905_v11 = vld [vmem:[#allocation11 + $0x3d4] sm:$0xf0]  ;;  %v6940_v14 = vld [vmem:[#allocation11 + $0x1e0] sm:$0xf]  ;;  %v7397_v16 = vor.u32 %v9959_v5, %v7396_v4  ;;  %v6724_v22 = vld [vmem:[#allocation11 + $0x30] sm:$0xf] }
  0x5e   :  { %2216 = vmatpush.bf16.msrb.mxu1 %v7421_v0  ;;  %v9797_v13 = vld [vmem:[#allocation11 + $0x74] sm:$0xf0]  ;;  %v7372_v17 = vld [vmem:[#allocation11 + $0x540] sm:$0xf]  ;;  %v7181_v19 = vor.u32 %v9905_v11, %v7180_v10  ;;  %v7156_v23 = vld [vmem:[#allocation11 + $0x390] sm:$0xf] }
  0x5f   :  { %v9845_v15 = vld [vmem:[#allocation11 + $0x1f4] sm:$0xf0]  ;;  %v6749_v20 = vor.u32 %v9797_v13, %v6748_v9  ;;  %v9899_v24 = vld [vmem:[#allocation11 + $0x3a4] sm:$0xf0]  ;;  %v6916_v26 = vld [vmem:[#allocation11 + $0x1b0] sm:$0xf] }
  0x60   :  { %2178 = vmatpush.bf16.msra.mxu2 %v6821_v44  ;;  %2191 = vmatpush.bf16.msra.mxu3 %v7013_v45  ;;  %v9953_v18 = vld [vmem:[#allocation11 + $0x554] sm:$0xf0]  ;;  %v6941_v21 = vor.u32 %v9845_v15, %v6940_v14  ;;  %v9791_v25 = vld [vmem:[#allocation11 + $0x44] sm:$0xf0]  ;;  %v7348_v29 = vld [vmem:[#allocation11 + $0x510] sm:$0xf]  ;;  %v7157_v32 = vor.u32 %v9899_v24, %v7156_v23 }
  0x61   :  { %2204 = vmatpush.bf16.msrb.mxu0 %v7205_v6  ;;  %v9839_v27 = vld [vmem:[#allocation11 + $0x1c4] sm:$0xf0]  ;;  %v7373_v28 = vor.u32 %v9953_v18, %v7372_v17  ;;  %v6700_v31 = vld [vmem:[#allocation11] sm:$0xf]  ;;  %v6725_v33 = vor.u32 %v9791_v25, %v6724_v22  ;;  %v9785_v35 = vld [vmem:[#allocation11 + $0x14] sm:$0xf0] }
  0x62   :  { %2217 = vmatpush.bf16.msrb.mxu1 %v7397_v16  ;;  %v9947_v30 = vld [vmem:[#allocation11 + $0x524] sm:$0xf0]  ;;  %v6917_v34 = vor.u32 %v9839_v27, %v6916_v26  ;;  %v7132_v36 = vld [vmem:[#allocation11 + $0x360] sm:$0xf]  ;;  %v9893_v37 = vld [vmem:[#allocation11 + $0x374] sm:$0xf0]  ;;  %v6701_v48 = vor.u32 %v9785_v35, %v6700_v31 }
  0x63   :  { %6694 = vmatmul.msk.bf16.vlgmr.msrb.gmra.mxu2 %vm321_vm1, %v11210_v12  ;;  %v6892_v38 = vld [vmem:[#allocation11 + $0x180] sm:$0xf]  ;;  %v9833_v39 = vld [vmem:[#allocation11 + $0x194] sm:$0xf0]  ;;  %v7636_v40 = vld [vmem:[#allocation11 + $0x750] sm:$0xf]  ;;  %v7349_v41 = vor.u32 %v9947_v30, %v7348_v29  ;;  %v7133_v45 = vor.u32 %v9893_v37, %v7132_v36 }
  0x64   :  { %2179 = vmatpush.bf16.msra.mxu2 %v6797_v59  ;;  %2192 = vmatpush.bf16.msra.mxu3 %v6989_v60  ;;  %v10019_v42 = vld [vmem:[#allocation11 + $0x764] sm:$0xf0]  ;;  %v7828_v43 = vld [vmem:[#allocation11 + $0x8d0] sm:$0xf]  ;;  %v7324_v46 = vld [vmem:[#allocation11 + $0x4e0] sm:$0xf]  ;;  %v6893_v49 = vor.u32 %v9833_v39, %v6892_v38 }
  0x65   :  { %6695 = vmatmul.msk.bf16.vlgmr.msrb.gmra.mxu3 %vm321_vm1, %v11210_v12  ;;  %2205 = vmatpush.bf16.msrb.mxu0 %v7181_v19  ;;  %v10067_v44 = vld [vmem:[#allocation11 + $0x8e4] sm:$0xf0]  ;;  %v9941_v47 = vld [vmem:[#allocation11 + $0x4f4] sm:$0xf0]  ;;  %v7108_v50 = vld [vmem:[#allocation11 + $0x330] sm:$0xf]  ;;  %v7637_v52 = vor.u32 %v10019_v42, %v7636_v40 }
  0x66   :  { %2218 = vmatpush.bf16.msrb.mxu1 %v7373_v28  ;;  %v9887_v51 = vld [vmem:[#allocation11 + $0x344] sm:$0xf0]  ;;  %v7829_v53 = vor.u32 %v10067_v44, %v7828_v43  ;;  %v7612_v54 = vld [vmem:[#allocation11 + $0x720] sm:$0xf]  ;;  %v10013_v55 = vld [vmem:[#allocation11 + $0x734] sm:$0xf0]  ;;  %v7325_v58 = vor.u32 %v9941_v47, %v7324_v46 }
  0x67   :  { %v7804_v56 = vld [vmem:[#allocation11 + $0x8a0] sm:$0xf]  ;;  %v10061_v57 = vld [vmem:[#allocation11 + $0x8b4] sm:$0xf0]  ;;  %v7109_v59 = vor.u32 %v9887_v51, %v7108_v50  ;;  %v7300_v60 = vld [vmem:[#allocation11 + $0x4b0] sm:$0xf]  ;;  %v7613_v1 = vor.u32 %v10013_v55, %v7612_v54 }
  0x68   :  { %2180 = vmatpush.bf16.msra.mxu2 %v6773_v7  ;;  %2193 = vmatpush.bf16.msra.mxu3 %v6965_v8  ;;  %v9935_v61 = vld [vmem:[#allocation11 + $0x4c4] sm:$0xf0]  ;;  %v7588_v62 = vld [vmem:[#allocation11 + $0x6f0] sm:$0xf]  ;;  %v7084_v63 = vld [vmem:[#allocation11 + $0x300] sm:$0xf]  ;;  %v7805_v2 = vor.u32 %v10061_v57, %v7804_v56 }
  0x69   :  { %2206 = vmatpush.bf16.msrb.mxu0 %v7157_v32  ;;  %v9881_v0 = vld [vmem:[#allocation11 + $0x314] sm:$0xf0]  ;;  %v9824_v3 = vld [vmem:[#allocation11 + $0x154] sm:$0xf]  ;;  %v6870_v4 = vld [vmem:[#allocation11 + $0x168] sm:$0xf0]  ;;  %v7301_v8 = vor.u32 %v9935_v61, %v7300_v60 }
  0x6a   :  { %2219 = vmatpush.bf16.msrb.mxu1 %v7349_v41  ;;  %v10007_v5 = vld [vmem:[#allocation11 + $0x704] sm:$0xf0]  ;;  %v7780_v6 = vld [vmem:[#allocation11 + $0x870] sm:$0xf]  ;;  %v7085_v9 = vor.u32 %v9881_v0, %v7084_v63  ;;  %v7276_v10 = vld [vmem:[#allocation11 + $0x480] sm:$0xf]  ;;  %v6873_v13 = vor.u32 %v9824_v3, %v6870_v4 }
  0x6b   :  { %v10055_v7 = vld [vmem:[#allocation11 + $0x884] sm:$0xf0]  ;;  %v9929_v11 = vld [vmem:[#allocation11 + $0x494] sm:$0xf0]  ;;  %v9872_v14 = vld [vmem:[#allocation11 + $0x2d4] sm:$0xf]  ;;  %v7589_v16 = vor.u32 %v10007_v5, %v7588_v62 }
  0x6c   :  { %2181 = vmatpush.bf16.msra.mxu2 %v6749_v20  ;;  %2194 = vmatpush.bf16.msra.mxu3 %v6941_v21  ;;  %v7062_v15 = vld [vmem:[#allocation11 + $0x2e8] sm:$0xf0]  ;;  %v7781_v17 = vor.u32 %v10055_v7, %v7780_v6  ;;  %v7564_v18 = vld [vmem:[#allocation11 + $0x6c0] sm:$0xf]  ;;  %v9818_v19 = vld [vmem:[#allocation11 + $0x124] sm:$0xf]  ;;  %v7277_v24 = vor.u32 %v9929_v11, %v7276_v10 }
  0x6d   :  { %2207 = vmatpush.bf16.msrb.mxu0 %v7133_v45  ;;  %v6846_v20 = vld [vmem:[#allocation11 + $0x138] sm:$0xf0]  ;;  %v10001_v21 = vld [vmem:[#allocation11 + $0x6d4] sm:$0xf0]  ;;  %v7756_v22 = vld [vmem:[#allocation11 + $0x840] sm:$0xf]  ;;  %v7065_v25 = vor.u32 %v9872_v14, %v7062_v15 }
  0x6e   :  { %2220 = vmatpush.bf16.msrb.mxu1 %v7325_v58  ;;  %v10049_v23 = vld [vmem:[#allocation11 + $0x854] sm:$0xf0]  ;;  %v6849_v26 = vor.u32 %v9818_v19, %v6846_v20  ;;  %v9866_v27 = vld [vmem:[#allocation11 + $0x2a4] sm:$0xf]  ;;  %v7038_v28 = vld [vmem:[#allocation11 + $0x2b8] sm:$0xf0]  ;;  %v7565_v29 = vor.u32 %v10001_v21, %v7564_v18 }
  0x6f   :  { %v7757_v30 = vor.u32 %v10049_v23, %v7756_v22  ;;  %v7540_v31 = vld [vmem:[#allocation11 + $0x690] sm:$0xf]  ;;  %v9995_v32 = vld [vmem:[#allocation11 + $0x6a4] sm:$0xf0]  ;;  %v7041_v35 = vor.u32 %v9866_v27, %v7038_v28  ;;  %v7516_v38 = vld [vmem:[#allocation11 + $0x660] sm:$0xf] }
  0x70   :  { %2182 = vmatpush.bf16.msra.mxu2 %v6725_v33  ;;  %2195 = vmatpush.bf16.msra.mxu3 %v6917_v34  ;;  %v7732_v33 = vld [vmem:[#allocation11 + $0x810] sm:$0xf]  ;;  %v10043_v34 = vld [vmem:[#allocation11 + $0x824] sm:$0xf0]  ;;  %v7541_v36 = vor.u32 %v9995_v32, %v7540_v31  ;;  %v9989_v39 = vld [vmem:[#allocation11 + $0x674] sm:$0xf0] }
  0x71   :  { %2208 = vmatpush.bf16.msrb.mxu0 %v7109_v59  ;;  %v7733_v37 = vor.u32 %v10043_v34, %v7732_v33  ;;  %v7708_v40 = vld [vmem:[#allocation11 + $0x7e0] sm:$0xf]  ;;  %v10037_v41 = vld [vmem:[#allocation11 + $0x7f4] sm:$0xf0]  ;;  %v7517_v42 = vor.u32 %v9989_v39, %v7516_v38  ;;  %v7492_v44 = vld [vmem:[#allocation11 + $0x630] sm:$0xf] }
  0x72   :  { %2221 = vmatpush.bf16.msrb.mxu1 %v7301_v8  ;;  %v7709_v43 = vor.u32 %v10037_v41, %v7708_v40  ;;  %v9983_v45 = vld [vmem:[#allocation11 + $0x644] sm:$0xf0]  ;;  %v7684_v47 = vld [vmem:[#allocation11 + $0x7b0] sm:$0xf]  ;;  %v6822_v51 = vld [vmem:[#allocation11 + $0x108] sm:$0xf0] }
  0x73   :  { %v7493_v46 = vor.u32 %v9983_v45, %v7492_v44  ;;  %v7468_v56 = vld [vmem:[#allocation11 + $0x600] sm:$0xf]  ;;  %v9977_v57 = vld [vmem:[#allocation11 + $0x614] sm:$0xf0]  ;;  %v9806_v61 = vld [vmem:[#allocation11 + $0xc4] sm:$0xf] }
  0x74   :  { %2183 = vmatpush.bf16.msra.mxu2 %v6701_v48  ;;  %2196 = vmatpush.bf16.msra.mxu3 %v6893_v49  ;;  %v10031_v48 = vld [vmem:[#allocation11 + $0x7c4] sm:$0xf0]  ;;  %v9812_v49 = vld [vmem:[#allocation11 + $0xf4] sm:$0xf]  ;;  %v7660_v58 = vld [vmem:[#allocation11 + $0x780] sm:$0xf]  ;;  %v7469_v59 = vor.u32 %v9977_v57, %v7468_v56 }
  0x75   :  { %2209 = vmatpush.bf16.msrb.mxu0 %v7085_v9  ;;  %v7685_v50 = vor.u32 %v10031_v48, %v7684_v47  ;;  %v6825_v54 = vor.u32 %v9812_v49, %v6822_v51  ;;  %v10025_v60 = vld [vmem:[#allocation11 + $0x794] sm:$0xf0]  ;;  %v6798_v62 = vld [vmem:[#allocation11 + $0xd8] sm:$0xf0]  ;;  %v9800_v4 = vld [vmem:[#allocation11 + $0x94] sm:$0xf] }
  0x76   :  { %2222 = vmatpush.bf16.msrb.mxu1 %v7277_v24  ;;  %v7661_v63 = vor.u32 %v10025_v60, %v7660_v58  ;;  %v6801_v0 = vor.u32 %v9806_v61, %v6798_v62  ;;  %v6774_v5 = vld [vmem:[#allocation11 + $0xa8] sm:$0xf0]  ;;  %v9848_v6 = vld [vmem:[#allocation11 + $0x214] sm:$0xf]  ;;  %v9794_v10 = vld [vmem:[#allocation11 + $0x64] sm:$0xf] }
  0x77   :  { %v6777_v7 = vor.u32 %v9800_v4, %v6774_v5  ;;  %v6966_v8 = vld [vmem:[#allocation11 + $0x228] sm:$0xf0]  ;;  %v6750_v11 = vld [vmem:[#allocation11 + $0x78] sm:$0xf0]  ;;  %v9836_v19 = vld [vmem:[#allocation11 + $0x1b4] sm:$0xf] }
  0x78   :  { %2228 = vmatpush.bf16.msrb.mxu2 %v7637_v52  ;;  %2241 = vmatpush.bf16.msrb.mxu3 %v7829_v53  ;;  %v9860_v52 = vld [vmem:[#allocation11 + $0x274] sm:$0xf]  ;;  %v7014_v53 = vld [vmem:[#allocation11 + $0x288] sm:$0xf0]  ;;  %v6969_v9 = vor.u32 %v9848_v6, %v6966_v8  ;;  %v6753_v14 = vor.u32 %v9794_v10, %v6750_v11  ;;  %v6942_v15 = vld [vmem:[#allocation11 + $0x1f8] sm:$0xf0] }
  0x79   :  { %2254 = vmatpush.bf16.msra.mxu0 %v6873_v13  ;;  %v7017_v55 = vor.u32 %v9860_v52, %v7014_v53  ;;  %v9842_v13 = vld [vmem:[#allocation11 + $0x1e4] sm:$0xf]  ;;  %v6726_v18 = vld [vmem:[#allocation11 + $0x48] sm:$0xf0]  ;;  %v6702_v24 = vld [vmem:[#allocation11 + $0x18] sm:$0xf0] }
  0x7a   :  { %2267 = vmatpush.bf16.msra.mxu1 %v7065_v25  ;;  %v6918_v20 = vld [vmem:[#allocation11 + $0x1c8] sm:$0xf0]  ;;  %v9782_v23 = vld [vmem:[#allocation11 + $0x4] sm:$0xf]  ;;  %v6894_v27 = vld [vmem:[#allocation11 + $0x198] sm:$0xf0] }
  0x7b   :  { %v6921_v22 = vor.u32 %v9836_v19, %v6918_v20  ;;  %v9830_v25 = vld [vmem:[#allocation11 + $0x184] sm:$0xf]  ;;  %v7254_v38 = vld [vmem:[#allocation11 + $0x468] sm:$0xf0]  ;;  %v9968_v40 = vld [vmem:[#allocation11 + $0x5d4] sm:$0xf] }
  0x7c   :  { %2229 = vmatpush.bf16.msrb.mxu2 %v7613_v1  ;;  %2242 = vmatpush.bf16.msrb.mxu3 %v7805_v2  ;;  %v9854_v1 = vld [vmem:[#allocation11 + $0x244] sm:$0xf]  ;;  %v6990_v2 = vld [vmem:[#allocation11 + $0x258] sm:$0xf0]  ;;  %v6897_v28 = vor.u32 %v9830_v25, %v6894_v27  ;;  %v7446_v41 = vld [vmem:[#allocation11 + $0x5e8] sm:$0xf0] }
  0x7d   :  { %2255 = vmatpush.bf16.msra.mxu0 %v6849_v26  ;;  %v6993_v3 = vor.u32 %v9854_v1, %v6990_v2  ;;  %v6705_v26 = vor.u32 %v9782_v23, %v6702_v24  ;;  %v9914_v47 = vld [vmem:[#allocation11 + $0x424] sm:$0xf]  ;;  %v7230_v48 = vld [vmem:[#allocation11 + $0x438] sm:$0xf0]  ;;  %v9908_v60 = vld [vmem:[#allocation11 + $0x3f4] sm:$0xf] }
  0x7e   :  { %2268 = vmatpush.bf16.msra.mxu1 %v7041_v35  ;;  %v9962_v51 = vld [vmem:[#allocation11 + $0x5a4] sm:$0xf]  ;;  %v7422_v52 = vld [vmem:[#allocation11 + $0x5b8] sm:$0xf0]  ;;  %v7233_v56 = vor.u32 %v9914_v47, %v7230_v48  ;;  %v7206_v61 = vld [vmem:[#allocation11 + $0x408] sm:$0xf0] }
  0x7f   :  { %v9956_v62 = vld [vmem:[#allocation11 + $0x574] sm:$0xf]  ;;  %v7209_v1 = vor.u32 %v9908_v60, %v7206_v61  ;;  %v9902_v5 = vld [vmem:[#allocation11 + $0x3c4] sm:$0xf]  ;;  %v7182_v6 = vld [vmem:[#allocation11 + $0x3d8] sm:$0xf0] }
  0x80   :  { %2230 = vmatpush.bf16.msrb.mxu2 %v7589_v16  ;;  %2243 = vmatpush.bf16.msrb.mxu3 %v7781_v17  ;;  %v6945_v16 = vor.u32 %v9842_v13, %v6942_v15  ;;  %v9788_v17 = vld [vmem:[#allocation11 + $0x34] sm:$0xf]  ;;  %v9950_v8 = vld [vmem:[#allocation11 + $0x544] sm:$0xf]  ;;  %v7158_v19 = vld [vmem:[#allocation11 + $0x3a8] sm:$0xf0] }
  0x81   :  { %2256 = vmatpush.bf16.msra.mxu0 %v6825_v54  ;;  %v6729_v21 = vor.u32 %v9788_v17, %v6726_v18  ;;  %v9896_v18 = vld [vmem:[#allocation11 + $0x394] sm:$0xf]  ;;  %v7638_v24 = vld [vmem:[#allocation11 + $0x768] sm:$0xf0]  ;;  %s11055_s4 = smov [#allocation30]   ;;  %s6642_s6 = sshll.u32 %s11531_s18, 4  ;;  %s6643_s6 = int_to_ptr.hbm [resolvable:$true] %s6642_s6 }
  0x82   :  { %2269 = vmatpush.bf16.msra.mxu1 %v7017_v55  ;;  %v9944_v20 = vld [vmem:[#allocation11 + $0x514] sm:$0xf]  ;;  %v7782_v60 = vld [vmem:[#allocation11 + $0x888] sm:$0xf0]  ;;  %s6640_s30 = sshll.u32 %s11055_s4, 4  ;;  %s11537_s21 = sld [smem:[#allocation41_spill]]  ;;  %s6641_s30 = int_to_ptr.vmem [resolvable:$true] %s6640_s30 }
  0x83   :  { %v10016_v23 = vld [vmem:[#allocation11 + $0x754] sm:$0xf]  ;;  %s11056_s18 = smov [#allocation27]   ;;  %s6620_s2 = sshll.u32 %s11529_s16, 4  ;;  %s6621_s2 = int_to_ptr.hbm [resolvable:$true] %s6620_s2 }
  0x84   :  { %2231 = vmatpush.bf16.msrb.mxu2 %v7565_v29  ;;  %2244 = vmatpush.bf16.msrb.mxu3 %v7757_v30  ;;  %v11229_v29 = vld [vmem:[#allocation9] sm:$0x3f]  ;;  %v10064_v27 = vld [vmem:[#allocation11 + $0x8d4] sm:$0xf]  ;;  %s6618_s14 = sshll.u32 %s11056_s18, 4  ;;  %s6619_s14 = int_to_ptr.vmem [resolvable:$true] %s6618_s14 }
  0x85   :  { %2257 = vmatpush.bf16.msra.mxu0 %v6801_v0  ;;  %v285_v30 = vperm.slane %v11229_v29, 0  ;;  %v286_v32 = vperm.slane %v11229_v29, 1  ;;  %v289_v54 = vperm.slane %v11229_v29, 4  ;;  %v290_v57 = vperm.slane %v11229_v29, 5 }
  0x86   :  { %2270 = vmatpush.bf16.msra.mxu1 %v6993_v3  ;;  %v287_v4 = vperm.slane %v11229_v29, 2 }
  0x88   :  { %2232 = vmatpush.bf16.msrb.mxu2 %v7541_v36  ;;  %2245 = vmatpush.bf16.msrb.mxu3 %v7733_v37  ;;  %v9920_v37 = vld [vmem:[#allocation11 + $0x454] sm:$0xf] }
  0x89   :  { %2258 = vmatpush.bf16.msra.mxu0 %v6777_v7  ;;  %v7257_v44 = vor.u32 %v9920_v37, %v7254_v38  ;;  %v288_v7 = vperm.slane %v11229_v29, 3  ;;  %v7641_v37 = vor.u32 %v10016_v23, %v7638_v24  ;;  %v7734_v23 = vld [vmem:[#allocation11 + $0x828] sm:$0xf0]  ;;  %v6852_v24 = vld [vmem:[#allocation11 + $0x128] sm:$0xf] }
  0x8a   :  { %2271 = vmatpush.bf16.msra.mxu1 %v6969_v9  ;;  %v7374_v9 = vld [vmem:[#allocation11 + $0x558] sm:$0xf0] }
  0x8b   :  { %v7377_v17 = vor.u32 %v9950_v8, %v7374_v9  ;;  %v7758_v8 = vld [vmem:[#allocation11 + $0x858] sm:$0xf0]  ;;  %v6876_v9 = vld [vmem:[#allocation11 + $0x158] sm:$0xf] }
  0x8c   :  { %2233 = vmatpush.bf16.msrb.mxu2 %v7517_v42  ;;  %2246 = vmatpush.bf16.msrb.mxu3 %v7709_v43 }
  0x8d   :  { %2259 = vmatpush.bf16.msra.mxu0 %v6753_v14  ;;  %v7185_v14 = vor.u32 %v9902_v5, %v7182_v6  ;;  %v9998_v5 = vld [vmem:[#allocation11 + $0x6c4] sm:$0xf]  ;;  %v7566_v6 = vld [vmem:[#allocation11 + $0x6d8] sm:$0xf0] }
  0x8e   :  { %2272 = vmatpush.bf16.msra.mxu1 %v6945_v16 }
  0x90   :  { %2234 = vmatpush.bf16.msrb.mxu2 %v7493_v46  ;;  %2247 = vmatpush.bf16.msrb.mxu3 %v7685_v50  ;;  %v7449_v46 = vor.u32 %v9968_v40, %v7446_v41  ;;  %v7326_v40 = vld [vmem:[#allocation11 + $0x4f8] sm:$0xf0]  ;;  %v10010_v41 = vld [vmem:[#allocation11 + $0x724] sm:$0xf] }
  0x91   :  { %2260 = vmatpush.bf16.msra.mxu0 %v6729_v21 }
  0x92   :  { %2273 = vmatpush.bf16.msra.mxu1 %v6921_v22  ;;  %v7350_v22 = vld [vmem:[#allocation11 + $0x528] sm:$0xf0] }
  0x94   :  { %2235 = vmatpush.bf16.msrb.mxu2 %v7469_v59  ;;  %2248 = vmatpush.bf16.msrb.mxu3 %v7661_v63  ;;  %v7425_v59 = vor.u32 %v9962_v51, %v7422_v52  ;;  %v7398_v63 = vld [vmem:[#allocation11 + $0x588] sm:$0xf0]  ;;  %v9884_v51 = vld [vmem:[#allocation11 + $0x334] sm:$0xf] }
  0x95   :  { %2261 = vmatpush.bf16.msra.mxu0 %v6705_v26  ;;  %v7401_v3 = vor.u32 %v9956_v62, %v7398_v63  ;;  %v7110_v52 = vld [vmem:[#allocation11 + $0x348] sm:$0xf0]  ;;  %v9878_v63 = vld [vmem:[#allocation11 + $0x304] sm:$0xf] }
  0x96   :  { %2274 = vmatpush.bf16.msra.mxu1 %v6897_v28  ;;  %v7830_v28 = vld [vmem:[#allocation11 + $0x8e8] sm:$0xf0]  ;;  %v7113_v61 = vor.u32 %v9884_v51, %v7110_v52  ;;  %v10028_v52 = vld [vmem:[#allocation11 + $0x7b4] sm:$0xf] }
  0x97   :  { %v7833_v38 = vor.u32 %v10064_v27, %v7830_v28  ;;  %v7044_v27 = vld [vmem:[#allocation11 + $0x2a8] sm:$0xf]  ;;  %v9870_v28 = vld [vmem:[#allocation11 + $0x2bc] sm:$0xf0] }
  0xd3   :  { %v405_v31 = vpop.f32.mrf.mxu0 }
  0xd4   :  { %v406_v0 = vadd.f32 %v405_v31, %v289_v54 }
  0xd6   :  { %v418_v33 = vpop.f32.mrf.mxu1  ;;  %v353_v34 = vpop.f32.mrf.mxu2  ;;  %v426_v10 = vmax.f32 %v406_v0, 0.0  ;;  %v7086_v0 = vld [vmem:[#allocation11 + $0x318] sm:$0xf0] }
  0xd7   :  { %v354_v35 = vadd.f32 %v353_v34, %v285_v30  ;;  %v419_v2 = vadd.f32 %v418_v33, %v290_v57  ;;  %v7353_v33 = vor.u32 %v9944_v20, %v7350_v22  ;;  %v9890_v34 = vld [vmem:[#allocation11 + $0x364] sm:$0xf]  ;;  %v10004_v57 = vld [vmem:[#allocation11 + $0x6f4] sm:$0xf] }
  0xd8   :  { %v366_v36 = vpop.f32.mrf.mxu3  ;;  %v11243_v26 = vpack.c.bf16 %v426_v10, %v426_v10  ;;  %v9828_v10 = vld [vmem:[#allocation11 + $0x16c] sm:$0xf0]  ;;  %v10040_v22 = vld [vmem:[#allocation11 + $0x814] sm:$0xf] }
  0xd9   :  { %v367_v39 = vadd.f32 %v366_v36, %v286_v32  ;;  %v422_v42 = vmax.f32 %v354_v35, 0.0  ;;  %v427_v13 = vmax.f32 %v419_v2, 0.0  ;;  %v7161_v32 = vor.u32 %v9896_v18, %v7158_v19  ;;  %v7134_v35 = vld [vmem:[#allocation11 + $0x378] sm:$0xf0]  ;;  %v9992_v18 = vld [vmem:[#allocation11 + $0x694] sm:$0xf] }
  0xda   :  { %v7137_v48 = vor.u32 %v9890_v34, %v7134_v35  ;;  %v7542_v19 = vld [vmem:[#allocation11 + $0x6a8] sm:$0xf0]  ;;  %v6877_v20 = vor.u32 %v9828_v10, %v6876_v9  ;;  %v7518_v34 = vld [vmem:[#allocation11 + $0x678] sm:$0xf0]  ;;  %v9972_v9 = vld [vmem:[#allocation11 + $0x5ec] sm:$0xf0] }
  0xdb   :  { %v423_v43 = vmax.f32 %v367_v39, 0.0  ;;  %v11233_v45 = vpack.c.bf16 %v422_v42, %v422_v42  ;;  %v407_v49 = vpop.f32.mrf.mxu0  ;;  %v11245_v30 = vpack.c.bf16 %v427_v13, %v427_v13  ;;  %v9938_v39 = vld [vmem:[#allocation11 + $0x4e4] sm:$0xf]  ;;  %v7614_v42 = vld [vmem:[#allocation11 + $0x738] sm:$0xf0] }
  0xdc   :  { %v7329_v49 = vor.u32 %v9938_v39, %v7326_v40  ;;  %v9876_v13 = vld [vmem:[#allocation11 + $0x2ec] sm:$0xf0]  ;;  %v7710_v39 = vld [vmem:[#allocation11 + $0x7f8] sm:$0xf0]  ;;  %v6828_v40 = vld [vmem:[#allocation11 + $0xf8] sm:$0xf] }
  0xdd   :  { %v11235_v50 = vpack.c.bf16 %v423_v43, %v423_v43  ;;  %2184 = vmatmul.bf16.vlgmr.msra.gmra.mxu2 %v11233_v45  ;;  %v10058_v43 = vld [vmem:[#allocation11 + $0x8a4] sm:$0xf] }
  0xde   :  { %v420_v53 = vpop.f32.mrf.mxu1  ;;  %2280 = vmatpush.bf16.msra.mxu2 %v7257_v44  ;;  %v355_v55 = vpop.f32.mrf.mxu2  ;;  %v7806_v44 = vld [vmem:[#allocation11 + $0x8b8] sm:$0xf0] }
  0xdf   :  { %2197 = vmatmul.bf16.vlgmr.msra.gmra.mxu3 %v11235_v50  ;;  %v7617_v53 = vor.u32 %v10010_v41, %v7614_v42  ;;  %v7809_v54 = vor.u32 %v10058_v43, %v7806_v44  ;;  %v9932_v55 = vld [vmem:[#allocation11 + $0x4b4] sm:$0xf]  ;;  %v9816_v41 = vld [vmem:[#allocation11 + $0x10c] sm:$0xf0]  ;;  %v7020_v42 = vld [vmem:[#allocation11 + $0x278] sm:$0xf] }
  0xe0   :  { %2293 = vmatpush.bf16.msra.mxu3 %v7449_v46  ;;  %v368_v58 = vpop.f32.mrf.mxu3  ;;  %v9864_v43 = vld [vmem:[#allocation11 + $0x28c] sm:$0xf0] }
  0xe1   :  { %v7590_v58 = vld [vmem:[#allocation11 + $0x708] sm:$0xf0]  ;;  %v7021_v51 = vor.u32 %v9864_v43, %v7020_v42  ;;  %v6708_v43 = vld [vmem:[#allocation11 + $0x8] sm:$0xf] }
  0xe2   :  { %2281 = vmatpush.bf16.msra.mxu2 %v7233_v56  ;;  %v7302_v56 = vld [vmem:[#allocation11 + $0x4c8] sm:$0xf0]  ;;  %v7593_v2 = vor.u32 %v10004_v57, %v7590_v58  ;;  %v9858_v57 = vld [vmem:[#allocation11 + $0x25c] sm:$0xf0] }
  0xe3   :  { %v7305_v62 = vor.u32 %v9932_v55, %v7302_v56  ;;  %v9810_v55 = vld [vmem:[#allocation11 + $0xdc] sm:$0xf0]  ;;  %v6996_v56 = vld [vmem:[#allocation11 + $0x248] sm:$0xf] }
  0xe4   :  { %2294 = vmatpush.bf16.msra.mxu3 %v7425_v59  ;;  %v10052_v59 = vld [vmem:[#allocation11 + $0x874] sm:$0xf] }
  0xe6   :  { %2282 = vmatpush.bf16.msra.mxu2 %v7209_v1  ;;  %v379_v11 = vpop.f32.mrf.mxu2  ;;  %v9926_v1 = vld [vmem:[#allocation11 + $0x484] sm:$0xf] }
  0xe7   :  { %v380_v15 = vadd.f32 %v379_v11, %v287_v4  ;;  %v7278_v4 = vld [vmem:[#allocation11 + $0x498] sm:$0xf0]  ;;  %v7068_v11 = vld [vmem:[#allocation11 + $0x2d8] sm:$0xf] }
  0xe8   :  { %2295 = vmatpush.bf16.msra.mxu3 %v7401_v3  ;;  %v392_v16 = vpop.f32.mrf.mxu3  ;;  %v7785_v3 = vor.u32 %v10052_v59, %v7782_v60  ;;  %v9974_v60 = vld [vmem:[#allocation11 + $0x604] sm:$0xf] }
  0xe9   :  { %v393_v21 = vadd.f32 %v392_v16, %v288_v7  ;;  %v424_v25 = vmax.f32 %v380_v15, 0.0  ;;  %v10046_v7 = vld [vmem:[#allocation11 + $0x844] sm:$0xf]  ;;  %v7281_v15 = vor.u32 %v9926_v1, %v7278_v4  ;;  %v7569_v16 = vor.u32 %v9998_v5, %v7566_v6  ;;  %v7662_v1 = vld [vmem:[#allocation11 + $0x798] sm:$0xf0] }
  0xea   :  { %2283 = vmatpush.bf16.msra.mxu2 %v7185_v14  ;;  %v7089_v14 = vor.u32 %v9878_v63, %v7086_v0  ;;  %v6997_v0 = vor.u32 %v9858_v57, %v6996_v56  ;;  %v6972_v4 = vld [vmem:[#allocation11 + $0x218] sm:$0xf]  ;;  %v9852_v5 = vld [vmem:[#allocation11 + $0x22c] sm:$0xf0] }
  0xeb   :  { %v425_v29 = vmax.f32 %v393_v21, 0.0  ;;  %v11247_v31 = vpack.c.bf16 %v424_v25, %v424_v25  ;;  %v7069_v21 = vor.u32 %v9876_v13, %v7068_v11  ;;  %v9822_v25 = vld [vmem:[#allocation11 + $0x13c] sm:$0xf0]  ;;  %v7260_v6 = vld [vmem:[#allocation11 + $0x458] sm:$0xf] }
  0xec   :  { %2296 = vmatpush.bf16.msra.mxu3 %v7377_v17  ;;  %v7761_v17 = vor.u32 %v10046_v7, %v7758_v8  ;;  %v6853_v35 = vor.u32 %v9822_v25, %v6852_v24  ;;  %v9924_v7 = vld [vmem:[#allocation11 + $0x46c] sm:$0xf0]  ;;  %v7452_v8 = vld [vmem:[#allocation11 + $0x5d8] sm:$0xf]  ;;  %v9966_v24 = vld [vmem:[#allocation11 + $0x5bc] sm:$0xf0] }
  0xed   :  { %v11249_v36 = vpack.c.bf16 %v425_v29, %v425_v29  ;;  %2210 = vmatmul.bf16.vlgmr.msrb.gmra.mxu0 %v11247_v31  ;;  %2236 = vmatmul.bf16.vlgmr.msrb.gmra.mxu2 %v11243_v26  ;;  %v7545_v29 = vor.u32 %v9992_v18, %v7542_v19  ;;  %v7453_v18 = vor.u32 %v9972_v9, %v7452_v8  ;;  %v6948_v19 = vld [vmem:[#allocation11 + $0x1e8] sm:$0xf]  ;;  %v10020_v56 = vld [vmem:[#allocation11 + $0x76c] sm:$0xf0]  ;;  %v7836_v57 = vld [vmem:[#allocation11 + $0x8d8] sm:$0xf] }
  0xee   :  { %v381_v46 = vpop.f32.mrf.mxu2  ;;  %2284 = vmatpush.bf16.msra.mxu2 %v7161_v32  ;;  %2306 = vmatpush.bf16.msrb.mxu0 %v7641_v37  ;;  %v7737_v32 = vor.u32 %v10040_v22, %v7734_v23  ;;  %v7045_v37 = vor.u32 %v9870_v28, %v7044_v27  ;;  %v9918_v22 = vld [vmem:[#allocation11 + $0x43c] sm:$0xf0]  ;;  %v7428_v23 = vld [vmem:[#allocation11 + $0x5a8] sm:$0xf]  ;;  %v6732_v28 = vld [vmem:[#allocation11 + $0x38] sm:$0xf] }
  0xef   :  { %2223 = vmatmul.bf16.vlgmr.msrb.gmra.mxu1 %v11249_v36  ;;  %2249 = vmatmul.bf16.vlgmr.msrb.gmra.mxu3 %v11245_v30  ;;  %v10062_v8 = vld [vmem:[#allocation11 + $0x8bc] sm:$0xf0] }
  0xf0   :  { %2297 = vmatpush.bf16.msra.mxu3 %v7353_v33  ;;  %v394_v47 = vpop.f32.mrf.mxu3  ;;  %2319 = vmatpush.bf16.msrb.mxu1 %v7833_v38  ;;  %v9986_v33 = vld [vmem:[#allocation11 + $0x664] sm:$0xf] }
  0xf1   :  { %v10034_v38 = vld [vmem:[#allocation11 + $0x7e4] sm:$0xf]  ;;  %v7521_v44 = vor.u32 %v9986_v33, %v7518_v34  ;;  %v9980_v47 = vld [vmem:[#allocation11 + $0x634] sm:$0xf]  ;;  %v7429_v33 = vor.u32 %v9966_v24, %v7428_v23  ;;  %v6924_v34 = vld [vmem:[#allocation11 + $0x1b8] sm:$0xf] }
  0xf2   :  { %2285 = vmatpush.bf16.msra.mxu2 %v7137_v48  ;;  %2307 = vmatpush.bf16.msrb.mxu0 %v7617_v53  ;;  %v7713_v46 = vor.u32 %v10034_v38, %v7710_v39  ;;  %v7494_v48 = vld [vmem:[#allocation11 + $0x648] sm:$0xf0]  ;;  %v9912_v38 = vld [vmem:[#allocation11 + $0x40c] sm:$0xf0]  ;;  %v7404_v39 = vld [vmem:[#allocation11 + $0x578] sm:$0xf] }
  0xf3   :  { %v7686_v53 = vld [vmem:[#allocation11 + $0x7c8] sm:$0xf0]  ;;  %v7497_v58 = vor.u32 %v9980_v47, %v7494_v48  ;;  %v7116_v24 = vld [vmem:[#allocation11 + $0x338] sm:$0xf] }
  0xf4   :  { %2298 = vmatpush.bf16.msra.mxu3 %v7329_v49  ;;  %2320 = vmatpush.bf16.msrb.mxu1 %v7809_v54  ;;  %v6829_v49 = vor.u32 %v9816_v41, %v6828_v40  ;;  %v6804_v54 = vld [vmem:[#allocation11 + $0xc8] sm:$0xf]  ;;  %v7689_v59 = vor.u32 %v10028_v52, %v7686_v53  ;;  %v9960_v40 = vld [vmem:[#allocation11 + $0x58c] sm:$0xf0]  ;;  %v9906_v52 = vld [vmem:[#allocation11 + $0x3dc] sm:$0xf0] }
  0xf5   :  { %v6805_v63 = vor.u32 %v9810_v55, %v6804_v54  ;;  %v7405_v48 = vor.u32 %v9960_v40, %v7404_v39  ;;  %v7380_v53 = vld [vmem:[#allocation11 + $0x548] sm:$0xf]  ;;  %v9954_v54 = vld [vmem:[#allocation11 + $0x55c] sm:$0xf0]  ;;  %v7644_v55 = vld [vmem:[#allocation11 + $0x758] sm:$0xf] }
  0xf6   :  { %2286 = vmatpush.bf16.msra.mxu2 %v7113_v61  ;;  %2308 = vmatpush.bf16.msrb.mxu0 %v7593_v2  ;;  %v7470_v61 = vld [vmem:[#allocation11 + $0x618] sm:$0xf0]  ;;  %v6780_v2 = vld [vmem:[#allocation11 + $0x98] sm:$0xf]  ;;  %v7092_v40 = vld [vmem:[#allocation11 + $0x308] sm:$0xf] }
  0xf7   :  { %v7473_v10 = vor.u32 %v9974_v60, %v7470_v61 }
  0xf8   :  { %2299 = vmatpush.bf16.msra.mxu3 %v7305_v62  ;;  %2321 = vmatpush.bf16.msrb.mxu1 %v7785_v3  ;;  %v10022_v62 = vld [vmem:[#allocation11 + $0x784] sm:$0xf]  ;;  %v9804_v3 = vld [vmem:[#allocation11 + $0xac] sm:$0xf0] }
  0xf9   :  { %v7665_v11 = vor.u32 %v10022_v62, %v7662_v1  ;;  %v6781_v13 = vor.u32 %v9804_v3, %v6780_v2  ;;  %v7381_v62 = vor.u32 %v9954_v54, %v7380_v53  ;;  %v7645_v1 = vor.u32 %v10020_v56, %v7644_v55  ;;  %v7356_v3 = vld [vmem:[#allocation11 + $0x518] sm:$0xf]  ;;  %v6878_v53 = vld [vmem:[#allocation11 + $0x170] sm:$0xf0]  ;;  %v9873_v54 = vld [vmem:[#allocation11 + $0x2dc] sm:$0xf] }
  0xfa   :  { %2287 = vmatpush.bf16.msra.mxu2 %v7089_v14  ;;  %2309 = vmatpush.bf16.msrb.mxu0 %v7569_v16  ;;  %v6973_v14 = vor.u32 %v9852_v5, %v6972_v4  ;;  %v9798_v16 = vld [vmem:[#allocation11 + $0x7c] sm:$0xf0]  ;;  %v9948_v4 = vld [vmem:[#allocation11 + $0x52c] sm:$0xf0]  ;;  %v7620_v5 = vld [vmem:[#allocation11 + $0x728] sm:$0xf] }
  0xfb   :  { %v7070_v55 = vld [vmem:[#allocation11 + $0x2f0] sm:$0xf0] }
  0xfc   :  { %2300 = vmatpush.bf16.msra.mxu3 %v7281_v15  ;;  %2322 = vmatpush.bf16.msrb.mxu1 %v7761_v17  ;;  %v6756_v15 = vld [vmem:[#allocation11 + $0x68] sm:$0xf]  ;;  %v7261_v17 = vor.u32 %v9924_v7, %v7260_v6  ;;  %v10014_v6 = vld [vmem:[#allocation11 + $0x73c] sm:$0xf0] }
  0xfd   :  { %2262 = vmatmul.bf16.vlgmr.msra.gmra.mxu0 %v11233_v45  ;;  %2288 = vmatmul.bf16.vlgmr.msra.gmra.mxu2 %v11247_v31  ;;  %v6757_v25 = vor.u32 %v9798_v16, %v6756_v15  ;;  %v7812_v7 = vld [vmem:[#allocation11 + $0x8a8] sm:$0xf] }
  0xfe   :  { %2332 = vmatpush.bf16.msrb.mxu2 %v6877_v20  ;;  %2310 = vmatpush.bf16.msrb.mxu0 %v7545_v29  ;;  %v9846_v20 = vld [vmem:[#allocation11 + $0x1fc] sm:$0xf0]  ;;  %v9792_v29 = vld [vmem:[#allocation11 + $0x4c] sm:$0xf0]  ;;  %v7813_v15 = vor.u32 %v10062_v8, %v7812_v7  ;;  %v7332_v16 = vld [vmem:[#allocation11 + $0x4e8] sm:$0xf] }
  0xff   :  { %2275 = vmatmul.bf16.vlgmr.msra.gmra.mxu1 %v11235_v50  ;;  %2301 = vmatmul.bf16.vlgmr.msra.gmra.mxu3 %v11249_v36  ;;  %v6949_v27 = vor.u32 %v9846_v20, %v6948_v19  ;;  %v6733_v41 = vor.u32 %v9792_v29, %v6732_v28  ;;  %v10008_v19 = vld [vmem:[#allocation11 + $0x70c] sm:$0xf0]  ;;  %v7788_v20 = vld [vmem:[#allocation11 + $0x878] sm:$0xf] }
 0x100   :  { %2345 = vmatpush.bf16.msrb.mxu3 %v7069_v21  ;;  %2323 = vmatpush.bf16.msrb.mxu1 %v7737_v32  ;;  %v7236_v21 = vld [vmem:[#allocation11 + $0x428] sm:$0xf]  ;;  %v7308_v29 = vld [vmem:[#allocation11 + $0x4b8] sm:$0xf] }
 0x101   :  { %v7237_v32 = vor.u32 %v9918_v22, %v7236_v21  ;;  %v10056_v21 = vld [vmem:[#allocation11 + $0x88c] sm:$0xf0]  ;;  %v7500_v8 = vld [vmem:[#allocation11 + $0x638] sm:$0xf] }
 0x102   :  { %2333 = vmatpush.bf16.msrb.mxu2 %v6853_v35  ;;  %2311 = vmatpush.bf16.msrb.mxu0 %v7521_v44  ;;  %v9840_v35 = vld [vmem:[#allocation11 + $0x1cc] sm:$0xf0]  ;;  %v9786_v44 = vld [vmem:[#allocation11 + $0x1c] sm:$0xf0]  ;;  %v7789_v28 = vor.u32 %v10056_v21, %v7788_v20  ;;  %v7476_v21 = vld [vmem:[#allocation11 + $0x608] sm:$0xf] }
 0x103   :  { %v6925_v42 = vor.u32 %v9840_v35, %v6924_v34  ;;  %v10002_v34 = vld [vmem:[#allocation11 + $0x6dc] sm:$0xf0]  ;;  %v7764_v35 = vld [vmem:[#allocation11 + $0x848] sm:$0xf] }
 0x104   :  { %2346 = vmatpush.bf16.msrb.mxu3 %v7045_v37  ;;  %2324 = vmatpush.bf16.msrb.mxu1 %v7713_v46  ;;  %v7212_v37 = vld [vmem:[#allocation11 + $0x3f8] sm:$0xf]  ;;  %v6900_v46 = vld [vmem:[#allocation11 + $0x188] sm:$0xf] }
 0x105   :  { %v7213_v47 = vor.u32 %v9912_v38, %v7212_v37  ;;  %v10050_v37 = vld [vmem:[#allocation11 + $0x85c] sm:$0xf0] }
 0x106   :  { %2334 = vmatpush.bf16.msrb.mxu2 %v6829_v49  ;;  %2312 = vmatpush.bf16.msrb.mxu0 %v7497_v58  ;;  %v9834_v49 = vld [vmem:[#allocation11 + $0x19c] sm:$0xf0]  ;;  %v10068_v58 = vld [vmem:[#allocation11 + $0x8ec] sm:$0xf0] }
 0x107   :  { %v6901_v60 = vor.u32 %v9834_v49, %v6900_v46  ;;  %v7837_v2 = vor.u32 %v10068_v58, %v7836_v57  ;;  %v9930_v46 = vld [vmem:[#allocation11 + $0x49c] sm:$0xf0]  ;;  %v7740_v49 = vld [vmem:[#allocation11 + $0x818] sm:$0xf] }
 0x108   :  { %2347 = vmatpush.bf16.msrb.mxu3 %v7021_v51  ;;  %2325 = vmatpush.bf16.msrb.mxu1 %v7689_v59  ;;  %v7188_v51 = vld [vmem:[#allocation11 + $0x3c8] sm:$0xf]  ;;  %v6709_v59 = vor.u32 %v9786_v44, %v6708_v43  ;;  %v7765_v44 = vor.u32 %v10050_v37, %v7764_v35  ;;  %v7262_v35 = vld [vmem:[#allocation11 + $0x470] sm:$0xf0]  ;;  %v9969_v37 = vld [vmem:[#allocation11 + $0x5dc] sm:$0xf] }
 0x109   :  { %v7189_v61 = vor.u32 %v9906_v52, %v7188_v51  ;;  %v10044_v51 = vld [vmem:[#allocation11 + $0x82c] sm:$0xf0]  ;;  %v9825_v52 = vld [vmem:[#allocation11 + $0x15c] sm:$0xf] }
 0x10a   :  { %2335 = vmatpush.bf16.msrb.mxu2 %v6805_v63  ;;  %2313 = vmatpush.bf16.msrb.mxu0 %v7473_v10  ;;  %v7164_v63 = vld [vmem:[#allocation11 + $0x398] sm:$0xf]  ;;  %v7357_v10 = vor.u32 %v9948_v4, %v7356_v3  ;;  %v6854_v3 = vld [vmem:[#allocation11 + $0x140] sm:$0xf0]  ;;  %v9867_v4 = vld [vmem:[#allocation11 + $0x2ac] sm:$0xf] }
 0x10c   :  { %2348 = vmatpush.bf16.msrb.mxu3 %v6997_v0  ;;  %2326 = vmatpush.bf16.msrb.mxu1 %v7665_v11  ;;  %v9900_v0 = vld [vmem:[#allocation11 + $0x3ac] sm:$0xf0]  ;;  %v7140_v11 = vld [vmem:[#allocation11 + $0x368] sm:$0xf] }
 0x10d   :  { %2314 = vmatmul.bf16.vlgmr.msrb.gmra.mxu0 %v11243_v26  ;;  %v7165_v9 = vor.u32 %v9900_v0, %v7164_v63  ;;  %v7073_v63 = vor.u32 %v9873_v54, %v7070_v55  ;;  %v7716_v0 = vld [vmem:[#allocation11 + $0x7e8] sm:$0xf]  ;;  %v7430_v54 = vld [vmem:[#allocation11 + $0x5c0] sm:$0xf0] }
 0x10e   :  { %2336 = vmatpush.bf16.msrb.mxu2 %v6781_v13  ;;  %2358 = vmatpush.bf16.msra.mxu0 %v7261_v17  ;;  %v9894_v13 = vld [vmem:[#allocation11 + $0x37c] sm:$0xf0] }
 0x10f   :  { %2327 = vmatmul.bf16.vlgmr.msrb.gmra.mxu1 %v11245_v30  ;;  %v9942_v17 = vld [vmem:[#allocation11 + $0x4fc] sm:$0xf0]  ;;  %v7141_v22 = vor.u32 %v9894_v13, %v7140_v11  ;;  %v7692_v13 = vld [vmem:[#allocation11 + $0x7b8] sm:$0xf] }
 0x110   :  { %2349 = vmatpush.bf16.msrb.mxu3 %v6973_v14  ;;  %2371 = vmatpush.bf16.msra.mxu1 %v7453_v18  ;;  %v7621_v14 = vor.u32 %v10014_v6, %v7620_v5  ;;  %v7596_v18 = vld [vmem:[#allocation11 + $0x6f8] sm:$0xf]  ;;  %v7333_v23 = vor.u32 %v9942_v17, %v7332_v16  ;;  %v7046_v5 = vld [vmem:[#allocation11 + $0x2c0] sm:$0xf0]  ;;  %v6830_v16 = vld [vmem:[#allocation11 + $0x110] sm:$0xf0] }
 0x111   :  { %v7049_v11 = vor.u32 %v9867_v4, %v7046_v5  ;;  %v9861_v17 = vld [vmem:[#allocation11 + $0x27c] sm:$0xf] }
 0x112   :  { %2337 = vmatpush.bf16.msrb.mxu2 %v6757_v25  ;;  %2359 = vmatpush.bf16.msra.mxu0 %v7237_v32  ;;  %v9888_v25 = vld [vmem:[#allocation11 + $0x34c] sm:$0xf0]  ;;  %v9789_v5 = vld [vmem:[#allocation11 + $0x3c] sm:$0xf] }
 0x113   :  { %v9936_v32 = vld [vmem:[#allocation11 + $0x4cc] sm:$0xf0]  ;;  %v7117_v38 = vor.u32 %v9888_v25, %v7116_v24 }
 0x114   :  { %2350 = vmatpush.bf16.msrb.mxu3 %v6949_v27  ;;  %2372 = vmatpush.bf16.msra.mxu1 %v7429_v33  ;;  %v7597_v27 = vor.u32 %v10008_v19, %v7596_v18  ;;  %v7572_v33 = vld [vmem:[#allocation11 + $0x6c8] sm:$0xf]  ;;  %v7309_v39 = vor.u32 %v9936_v32, %v7308_v29  ;;  %v7022_v18 = vld [vmem:[#allocation11 + $0x290] sm:$0xf0]  ;;  %v6806_v29 = vld [vmem:[#allocation11 + $0xe0] sm:$0xf0] }
 0x115   :  { %v7573_v43 = vor.u32 %v10002_v34, %v7572_v33  ;;  %v7025_v25 = vor.u32 %v9861_v17, %v7022_v18  ;;  %v9855_v32 = vld [vmem:[#allocation11 + $0x24c] sm:$0xf]  ;;  %v6998_v33 = vld [vmem:[#allocation11 + $0x260] sm:$0xf0]  ;;  %v9921_v34 = vld [vmem:[#allocation11 + $0x45c] sm:$0xf] }
 0x116   :  { %2338 = vmatpush.bf16.msrb.mxu2 %v6733_v41  ;;  %2360 = vmatpush.bf16.msra.mxu0 %v7213_v47  ;;  %v9882_v41 = vld [vmem:[#allocation11 + $0x31c] sm:$0xf0]  ;;  %v7548_v47 = vld [vmem:[#allocation11 + $0x698] sm:$0xf]  ;;  %v9783_v18 = vld [vmem:[#allocation11 + $0xc] sm:$0xf] }
 0x117   :  { %v7093_v56 = vor.u32 %v9882_v41, %v7092_v40 }
 0x118   :  { %2351 = vmatpush.bf16.msrb.mxu3 %v6925_v42  ;;  %2373 = vmatpush.bf16.msra.mxu1 %v7405_v48  ;;  %v7284_v42 = vld [vmem:[#allocation11 + $0x488] sm:$0xf]  ;;  %v9996_v48 = vld [vmem:[#allocation11 + $0x6ac] sm:$0xf0] }
 0x119   :  { %v7285_v57 = vor.u32 %v9930_v46, %v7284_v42  ;;  %v7549_v58 = vor.u32 %v9996_v48, %v7548_v47  ;;  %v7001_v42 = vor.u32 %v9855_v32, %v6998_v33  ;;  %v7265_v46 = vor.u32 %v9921_v34, %v7262_v35  ;;  %v9849_v48 = vld [vmem:[#allocation11 + $0x21c] sm:$0xf]  ;;  %v7646_v32 = vld [vmem:[#allocation11 + $0x770] sm:$0xf0] }
 0x11a   :  { %2339 = vmatpush.bf16.msrb.mxu2 %v6709_v59  ;;  %2361 = vmatpush.bf16.msra.mxu0 %v7189_v61  ;;  %v7741_v59 = vor.u32 %v10044_v51, %v7740_v49  ;;  %v9990_v61 = vld [vmem:[#allocation11 + $0x67c] sm:$0xf0]  ;;  %v6974_v49 = vld [vmem:[#allocation11 + $0x230] sm:$0xf0]  ;;  %v9915_v51 = vld [vmem:[#allocation11 + $0x42c] sm:$0xf] }
 0x11b   :  { %v10065_v33 = vld [vmem:[#allocation11 + $0x8dc] sm:$0xf]  ;;  %v7838_v34 = vld [vmem:[#allocation11 + $0x8f0] sm:$0xf0] }
 0x11c   :  { %2352 = vmatpush.bf16.msrb.mxu3 %v6901_v60  ;;  %2374 = vmatpush.bf16.msra.mxu1 %v7381_v62  ;;  %v7524_v60 = vld [vmem:[#allocation11 + $0x668] sm:$0xf]  ;;  %v6881_v62 = vor.u32 %v9825_v52, %v6878_v53  ;;  %v7238_v52 = vld [vmem:[#allocation11 + $0x440] sm:$0xf0]  ;;  %v9963_v53 = vld [vmem:[#allocation11 + $0x5ac] sm:$0xf] }
 0x11d   :  { %2340 = vmatmul.bf16.vlgmr.msrb.gmra.mxu2 %v11233_v45  ;;  %v7525_v6 = vor.u32 %v9990_v61, %v7524_v60  ;;  %v7433_v60 = vor.u32 %v9963_v53, %v7430_v54  ;;  %v9843_v61 = vld [vmem:[#allocation11 + $0x1ec] sm:$0xf]  ;;  %v9885_v54 = vld [vmem:[#allocation11 + $0x33c] sm:$0xf] }
 0x11e   :  { %2384 = vmatpush.bf16.msra.mxu2 %v7645_v1  ;;  %2362 = vmatpush.bf16.msra.mxu0 %v7165_v9  ;;  %v10038_v1 = vld [vmem:[#allocation11 + $0x7fc] sm:$0xf0]  ;;  %v9984_v9 = vld [vmem:[#allocation11 + $0x64c] sm:$0xf0] }
 0x11f   :  { %2353 = vmatmul.bf16.vlgmr.msrb.gmra.mxu3 %v11235_v50  ;;  %v7717_v7 = vor.u32 %v10038_v1, %v7716_v0  ;;  %v7501_v19 = vor.u32 %v9984_v9, %v7500_v8  ;;  %v7214_v0 = vld [vmem:[#allocation11 + $0x410] sm:$0xf0]  ;;  %v9957_v1 = vld [vmem:[#allocation11 + $0x57c] sm:$0xf] }
 0x120   :  { %2397 = vmatpush.bf16.msra.mxu3 %v7837_v2  ;;  %2375 = vmatpush.bf16.msra.mxu1 %v7357_v10  ;;  %v9819_v2 = vld [vmem:[#allocation11 + $0x12c] sm:$0xf]  ;;  %v9837_v9 = vld [vmem:[#allocation11 + $0x1bc] sm:$0xf] }
 0x121   :  { %v6857_v10 = vor.u32 %v9819_v2, %v6854_v3  ;;  %v7406_v2 = vld [vmem:[#allocation11 + $0x590] sm:$0xf0] }
 0x122   :  { %2385 = vmatpush.bf16.msra.mxu2 %v7621_v14  ;;  %2363 = vmatpush.bf16.msra.mxu0 %v7141_v22  ;;  %v10032_v14 = vld [vmem:[#allocation11 + $0x7cc] sm:$0xf0]  ;;  %v9978_v22 = vld [vmem:[#allocation11 + $0x61c] sm:$0xf0]  ;;  %v7409_v8 = vor.u32 %v9957_v1, %v7406_v2  ;;  %v9879_v2 = vld [vmem:[#allocation11 + $0x30c] sm:$0xf] }
 0x123   :  { %v7693_v20 = vor.u32 %v10032_v14, %v7692_v13  ;;  %v7190_v13 = vld [vmem:[#allocation11 + $0x3e0] sm:$0xf0]  ;;  %v9951_v14 = vld [vmem:[#allocation11 + $0x54c] sm:$0xf] }
 0x124   :  { %2398 = vmatpush.bf16.msra.mxu3 %v7813_v15  ;;  %2376 = vmatpush.bf16.msra.mxu1 %v7333_v23  ;;  %v9813_v15 = vld [vmem:[#allocation11 + $0xfc] sm:$0xf]  ;;  %v7668_v23 = vld [vmem:[#allocation11 + $0x788] sm:$0xf] }
 0x125   :  { %v6833_v24 = vor.u32 %v9813_v15, %v6830_v16  ;;  %v7382_v15 = vld [vmem:[#allocation11 + $0x560] sm:$0xf0] }
 0x126   :  { %2386 = vmatpush.bf16.msra.mxu2 %v7597_v27  ;;  %2364 = vmatpush.bf16.msra.mxu0 %v7117_v38  ;;  %v10026_v27 = vld [vmem:[#allocation11 + $0x79c] sm:$0xf0]  ;;  %v7454_v38 = vld [vmem:[#allocation11 + $0x5f0] sm:$0xf0] }
 0x127   :  { %v7669_v40 = vor.u32 %v10026_v27, %v7668_v23  ;;  %v7457_v47 = vor.u32 %v9969_v37, %v7454_v38  ;;  %v6902_v23 = vld [vmem:[#allocation11 + $0x1a0] sm:$0xf0]  ;;  %v9945_v27 = vld [vmem:[#allocation11 + $0x51c] sm:$0xf] }
 0x128   :  { %2399 = vmatpush.bf16.msra.mxu3 %v7789_v28  ;;  %2377 = vmatpush.bf16.msra.mxu1 %v7309_v39  ;;  %v9807_v28 = vld [vmem:[#allocation11 + $0xcc] sm:$0xf]  ;;  %v7477_v39 = vor.u32 %v9978_v22, %v7476_v21  ;;  %v7385_v22 = vor.u32 %v9951_v14, %v7382_v15  ;;  %v9829_v14 = vld [vmem:[#allocation11 + $0x174] sm:$0xf0]  ;;  %v7076_v15 = vld [vmem:[#allocation11 + $0x2e0] sm:$0xf] }
 0x129   :  { %v6809_v41 = vor.u32 %v9807_v28, %v6806_v29  ;;  %v7358_v28 = vld [vmem:[#allocation11 + $0x530] sm:$0xf0]  ;;  %v10017_v29 = vld [vmem:[#allocation11 + $0x75c] sm:$0xf] }
 0x12a   :  { %2387 = vmatpush.bf16.msra.mxu2 %v7573_v43  ;;  %2365 = vmatpush.bf16.msra.mxu0 %v7093_v56  ;;  %v9801_v43 = vld [vmem:[#allocation11 + $0x9c] sm:$0xf]  ;;  %v6977_v56 = vor.u32 %v9849_v48, %v6974_v49  ;;  %v7622_v48 = vld [vmem:[#allocation11 + $0x740] sm:$0xf0]  ;;  %v10059_v49 = vld [vmem:[#allocation11 + $0x8ac] sm:$0xf] }
 0x12c   :  { %2400 = vmatpush.bf16.msra.mxu3 %v7765_v44  ;;  %2378 = vmatpush.bf16.msra.mxu1 %v7285_v57  ;;  %v6782_v44 = vld [vmem:[#allocation11 + $0xb0] sm:$0xf0]  ;;  %v9795_v57 = vld [vmem:[#allocation11 + $0x6c] sm:$0xf] }
 0x12d   :  { %2366 = vmatmul.bf16.vlgmr.msra.gmra.mxu0 %v11247_v31  ;;  %v6785_v55 = vor.u32 %v9801_v43, %v6782_v44  ;;  %v7841_v43 = vor.u32 %v10065_v33, %v7838_v34  ;;  %v9939_v44 = vld [vmem:[#allocation11 + $0x4ec] sm:$0xf]  ;;  %v9871_v33 = vld [vmem:[#allocation11 + $0x2c4] sm:$0xf0] }
 0x12e   :  { %2388 = vmatpush.bf16.msra.mxu2 %v7549_v58  ;;  %2410 = vmatpush.bf16.msrb.mxu0 %v6881_v62  ;;  %v6758_v58 = vld [vmem:[#allocation11 + $0x80] sm:$0xf0] }
 0x12f   :  { %2379 = vmatmul.bf16.vlgmr.msra.gmra.mxu1 %v11249_v36  ;;  %v6950_v62 = vld [vmem:[#allocation11 + $0x200] sm:$0xf0]  ;;  %v6761_v3 = vor.u32 %v9795_v57, %v6758_v58  ;;  %v9933_v58 = vld [vmem:[#allocation11 + $0x4bc] sm:$0xf] }
 0x130   :  { %2401 = vmatpush.bf16.msra.mxu3 %v7741_v59  ;;  %2423 = vmatpush.bf16.msrb.mxu1 %v7073_v63  ;;  %v7241_v59 = vor.u32 %v9915_v51, %v7238_v52  ;;  %v9909_v63 = vld [vmem:[#allocation11 + $0x3fc] sm:$0xf]  ;;  %v6953_v4 = vor.u32 %v9843_v61, %v6950_v62  ;;  %v7814_v51 = vld [vmem:[#allocation11 + $0x8c0] sm:$0xf0]  ;;  %v7598_v61 = vld [vmem:[#allocation11 + $0x710] sm:$0xf0] }
 0x131   :  { %v7817_v57 = vor.u32 %v10059_v49, %v7814_v51  ;;  %v10053_v62 = vld [vmem:[#allocation11 + $0x87c] sm:$0xf] }
 0x132   :  { %2389 = vmatpush.bf16.msra.mxu2 %v7525_v6  ;;  %2411 = vmatpush.bf16.msrb.mxu0 %v6857_v10  ;;  %v6734_v6 = vld [vmem:[#allocation11 + $0x50] sm:$0xf0]  ;;  %v9981_v51 = vld [vmem:[#allocation11 + $0x63c] sm:$0xf] }
 0x133   :  { %v6926_v10 = vld [vmem:[#allocation11 + $0x1d0] sm:$0xf0]  ;;  %v6737_v16 = vor.u32 %v9789_v5, %v6734_v6 }
 0x134   :  { %2402 = vmatpush.bf16.msra.mxu3 %v7717_v7  ;;  %2424 = vmatpush.bf16.msrb.mxu1 %v7049_v11  ;;  %v7217_v7 = vor.u32 %v9909_v63, %v7214_v0  ;;  %v9903_v11 = vld [vmem:[#allocation11 + $0x3cc] sm:$0xf]  ;;  %v6929_v17 = vor.u32 %v9837_v9, %v6926_v10  ;;  %v7790_v63 = vld [vmem:[#allocation11 + $0x890] sm:$0xf0]  ;;  %v7574_v9 = vld [vmem:[#allocation11 + $0x6e0] sm:$0xf0] }
 0x135   :  { %v7193_v21 = vor.u32 %v9903_v11, %v7190_v13  ;;  %v7793_v6 = vor.u32 %v10053_v62, %v7790_v63  ;;  %v10047_v10 = vld [vmem:[#allocation11 + $0x84c] sm:$0xf]  ;;  %v7766_v11 = vld [vmem:[#allocation11 + $0x860] sm:$0xf0]  ;;  %v6884_v13 = vld [vmem:[#allocation11 + $0x160] sm:$0xf] }
 0x136   :  { %2390 = vmatpush.bf16.msra.mxu2 %v7501_v19  ;;  %2412 = vmatpush.bf16.msrb.mxu0 %v6833_v24  ;;  %v6710_v19 = vld [vmem:[#allocation11 + $0x20] sm:$0xf0]  ;;  %v9897_v24 = vld [vmem:[#allocation11 + $0x39c] sm:$0xf] }
 0x137   :  { %v6713_v35 = vor.u32 %v9783_v18, %v6710_v19 }
 0x138   :  { %2403 = vmatpush.bf16.msra.mxu3 %v7693_v20  ;;  %2425 = vmatpush.bf16.msrb.mxu1 %v7025_v25  ;;  %v9831_v20 = vld [vmem:[#allocation11 + $0x18c] sm:$0xf]  ;;  %v7166_v25 = vld [vmem:[#allocation11 + $0x3b0] sm:$0xf0] }
 0x139   :  { %v6905_v37 = vor.u32 %v9831_v20, %v6902_v23  ;;  %v7169_v38 = vor.u32 %v9897_v24, %v7166_v25  ;;  %v7769_v20 = vor.u32 %v10047_v10, %v7766_v11  ;;  %v6885_v23 = vor.u32 %v9829_v14, %v6884_v13  ;;  %v10041_v25 = vld [vmem:[#allocation11 + $0x81c] sm:$0xf]  ;;  %v6980_v10 = vld [vmem:[#allocation11 + $0x220] sm:$0xf]  ;;  %v9853_v11 = vld [vmem:[#allocation11 + $0x234] sm:$0xf0] }
 0x13a   :  { %2391 = vmatpush.bf16.msra.mxu2 %v7477_v39  ;;  %2413 = vmatpush.bf16.msrb.mxu0 %v6809_v41  ;;  %v7361_v39 = vor.u32 %v9945_v27, %v7358_v28  ;;  %v7142_v41 = vld [vmem:[#allocation11 + $0x380] sm:$0xf0]  ;;  %v7742_v27 = vld [vmem:[#allocation11 + $0x830] sm:$0xf0]  ;;  %v6860_v28 = vld [vmem:[#allocation11 + $0x130] sm:$0xf] }
 0x13b   :  { %v7268_v13 = vld [vmem:[#allocation11 + $0x460] sm:$0xf] }
 0x13c   :  { %2404 = vmatpush.bf16.msra.mxu3 %v7669_v40  ;;  %2426 = vmatpush.bf16.msrb.mxu1 %v7001_v42  ;;  %v9891_v40 = vld [vmem:[#allocation11 + $0x36c] sm:$0xf]  ;;  %v7649_v42 = vor.u32 %v10017_v29, %v7646_v32  ;;  %v9823_v29 = vld [vmem:[#allocation11 + $0x144] sm:$0xf0]  ;;  %v7052_v32 = vld [vmem:[#allocation11 + $0x2b0] sm:$0xf] }
 0x13d   :  { %2392 = vmatmul.bf16.vlgmr.msra.gmra.mxu2 %v11243_v26  ;;  %v7145_v52 = vor.u32 %v9891_v40, %v7142_v41  ;;  %v7053_v40 = vor.u32 %v9871_v33, %v7052_v32  ;;  %v10035_v41 = vld [vmem:[#allocation11 + $0x7ec] sm:$0xf]  ;;  %v9847_v32 = vld [vmem:[#allocation11 + $0x204] sm:$0xf0]  ;;  %v7244_v33 = vld [vmem:[#allocation11 + $0x430] sm:$0xf] }
 0x13e   :  { %2436 = vmatpush.bf16.msrb.mxu2 %v7265_v46  ;;  %2414 = vmatpush.bf16.msrb.mxu0 %v6785_v55  ;;  %v7334_v46 = vld [vmem:[#allocation11 + $0x500] sm:$0xf0]  ;;  %v7118_v55 = vld [vmem:[#allocation11 + $0x350] sm:$0xf0] }
 0x13f   :  { %2405 = vmatmul.bf16.vlgmr.msra.gmra.mxu3 %v11245_v30  ;;  %v7337_v53 = vor.u32 %v9939_v44, %v7334_v46  ;;  %v7121_v0 = vor.u32 %v9885_v54, %v7118_v55  ;;  %v9817_v44 = vld [vmem:[#allocation11 + $0x114] sm:$0xf0]  ;;  %v7028_v46 = vld [vmem:[#allocation11 + $0x280] sm:$0xf] }
 0x140   :  { %2449 = vmatpush.bf16.msrb.mxu3 %v7457_v47  ;;  %2427 = vmatpush.bf16.msrb.mxu1 %v6977_v56  ;;  %v10011_v47 = vld [vmem:[#allocation11 + $0x72c] sm:$0xf] }
 0x141   :  { %v7625_v56 = vor.u32 %v10011_v47, %v7622_v48  ;;  %v9865_v47 = vld [vmem:[#allocation11 + $0x294] sm:$0xf0] }
 0x142   :  { %2437 = vmatpush.bf16.msrb.mxu2 %v7241_v59  ;;  %2415 = vmatpush.bf16.msrb.mxu0 %v6761_v3  ;;  %v7310_v59 = vld [vmem:[#allocation11 + $0x4d0] sm:$0xf0]  ;;  %v7094_v3 = vld [vmem:[#allocation11 + $0x320] sm:$0xf0]  ;;  %v7029_v55 = vor.u32 %v9865_v47, %v7028_v46  ;;  %v6932_v46 = vld [vmem:[#allocation11 + $0x1c0] sm:$0xf] }
 0x143   :  { %v7313_v1 = vor.u32 %v9933_v58, %v7310_v59  ;;  %v6812_v58 = vld [vmem:[#allocation11 + $0xd0] sm:$0xf]  ;;  %v9811_v59 = vld [vmem:[#allocation11 + $0xe4] sm:$0xf0]  ;;  %v9841_v47 = vld [vmem:[#allocation11 + $0x1d4] sm:$0xf0] }
 0x144   :  { %2450 = vmatpush.bf16.msrb.mxu3 %v7433_v60  ;;  %2428 = vmatpush.bf16.msrb.mxu1 %v6953_v4  ;;  %v10005_v60 = vld [vmem:[#allocation11 + $0x6fc] sm:$0xf]  ;;  %v9927_v4 = vld [vmem:[#allocation11 + $0x48c] sm:$0xf] }
 0x145   :  { %v7601_v5 = vor.u32 %v10005_v60, %v7598_v61  ;;  %v7004_v60 = vld [vmem:[#allocation11 + $0x250] sm:$0xf]  ;;  %v9859_v61 = vld [vmem:[#allocation11 + $0x264] sm:$0xf0] }
 0x146   :  { %2438 = vmatpush.bf16.msrb.mxu2 %v7217_v7  ;;  %2416 = vmatpush.bf16.msrb.mxu0 %v6737_v16  ;;  %v7286_v7 = vld [vmem:[#allocation11 + $0x4a0] sm:$0xf0]  ;;  %v9877_v16 = vld [vmem:[#allocation11 + $0x2f4] sm:$0xf0] }
 0x147   :  { %v7289_v18 = vor.u32 %v9927_v4, %v7286_v7  ;;  %v7077_v24 = vor.u32 %v9877_v16, %v7076_v15  ;;  %v6813_v4 = vor.u32 %v9811_v59, %v6812_v58  ;;  %v6788_v7 = vld [vmem:[#allocation11 + $0xa0] sm:$0xf]  ;;  %v9925_v16 = vld [vmem:[#allocation11 + $0x474] sm:$0xf0] }
 0x148   :  { %2451 = vmatpush.bf16.msrb.mxu3 %v7409_v8  ;;  %2429 = vmatpush.bf16.msrb.mxu1 %v6929_v17  ;;  %v9999_v8 = vld [vmem:[#allocation11 + $0x6cc] sm:$0xf]  ;;  %v7097_v17 = vor.u32 %v9879_v2, %v7094_v3  ;;  %v7478_v2 = vld [vmem:[#allocation11 + $0x620] sm:$0xf0] }
 0x149   :  { %v7577_v19 = vor.u32 %v9999_v8, %v7574_v9  ;;  %v10023_v3 = vld [vmem:[#allocation11 + $0x78c] sm:$0xf]  ;;  %v9805_v8 = vld [vmem:[#allocation11 + $0xb4] sm:$0xf0] }
 0x14a   :  { %2439 = vmatpush.bf16.msrb.mxu2 %v7193_v21  ;;  %2417 = vmatpush.bf16.msrb.mxu0 %v6713_v35  ;;  %v9993_v21 = vld [vmem:[#allocation11 + $0x69c] sm:$0xf]  ;;  %v7745_v35 = vor.u32 %v10041_v25, %v7742_v27  ;;  %v9799_v25 = vld [vmem:[#allocation11 + $0x84] sm:$0xf0]  ;;  %v7269_v27 = vor.u32 %v9925_v16, %v7268_v13 }
 0x14c   :  { %2452 = vmatpush.bf16.msrb.mxu3 %v7385_v22  ;;  %2430 = vmatpush.bf16.msrb.mxu1 %v6905_v37  ;;  %v7550_v22 = vld [vmem:[#allocation11 + $0x6b0] sm:$0xf0]  ;;  %v9987_v37 = vld [vmem:[#allocation11 + $0x66c] sm:$0xf] }
 0x14d   :  { %2418 = vmatmul.bf16.vlgmr.msrb.gmra.mxu0 %v11233_v45  ;;  %v7553_v34 = vor.u32 %v9993_v21, %v7550_v22  ;;  %v6789_v22 = vor.u32 %v9805_v8, %v6788_v7  ;;  %v7652_v7 = vld [vmem:[#allocation11 + $0x760] sm:$0xf]  ;;  %v10021_v8 = vld [vmem:[#allocation11 + $0x774] sm:$0xf0] }
 0x14e   :  { %2440 = vmatpush.bf16.msrb.mxu2 %v7169_v38  ;;  %2462 = vmatpush.bf16.msra.mxu0 %v7649_v42  ;;  %v7526_v38 = vld [vmem:[#allocation11 + $0x680] sm:$0xf0] }
 0x14f   :  { %2431 = vmatmul.bf16.vlgmr.msrb.gmra.mxu1 %v11235_v50  ;;  %v7718_v42 = vld [vmem:[#allocation11 + $0x800] sm:$0xf0]  ;;  %v7529_v48 = vor.u32 %v9987_v37, %v7526_v38  ;;  %v9967_v37 = vld [vmem:[#allocation11 + $0x5c4] sm:$0xf0] }
 0x150   :  { %2453 = vmatpush.bf16.msrb.mxu3 %v7361_v39  ;;  %2475 = vmatpush.bf16.msra.mxu1 %v7841_v43  ;;  %v6861_v39 = vor.u32 %v9823_v29, %v6860_v28  ;;  %v6836_v43 = vld [vmem:[#allocation11 + $0x100] sm:$0xf]  ;;  %v7721_v49 = vor.u32 %v10035_v41, %v7718_v42  ;;  %v6956_v29 = vld [vmem:[#allocation11 + $0x1f0] sm:$0xf]  ;;  %v9793_v41 = vld [vmem:[#allocation11 + $0x54] sm:$0xf0] }
 0x151   :  { %v6837_v54 = vor.u32 %v9817_v44, %v6836_v43 }
 0x152   :  { %2441 = vmatpush.bf16.msrb.mxu2 %v7145_v52  ;;  %2463 = vmatpush.bf16.msra.mxu0 %v7625_v56  ;;  %v7502_v52 = vld [vmem:[#allocation11 + $0x650] sm:$0xf0]  ;;  %v10029_v56 = vld [vmem:[#allocation11 + $0x7bc] sm:$0xf] }
 0x153   :  { %v7505_v63 = vor.u32 %v9981_v51, %v7502_v52  ;;  %v9913_v51 = vld [vmem:[#allocation11 + $0x414] sm:$0xf0]  ;;  %v7412_v52 = vld [vmem:[#allocation11 + $0x580] sm:$0xf] }
 0x154   :  { %2454 = vmatpush.bf16.msrb.mxu3 %v7337_v53  ;;  %2476 = vmatpush.bf16.msra.mxu1 %v7817_v57  ;;  %v11271_v53 = vld [vmem:[#allocation12] sm:$0x3f]  ;;  %v7694_v57 = vld [vmem:[#allocation11 + $0x7d0] sm:$0xf0] }
 0x155   :  { %v724_v62 = vperm.slane %v11271_v53, 0 }
 0x156   :  { %2442 = vmatpush.bf16.msrb.mxu2 %v7121_v0  ;;  %2464 = vmatpush.bf16.msra.mxu0 %v7601_v5  ;;  %v7697_v0 = vor.u32 %v10029_v56, %v7694_v57  ;;  %v7005_v5 = vor.u32 %v9859_v61, %v7004_v60  ;;  %v6933_v57 = vor.u32 %v9841_v47, %v6932_v46  ;;  %v6716_v60 = vld [vmem:[#allocation11 + $0x10] sm:$0xf]  ;;  %v9787_v61 = vld [vmem:[#allocation11 + $0x24] sm:$0xf0]  ;;  %v10009_v46 = vld [vmem:[#allocation11 + $0x714] sm:$0xf0] }
 0x157   :  { %v7796_v47 = vld [vmem:[#allocation11 + $0x880] sm:$0xf] }
 0x158   :  { %2455 = vmatpush.bf16.msrb.mxu3 %v7313_v1  ;;  %2477 = vmatpush.bf16.msra.mxu1 %v7793_v6  ;;  %v9975_v1 = vld [vmem:[#allocation11 + $0x60c] sm:$0xf]  ;;  %v7670_v6 = vld [vmem:[#allocation11 + $0x7a0] sm:$0xf0] }
 0x15a   :  { %2443 = vmatpush.bf16.msrb.mxu2 %v7097_v17  ;;  %2465 = vmatpush.bf16.msra.mxu0 %v7577_v19  ;;  %v7460_v17 = vld [vmem:[#allocation11 + $0x5e0] sm:$0xf]  ;;  %v7481_v19 = vor.u32 %v9975_v1, %v7478_v2  ;;  %v9835_v1 = vld [vmem:[#allocation11 + $0x1a4] sm:$0xf0]  ;;  %v7196_v2 = vld [vmem:[#allocation11 + $0x3d0] sm:$0xf] }
 0x15c   :  { %2456 = vmatpush.bf16.msrb.mxu3 %v7289_v18  ;;  %2478 = vmatpush.bf16.msra.mxu1 %v7769_v20  ;;  %v9973_v18 = vld [vmem:[#allocation11 + $0x5f4] sm:$0xf0]  ;;  %v7673_v20 = vor.u32 %v10023_v3, %v7670_v6  ;;  %v9907_v3 = vld [vmem:[#allocation11 + $0x3e4] sm:$0xf0] }
 0x15d   :  { %2444 = vmatmul.bf16.vlgmr.msrb.gmra.mxu2 %v11247_v31  ;;  %v7461_v28 = vor.u32 %v9973_v18, %v7460_v17  ;;  %v9955_v6 = vld [vmem:[#allocation11 + $0x564] sm:$0xf0]  ;;  %v7172_v17 = vld [vmem:[#allocation11 + $0x3a0] sm:$0xf]  ;;  %v9901_v18 = vld [vmem:[#allocation11 + $0x3b4] sm:$0xf0] }
 0x15e   :  { %2488 = vmatpush.bf16.msra.mxu2 %v6885_v23  ;;  %2466 = vmatpush.bf16.msra.mxu0 %v7553_v34  ;;  %v6981_v23 = vor.u32 %v9853_v11, %v6980_v10  ;;  %v9919_v34 = vld [vmem:[#allocation11 + $0x444] sm:$0xf0]  ;;  %v10069_v10 = vld [vmem:[#allocation11 + $0x8f4] sm:$0xf0]  ;;  %v6717_v11 = vor.u32 %v9787_v61, %v6716_v60  ;;  %v7316_v60 = vld [vmem:[#allocation11 + $0x4c0] sm:$0xf] }
 0x15f   :  { %2457 = vmatmul.bf16.vlgmr.msrb.gmra.mxu3 %v11249_v36  ;;  %v7245_v42 = vor.u32 %v9919_v34, %v7244_v33  ;;  %v9937_v61 = vld [vmem:[#allocation11 + $0x4d4] sm:$0xf0] }
 0x160   :  { %2501 = vmatpush.bf16.msra.mxu3 %v7077_v24  ;;  %2479 = vmatpush.bf16.msra.mxu1 %v7745_v35  ;;  %v2185_v9 = vpop.f32.mrf.mxu2  ;;  %v6764_v24 = vld [vmem:[#allocation11 + $0x70] sm:$0xf] }
 0x161   :  { %v2186_v14 = vadd.f32 %v2185_v9, %v724_v62  ;;  %v7436_v35 = vld [vmem:[#allocation11 + $0x5b0] sm:$0xf]  ;;  %v6765_v38 = vor.u32 %v9799_v25, %v6764_v24  ;;  %v7844_v9 = vld [vmem:[#allocation11 + $0x8e0] sm:$0xf]  ;;  %v9949_v24 = vld [vmem:[#allocation11 + $0x534] sm:$0xf0] }
 0x162   :  { %2489 = vmatpush.bf16.msra.mxu2 %v6861_v39  ;;  %2467 = vmatpush.bf16.msra.mxu0 %v7529_v48  ;;  %v2198_v15 = vpop.f32.mrf.mxu3  ;;  %v6957_v39 = vor.u32 %v9847_v32, %v6956_v29  ;;  %v7437_v43 = vor.u32 %v9967_v37, %v7436_v35  ;;  %v7220_v48 = vld [vmem:[#allocation11 + $0x400] sm:$0xf]  ;;  %v6908_v62 = vld [vmem:[#allocation11 + $0x190] sm:$0xf]  ;;  %v10063_v32 = vld [vmem:[#allocation11 + $0x8c4] sm:$0xf0]  ;;  %v7173_v35 = vor.u32 %v9901_v18, %v7172_v17 }
 0x163   :  { %v2199_v21 = vadd.f32 %v2198_v15, %v2186_v14  ;;  %v6909_v13 = vor.u32 %v9835_v1, %v6908_v62  ;;  %v7197_v14 = vor.u32 %v9907_v3, %v7196_v2  ;;  %v7628_v25 = vld [vmem:[#allocation11 + $0x730] sm:$0xf]  ;;  %v10051_v1 = vld [vmem:[#allocation11 + $0x864] sm:$0xf0]  ;;  %v7748_v17 = vld [vmem:[#allocation11 + $0x820] sm:$0xf] }
 0x164   :  { %2502 = vmatpush.bf16.msra.mxu3 %v7053_v40  ;;  %2480 = vmatpush.bf16.msra.mxu1 %v7721_v49  ;;  %v6740_v40 = vld [vmem:[#allocation11 + $0x40] sm:$0xf]  ;;  %v7820_v29 = vld [vmem:[#allocation11 + $0x8b0] sm:$0xf]  ;;  %v10045_v18 = vld [vmem:[#allocation11 + $0x834] sm:$0xf0] }
 0x165   :  { %v6741_v56 = vor.u32 %v9793_v41, %v6740_v40  ;;  %v7821_v41 = vor.u32 %v10063_v32, %v7820_v29  ;;  %v7580_v62 = vld [vmem:[#allocation11 + $0x6d0] sm:$0xf]  ;;  %v9991_v29 = vld [vmem:[#allocation11 + $0x684] sm:$0xf0] }
 0x166   :  { %2490 = vmatpush.bf16.msra.mxu2 %v6837_v54  ;;  %2468 = vmatpush.bf16.msra.mxu0 %v7505_v63  ;;  %v9961_v54 = vld [vmem:[#allocation11 + $0x594] sm:$0xf0]  ;;  %v7221_v63 = vor.u32 %v9913_v51, %v7220_v48 }
 0x167   :  { %v10057_v48 = vld [vmem:[#allocation11 + $0x894] sm:$0xf0] }
 0x168   :  { %2503 = vmatpush.bf16.msra.mxu3 %v7029_v55  ;;  %2481 = vmatpush.bf16.msra.mxu1 %v7697_v0  ;;  %v2187_v44 = vpop.f32.mrf.mxu2  ;;  %v7413_v0 = vor.u32 %v9961_v54, %v7412_v52  ;;  %v7124_v54 = vld [vmem:[#allocation11 + $0x340] sm:$0xf] }
 0x169   :  { %v7604_v44 = vld [vmem:[#allocation11 + $0x700] sm:$0xf] }
 0x16a   :  { %2491 = vmatpush.bf16.msra.mxu2 %v6813_v4  ;;  %2469 = vmatpush.bf16.msra.mxu0 %v7481_v19  ;;  %v2200_v49 = vpop.f32.mrf.mxu3  ;;  %v2211_v55 = vpop.f32.mrf.mxu0  ;;  %v7653_v19 = vor.u32 %v10021_v8, %v7652_v7  ;;  %v7100_v7 = vld [vmem:[#allocation11 + $0x310] sm:$0xf]  ;;  %v9883_v8 = vld [vmem:[#allocation11 + $0x324] sm:$0xf0] }
 0x16b   :  { %v2212_v58 = vadd.f32 %v2211_v55, %v2199_v21  ;;  %v9889_v55 = vld [vmem:[#allocation11 + $0x354] sm:$0xf0] }
 0x16c   :  { %2504 = vmatpush.bf16.msra.mxu3 %v7005_v5  ;;  %2482 = vmatpush.bf16.msra.mxu1 %v7673_v20  ;;  %v2224_v59 = vpop.f32.mrf.mxu1  ;;  %v7388_v5 = vld [vmem:[#allocation11 + $0x550] sm:$0xf]  ;;  %v7845_v20 = vor.u32 %v10069_v10, %v7844_v9 }
 0x16d   :  { %2470 = vmatmul.bf16.vlgmr.msra.gmra.mxu0 %v11243_v26  ;;  %v2225_v4 = vadd.f32 %v2224_v59, %v2212_v58  ;;  %v7389_v15 = vor.u32 %v9955_v6, %v7388_v5  ;;  %v7797_v58 = vor.u32 %v10057_v48, %v7796_v47  ;;  %v7317_v5 = vor.u32 %v9937_v61, %v7316_v60  ;;  %v7292_v9 = vld [vmem:[#allocation11 + $0x490] sm:$0xf]  ;;  %v7054_v47 = vld [vmem:[#allocation11 + $0x2c8] sm:$0xf0]  ;;  %v6838_v60 = vld [vmem:[#allocation11 + $0x118] sm:$0xf0] }
 0x16e   :  { %2492 = vmatpush.bf16.msra.mxu2 %v6789_v22  ;;  %2514 = vmatpush.bf16.msrb.mxu0 %v7269_v27  ;;  %v9862_v61 = vld [vmem:[#allocation11 + $0x284] sm:$0xf] }
 0x16f   :  { %2483 = vmatmul.bf16.vlgmr.msra.gmra.mxu1 %v11245_v30 }
 0x170   :  { %2505 = vmatpush.bf16.msra.mxu3 %v6981_v23  ;;  %2527 = vmatpush.bf16.msrb.mxu1 %v7461_v28  ;;  %v2237_v16 = vpop.f32.mrf.mxu2  ;;  %v7364_v23 = vld [vmem:[#allocation11 + $0x520] sm:$0xf]  ;;  %v10015_v28 = vld [vmem:[#allocation11 + $0x744] sm:$0xf0] }
 0x171   :  { %v2238_v21 = vadd.f32 %v2237_v16, %v2225_v4  ;;  %v7365_v37 = vor.u32 %v9949_v24, %v7364_v23  ;;  %v7629_v40 = vor.u32 %v10015_v28, %v7628_v25  ;;  %v7125_v4 = vor.u32 %v9889_v55, %v7124_v54  ;;  %v7532_v28 = vld [vmem:[#allocation11 + $0x670] sm:$0xf]  ;;  %v9985_v54 = vld [vmem:[#allocation11 + $0x654] sm:$0xf0] }
 0x172   :  { %2493 = vmatpush.bf16.msra.mxu2 %v6765_v38  ;;  %2515 = vmatpush.bf16.msrb.mxu0 %v7245_v42  ;;  %v2250_v22 = vpop.f32.mrf.mxu3  ;;  %v2213_v27 = vpop.f32.mrf.mxu0  ;;  %v7148_v38 = vld [vmem:[#allocation11 + $0x370] sm:$0xf]  ;;  %v7101_v23 = vor.u32 %v9883_v8, %v7100_v7  ;;  %v10027_v8 = vld [vmem:[#allocation11 + $0x7a4] sm:$0xf0] }
 0x173   :  { %v11276_v33 = vadd.f32 %v2250_v22, %v2238_v21  ;;  %v7340_v42 = vld [vmem:[#allocation11 + $0x4f0] sm:$0xf]  ;;  %v9874_v21 = vld [vmem:[#allocation11 + $0x2e4] sm:$0xf]  ;;  %v7078_v22 = vld [vmem:[#allocation11 + $0x2f8] sm:$0xf0]  ;;  %v7749_v27 = vor.u32 %v10045_v18, %v7748_v17 }
 0x174   :  { %2506 = vmatpush.bf16.msra.mxu3 %v6957_v39  ;;  %2528 = vmatpush.bf16.msrb.mxu1 %v7437_v43  ;;  %v2226_v34 = vpop.f32.mrf.mxu1  ;;  %v9895_v39 = vld [vmem:[#allocation11 + $0x384] sm:$0xf0]  ;;  %v7270_v17 = vld [vmem:[#allocation11 + $0x478] sm:$0xf0]  ;;  %v9970_v18 = vld [vmem:[#allocation11 + $0x5e4] sm:$0xf] }
 0x175   :  { %v9943_v43 = vld [vmem:[#allocation11 + $0x504] sm:$0xf0]  ;;  %v7149_v49 = vor.u32 %v9895_v39, %v7148_v38  ;;  %v7081_v34 = vor.u32 %v9874_v21, %v7078_v22  ;;  %v7724_v38 = vld [vmem:[#allocation11 + $0x7f0] sm:$0xf] }
 0x176   :  { %2494 = vmatpush.bf16.msra.mxu2 %v6741_v56  ;;  %2516 = vmatpush.bf16.msrb.mxu0 %v7221_v63  ;;  %v7341_v51 = vor.u32 %v9943_v43, %v7340_v42  ;;  %v725_v56 = vperm.slane %v11271_v53, 1  ;;  %v10003_v63 = vld [vmem:[#allocation11 + $0x6e4] sm:$0xf0] }
 0x177   :  { %v7581_v10 = vor.u32 %v10003_v63, %v7580_v62  ;;  %v10039_v39 = vld [vmem:[#allocation11 + $0x804] sm:$0xf0]  ;;  %v7030_v62 = vld [vmem:[#allocation11 + $0x298] sm:$0xf0] }
 0x178   :  { %2507 = vmatpush.bf16.msra.mxu3 %v6933_v57  ;;  %2529 = vmatpush.bf16.msrb.mxu1 %v7413_v0  ;;  %v2239_v52 = vpop.f32.mrf.mxu2  ;;  %v7605_v57 = vor.u32 %v10009_v46, %v7604_v44  ;;  %v7772_v0 = vld [vmem:[#allocation11 + $0x850] sm:$0xf]  ;;  %v6862_v44 = vld [vmem:[#allocation11 + $0x148] sm:$0xf0]  ;;  %v9868_v46 = vld [vmem:[#allocation11 + $0x2b4] sm:$0xf] }
 0x179   :  { %v7508_v52 = vld [vmem:[#allocation11 + $0x640] sm:$0xf] }
 0x17a   :  { %2495 = vmatpush.bf16.msra.mxu2 %v6717_v11  ;;  %2517 = vmatpush.bf16.msrb.mxu0 %v7197_v14  ;;  %v2252_v59 = vpop.f32.mrf.mxu3  ;;  %v2263_v2 = vpop.f32.mrf.mxu0  ;;  %v7773_v11 = vor.u32 %v10051_v1, %v7772_v0  ;;  %v7556_v14 = vld [vmem:[#allocation11 + $0x6a0] sm:$0xf]  ;;  %v7509_v63 = vor.u32 %v9985_v54, %v7508_v52  ;;  %v7484_v1 = vld [vmem:[#allocation11 + $0x610] sm:$0xf]  ;;  %v7222_v54 = vld [vmem:[#allocation11 + $0x418] sm:$0xf0] }
 0x17b   :  { %v2264_v6 = vadd.f32 %v2263_v2, %v725_v56  ;;  %v7057_v56 = vor.u32 %v9868_v46, %v7054_v47  ;;  %v9814_v59 = vld [vmem:[#allocation11 + $0x104] sm:$0xf]  ;;  %v9979_v2 = vld [vmem:[#allocation11 + $0x624] sm:$0xf0]  ;;  %v9844_v46 = vld [vmem:[#allocation11 + $0x1f4] sm:$0xf] }
 0x17c   :  { %2508 = vmatpush.bf16.msra.mxu3 %v6909_v13  ;;  %2530 = vmatpush.bf16.msrb.mxu1 %v7389_v15  ;;  %v2276_v3 = vpop.f32.mrf.mxu1  ;;  %v9931_v13 = vld [vmem:[#allocation11 + $0x4a4] sm:$0xf0]  ;;  %v9997_v15 = vld [vmem:[#allocation11 + $0x6b4] sm:$0xf0]  ;;  %v6958_v47 = vld [vmem:[#allocation11 + $0x208] sm:$0xf0] }
 0x17d   :  { %2496 = vmatmul.bf16.vlgmr.msra.gmra.mxu2 %v11233_v45  ;;  %v2277_v16 = vadd.f32 %v2276_v3, %v2264_v6  ;;  %v7293_v24 = vor.u32 %v9931_v13, %v7292_v9  ;;  %v7557_v25 = vor.u32 %v9997_v15, %v7556_v14  ;;  %v7676_v3 = vld [vmem:[#allocation11 + $0x790] sm:$0xf]  ;;  %v9808_v9 = vld [vmem:[#allocation11 + $0xd4] sm:$0xf]  ;;  %v7006_v13 = vld [vmem:[#allocation11 + $0x268] sm:$0xf0] }
 0x17e   :  { %2540 = vmatpush.bf16.msrb.mxu2 %v7653_v19  ;;  %2518 = vmatpush.bf16.msrb.mxu0 %v7173_v35  ;;  %v9826_v19 = vld [vmem:[#allocation11 + $0x164] sm:$0xf]  ;;  %v7677_v21 = vor.u32 %v10027_v8, %v7676_v3  ;;  %v9952_v3 = vld [vmem:[#allocation11 + $0x554] sm:$0xf]  ;;  %v6718_v8 = vld [vmem:[#allocation11 + $0x28] sm:$0xf0] }
 0x17f   :  { %2509 = vmatmul.bf16.vlgmr.msra.gmra.mxu3 %v11235_v50  ;;  %v9922_v14 = vld [vmem:[#allocation11 + $0x464] sm:$0xf] }
 0x180   :  { %2553 = vmatpush.bf16.msrb.mxu3 %v7845_v20  ;;  %2531 = vmatpush.bf16.msrb.mxu1 %v7365_v37  ;;  %v6886_v20 = vld [vmem:[#allocation11 + $0x178] sm:$0xf0]  ;;  %v2289_v35 = vpop.f32.mrf.mxu2 }
 0x181   :  { %v6889_v32 = vor.u32 %v9826_v19, %v6886_v20  ;;  %v7462_v19 = vld [vmem:[#allocation11 + $0x5f8] sm:$0xf0]  ;;  %v7485_v20 = vor.u32 %v9979_v2, %v7484_v1  ;;  %v9904_v1 = vld [vmem:[#allocation11 + $0x3d4] sm:$0xf]  ;;  %v7198_v2 = vld [vmem:[#allocation11 + $0x3e8] sm:$0xf0] }
 0x182   :  { %2541 = vmatpush.bf16.msrb.mxu2 %v7629_v40  ;;  %2519 = vmatpush.bf16.msrb.mxu0 %v7149_v49  ;;  %v2302_v37 = vpop.f32.mrf.mxu3  ;;  %v9820_v40 = vld [vmem:[#allocation11 + $0x134] sm:$0xf]  ;;  %v2265_v42 = vpop.f32.mrf.mxu0  ;;  %v7533_v49 = vor.u32 %v9991_v29, %v7532_v28  ;;  %v7465_v28 = vor.u32 %v9970_v18, %v7462_v19  ;;  %v9850_v29 = vld [vmem:[#allocation11 + $0x224] sm:$0xf]  ;;  %v7366_v19 = vld [vmem:[#allocation11 + $0x538] sm:$0xf0] }
 0x183   :  { %v6865_v55 = vor.u32 %v9820_v40, %v6862_v44  ;;  %v6766_v42 = vld [vmem:[#allocation11 + $0x88] sm:$0xf0]  ;;  %v9946_v18 = vld [vmem:[#allocation11 + $0x524] sm:$0xf] }
 0x184   :  { %2554 = vmatpush.bf16.msrb.mxu3 %v7821_v41  ;;  %2532 = vmatpush.bf16.msrb.mxu1 %v7341_v51  ;;  %v2290_v41 = vadd.f32 %v2289_v35, %v2277_v16  ;;  %v2278_v43 = vpop.f32.mrf.mxu1  ;;  %v7725_v51 = vor.u32 %v10039_v39, %v7724_v38  ;;  %v7246_v35 = vld [vmem:[#allocation11 + $0x448] sm:$0xf0] }
 0x185   :  { %v7438_v38 = vld [vmem:[#allocation11 + $0x5c8] sm:$0xf0] }
 0x186   :  { %2542 = vmatpush.bf16.msrb.mxu2 %v7605_v57  ;;  %2520 = vmatpush.bf16.msrb.mxu0 %v7125_v4  ;;  %v11281_v48 = vadd.f32 %v2302_v37, %v2290_v41  ;;  %v7700_v57 = vld [vmem:[#allocation11 + $0x7c0] sm:$0xf]  ;;  %v6841_v4 = vor.u32 %v9814_v59, %v6838_v60  ;;  %v9964_v37 = vld [vmem:[#allocation11 + $0x5b4] sm:$0xf]  ;;  %v9790_v59 = vld [vmem:[#allocation11 + $0x44] sm:$0xf] }
 0x187   :  { %v9796_v41 = vld [vmem:[#allocation11 + $0x74] sm:$0xf]  ;;  %v7441_v44 = vor.u32 %v9964_v37, %v7438_v38  ;;  %v6742_v60 = vld [vmem:[#allocation11 + $0x58] sm:$0xf0] }
 0x188   :  { %2555 = vmatpush.bf16.msrb.mxu3 %v7797_v58  ;;  %2533 = vmatpush.bf16.msrb.mxu1 %v7317_v5  ;;  %v10033_v58 = vld [vmem:[#allocation11 + $0x7d4] sm:$0xf0]  ;;  %v7033_v5 = vor.u32 %v9862_v61, %v7030_v62  ;;  %v2291_v6 = vpop.f32.mrf.mxu2 }
 0x189   :  { %v7701_v0 = vor.u32 %v10033_v58, %v7700_v57  ;;  %v6769_v57 = vor.u32 %v9796_v41, %v6766_v42  ;;  %v6961_v58 = vor.u32 %v9844_v46, %v6958_v47  ;;  %v10012_v41 = vld [vmem:[#allocation11 + $0x734] sm:$0xf]  ;;  %v7630_v42 = vld [vmem:[#allocation11 + $0x748] sm:$0xf0] }
 0x18a   :  { %2543 = vmatpush.bf16.msrb.mxu2 %v7581_v10  ;;  %2521 = vmatpush.bf16.msrb.mxu0 %v7101_v23  ;;  %v2304_v7 = vpop.f32.mrf.mxu3  ;;  %v6814_v10 = vld [vmem:[#allocation11 + $0xe8] sm:$0xf0]  ;;  %v11285_v15 = vpop.f32.mrf.mxu0 }
 0x18b   :  { %v6817_v22 = vor.u32 %v9808_v9, %v6814_v10  ;;  %v9784_v7 = vld [vmem:[#allocation11 + $0x14] sm:$0xf]  ;;  %v7201_v10 = vor.u32 %v9904_v1, %v7198_v2  ;;  %v7102_v2 = vld [vmem:[#allocation11 + $0x328] sm:$0xf0] }
 0x18c   :  { %2556 = vmatpush.bf16.msrb.mxu3 %v7773_v11  ;;  %2534 = vmatpush.bf16.msrb.mxu1 %v7293_v24  ;;  %v9856_v11 = vld [vmem:[#allocation11 + $0x254] sm:$0xf]  ;;  %v11287_v16 = vpop.f32.mrf.mxu1  ;;  %v9802_v24 = vld [vmem:[#allocation11 + $0xa4] sm:$0xf] }
 0x18d   :  { %2522 = vmatmul.bf16.vlgmr.msrb.gmra.mxu0 %v11247_v31  ;;  %v7009_v23 = vor.u32 %v9856_v11, %v7006_v13  ;;  %v9832_v9 = vld [vmem:[#allocation11 + $0x194] sm:$0xf]  ;;  %v6910_v13 = vld [vmem:[#allocation11 + $0x1a8] sm:$0xf0] }
 0x18e   :  { %2544 = vmatpush.bf16.msrb.mxu2 %v7557_v25  ;;  %2566 = vmatpush.bf16.msra.mxu0 %v6889_v32  ;;  %v6790_v25 = vld [vmem:[#allocation11 + $0xb8] sm:$0xf0]  ;;  %v9880_v1 = vld [vmem:[#allocation11 + $0x314] sm:$0xf] }
 0x18f   :  { %2535 = vmatmul.bf16.vlgmr.msrb.gmra.mxu1 %v11249_v36  ;;  %v6982_v32 = vld [vmem:[#allocation11 + $0x238] sm:$0xf0]  ;;  %v6793_v39 = vor.u32 %v9802_v24, %v6790_v25  ;;  %v6721_v24 = vor.u32 %v9784_v7, %v6718_v8  ;;  %v6913_v25 = vor.u32 %v9832_v9, %v6910_v13  ;;  %v7582_v7 = vld [vmem:[#allocation11 + $0x6e8] sm:$0xf0]  ;;  %v7908_v9 = vld [vmem:[#allocation14 + $0x70] sm:$0xf] }
 0x190   :  { %2557 = vmatpush.bf16.msrb.mxu3 %v7749_v27  ;;  %2579 = vmatpush.bf16.msra.mxu1 %v7081_v34  ;;  %v7273_v27 = vor.u32 %v9922_v14, %v7270_v17  ;;  %v9916_v34 = vld [vmem:[#allocation11 + $0x434] sm:$0xf]  ;;  %v6985_v40 = vor.u32 %v9850_v29, %v6982_v32  ;;  %v9898_v14 = vld [vmem:[#allocation11 + $0x3a4] sm:$0xf]  ;;  %v7174_v17 = vld [vmem:[#allocation11 + $0x3b8] sm:$0xf0] }
 0x191   :  { %v7249_v43 = vor.u32 %v9916_v34, %v7246_v35  ;;  %v9892_v34 = vld [vmem:[#allocation11 + $0x374] sm:$0xf]  ;;  %v7150_v35 = vld [vmem:[#allocation11 + $0x388] sm:$0xf0]  ;;  %v10085_v13 = vld [vmem:[#allocation14 + $0x74] sm:$0xf0] }
 0x192   :  { %2545 = vmatpush.bf16.msrb.mxu2 %v7533_v49  ;;  %2567 = vmatpush.bf16.msra.mxu0 %v6865_v55  ;;  %v9910_v49 = vld [vmem:[#allocation11 + $0x404] sm:$0xf]  ;;  %v7153_v46 = vor.u32 %v9892_v34, %v7150_v35  ;;  %v7774_v8 = vld [vmem:[#allocation11 + $0x868] sm:$0xf0] }
 0x193   :  { %v9958_v55 = vld [vmem:[#allocation11 + $0x584] sm:$0xf]  ;;  %v7225_v61 = vor.u32 %v9910_v49, %v7222_v54  ;;  %v10083_v35 = vld [vmem:[#allocation14 + $0x64] sm:$0xf0] }
 0x194   :  { %2558 = vmatpush.bf16.msrb.mxu3 %v7725_v51  ;;  %2580 = vmatpush.bf16.msra.mxu1 %v7057_v56  ;;  %v2317_v51 = vpop.f32.mrf.mxu0  ;;  %v2330_v52 = vpop.f32.mrf.mxu1  ;;  %v7414_v56 = vld [vmem:[#allocation11 + $0x598] sm:$0xf0]  ;;  %v9886_v49 = vld [vmem:[#allocation11 + $0x344] sm:$0xf] }
 0x195   :  { %v7417_v62 = vor.u32 %v9958_v55, %v7414_v56  ;;  %v7126_v51 = vld [vmem:[#allocation11 + $0x358] sm:$0xf0]  ;;  %v7633_v52 = vor.u32 %v10012_v41, %v7630_v42  ;;  %v9934_v55 = vld [vmem:[#allocation11 + $0x4c4] sm:$0xf]  ;;  %v9988_v41 = vld [vmem:[#allocation11 + $0x674] sm:$0xf] }
 0x196   :  { %2546 = vmatpush.bf16.msrb.mxu2 %v7509_v63  ;;  %2568 = vmatpush.bf16.msra.mxu0 %v6841_v4  ;;  %v9838_v63 = vld [vmem:[#allocation11 + $0x1c4] sm:$0xf]  ;;  %v7390_v4 = vld [vmem:[#allocation11 + $0x568] sm:$0xf0]  ;;  %v7318_v56 = vld [vmem:[#allocation11 + $0x4d8] sm:$0xf0] }
 0x197   :  { %v7393_v11 = vor.u32 %v9952_v3, %v7390_v4  ;;  %v9928_v3 = vld [vmem:[#allocation11 + $0x494] sm:$0xf]  ;;  %v7900_v34 = vld [vmem:[#allocation14 + $0x60] sm:$0xf]  ;;  %v7534_v42 = vld [vmem:[#allocation11 + $0x688] sm:$0xf0] }
 0x198   :  { %2559 = vmatpush.bf16.msrb.mxu3 %v7701_v0  ;;  %2581 = vmatpush.bf16.msra.mxu1 %v7033_v5  ;;  %v6934_v0 = vld [vmem:[#allocation11 + $0x1d8] sm:$0xf0]  ;;  %v6745_v5 = vor.u32 %v9790_v59, %v6742_v60  ;;  %v10054_v59 = vld [vmem:[#allocation11 + $0x884] sm:$0xf] }
 0x199   :  { %v6937_v6 = vor.u32 %v9838_v63, %v6934_v0  ;;  %v7798_v60 = vld [vmem:[#allocation11 + $0x898] sm:$0xf0] }
 0x19a   :  { %2547 = vmatpush.bf16.msrb.mxu2 %v7485_v20  ;;  %2569 = vmatpush.bf16.msra.mxu0 %v6817_v22  ;;  %v10018_v20 = vld [vmem:[#allocation11 + $0x764] sm:$0xf] }
 0x19b   :  { %v10066_v22 = vld [vmem:[#allocation11 + $0x8e4] sm:$0xf] }
 0x19c   :  { %2560 = vmatpush.bf16.msrb.mxu3 %v7677_v21  ;;  %2582 = vmatpush.bf16.msra.mxu1 %v7009_v23  ;;  %v7654_v21 = vld [vmem:[#allocation11 + $0x778] sm:$0xf0] }
 0x19d   :  { %2548 = vmatmul.bf16.vlgmr.msrb.gmra.mxu2 %v11243_v26  ;;  %v7846_v23 = vld [vmem:[#allocation11 + $0x8f8] sm:$0xf0]  ;;  %v7657_v37 = vor.u32 %v10018_v20, %v7654_v21 }
 0x19e   :  { %2592 = vmatpush.bf16.msra.mxu2 %v7273_v27  ;;  %2570 = vmatpush.bf16.msra.mxu0 %v6793_v39  ;;  %v7177_v27 = vor.u32 %v9898_v14, %v7174_v17  ;;  %v7849_v38 = vor.u32 %v10066_v22, %v7846_v23  ;;  %v9940_v39 = vld [vmem:[#allocation11 + $0x4f4] sm:$0xf]  ;;  %v10101_v17 = vld [vmem:[#allocation14 + $0xf4] sm:$0xf0]  ;;  %v9994_v22 = vld [vmem:[#allocation11 + $0x6a4] sm:$0xf] }
 0x19f   :  { %2561 = vmatmul.bf16.vlgmr.msrb.gmra.mxu3 %v11245_v30  ;;  %v7972_v14 = vld [vmem:[#allocation14 + $0xf0] sm:$0xf]  ;;  %v7558_v23 = vld [vmem:[#allocation11 + $0x6b8] sm:$0xf0] }
 0x1a0   :  { %2605 = vmatpush.bf16.msra.mxu3 %v7465_v28  ;;  %2583 = vmatpush.bf16.msra.mxu1 %v6985_v40  ;;  %v7369_v28 = vor.u32 %v9946_v18, %v7366_v19  ;;  %v11291_v29 = vpop.f32.mrf.mxu2  ;;  %v7342_v40 = vld [vmem:[#allocation11 + $0x508] sm:$0xf0]  ;;  %v7105_v18 = vor.u32 %v9880_v1, %v7102_v2 }
 0x1a1   :  { %v7345_v47 = vor.u32 %v9940_v39, %v7342_v40  ;;  %v7561_v39 = vor.u32 %v9994_v22, %v7558_v23  ;;  %v10079_v1 = vld [vmem:[#allocation14 + $0x44] sm:$0xf0] }
 0x1a2   :  { %2593 = vmatpush.bf16.msra.mxu2 %v7249_v43  ;;  %2571 = vmatpush.bf16.msra.mxu0 %v6769_v57  ;;  %v11293_v32 = vpop.f32.mrf.mxu3  ;;  %v10060_v43 = vld [vmem:[#allocation11 + $0x8b4] sm:$0xf]  ;;  %v10006_v57 = vld [vmem:[#allocation11 + $0x704] sm:$0xf]  ;;  %v10095_v2 = vld [vmem:[#allocation14 + $0xc4] sm:$0xf0] }
 0x1a4   :  { %2606 = vmatpush.bf16.msra.mxu3 %v7441_v44  ;;  %2584 = vmatpush.bf16.msra.mxu1 %v6961_v58  ;;  %v7822_v44 = vld [vmem:[#allocation11 + $0x8c8] sm:$0xf0]  ;;  %v7606_v58 = vld [vmem:[#allocation11 + $0x718] sm:$0xf0] }
 0x1a5   :  { %v7825_v54 = vor.u32 %v10060_v43, %v7822_v44  ;;  %v7609_v4 = vor.u32 %v10006_v57, %v7606_v58  ;;  %v7901_v43 = vor.u32 %v10083_v35, %v7900_v34  ;;  %v7537_v57 = vor.u32 %v9988_v41, %v7534_v42  ;;  %v7868_v34 = vld [vmem:[#allocation14 + $0x20] sm:$0xf]  ;;  %v10075_v35 = vld [vmem:[#allocation14 + $0x24] sm:$0xf0] }
 0x1a6   :  { %2594 = vmatpush.bf16.msra.mxu2 %v7225_v61  ;;  %2572 = vmatpush.bf16.msra.mxu0 %v6745_v5  ;;  %v7129_v61 = vor.u32 %v9886_v49, %v7126_v51  ;;  %v7801_v5 = vor.u32 %v10054_v59, %v7798_v60  ;;  %v7892_v49 = vld [vmem:[#allocation14 + $0x50] sm:$0xf]  ;;  %v9982_v59 = vld [vmem:[#allocation11 + $0x644] sm:$0xf]  ;;  %v7510_v60 = vld [vmem:[#allocation11 + $0x658] sm:$0xf0] }
 0x1a7   :  { %v10115_v42 = vld [vmem:[#allocation14 + $0x164] sm:$0xf0] }
 0x1a8   :  { %2607 = vmatpush.bf16.msra.mxu3 %v7417_v62  ;;  %2585 = vmatpush.bf16.msra.mxu1 %v6937_v6  ;;  %v7321_v62 = vor.u32 %v9934_v55, %v7318_v56  ;;  %v2343_v63 = vpop.f32.mrf.mxu2  ;;  %v7294_v6 = vld [vmem:[#allocation11 + $0x4a8] sm:$0xf0]  ;;  %v7956_v55 = vld [vmem:[#allocation14 + $0xd0] sm:$0xf]  ;;  %v10097_v56 = vld [vmem:[#allocation14 + $0xd4] sm:$0xf0] }
 0x1a9   :  { %v7297_v19 = vor.u32 %v9928_v3, %v7294_v6  ;;  %v10030_v63 = vld [vmem:[#allocation11 + $0x7c4] sm:$0xf]  ;;  %v7513_v3 = vor.u32 %v9982_v59, %v7510_v60  ;;  %v7486_v6 = vld [vmem:[#allocation11 + $0x628] sm:$0xf0]  ;;  %v8084_v60 = vld [vmem:[#allocation14 + $0x1d0] sm:$0xf] }
 0x1aa   :  { %2595 = vmatpush.bf16.msra.mxu2 %v7201_v10  ;;  %2573 = vmatpush.bf16.msra.mxu0 %v6721_v24  ;;  %v2356_v0 = vpop.f32.mrf.mxu3  ;;  %v11297_v10 = vpop.f32.mrf.mxu0  ;;  %v7909_v24 = vor.u32 %v10085_v13, %v7908_v9  ;;  %v7876_v9 = vld [vmem:[#allocation14 + $0x30] sm:$0xf]  ;;  %v10077_v13 = vld [vmem:[#allocation14 + $0x34] sm:$0xf0] }
 0x1ab   :  { %v7702_v0 = vld [vmem:[#allocation11 + $0x7d8] sm:$0xf0] }
 0x1ac   :  { %2608 = vmatpush.bf16.msra.mxu3 %v7393_v11  ;;  %2586 = vmatpush.bf16.msra.mxu1 %v6913_v25  ;;  %v11299_v11 = vpop.f32.mrf.mxu1  ;;  %v7973_v25 = vor.u32 %v10101_v17, %v7972_v14  ;;  %v7940_v14 = vld [vmem:[#allocation14 + $0xb0] sm:$0xf]  ;;  %v10093_v17 = vld [vmem:[#allocation14 + $0xb4] sm:$0xf0] }
 0x1ad   :  { %2574 = vmatmul.bf16.vlgmr.msra.gmra.mxu0 %v11233_v45  ;;  %v10000_v45 = vld [vmem:[#allocation11 + $0x6d4] sm:$0xf] }
 0x1ae   :  { %2596 = vmatpush.bf16.msra.mxu2 %v7177_v27  ;;  %2618 = vmatpush.bf16.msrb.mxu0 %v7657_v37  ;;  %v7585_v20 = vor.u32 %v10000_v45, %v7582_v7  ;;  %v10042_v27 = vld [vmem:[#allocation11 + $0x824] sm:$0xf]  ;;  %v10024_v45 = vld [vmem:[#allocation11 + $0x794] sm:$0xf] }
 0x1af   :  { %2587 = vmatmul.bf16.vlgmr.msra.gmra.mxu1 %v11235_v50  ;;  %v10048_v50 = vld [vmem:[#allocation11 + $0x854] sm:$0xf]  ;;  %v7964_v37 = vld [vmem:[#allocation14 + $0xe0] sm:$0xf] }
 0x1b0   :  { %2609 = vmatpush.bf16.msra.mxu3 %v7369_v28  ;;  %2631 = vmatpush.bf16.msrb.mxu1 %v7849_v38  ;;  %v7777_v21 = vor.u32 %v10048_v50, %v7774_v8  ;;  %v7750_v28 = vld [vmem:[#allocation11 + $0x838] sm:$0xf0]  ;;  %v10099_v38 = vld [vmem:[#allocation14 + $0xe4] sm:$0xf0] }
 0x1b1   :  { %v7753_v40 = vor.u32 %v10042_v27, %v7750_v28  ;;  %v7965_v44 = vor.u32 %v10099_v38, %v7964_v37  ;;  %v7678_v8 = vld [vmem:[#allocation11 + $0x7a8] sm:$0xf0]  ;;  %v7932_v38 = vld [vmem:[#allocation14 + $0xa0] sm:$0xf] }
 0x1b2   :  { %2597 = vmatpush.bf16.msra.mxu2 %v7153_v46  ;;  %2619 = vmatpush.bf16.msrb.mxu0 %v7633_v52  ;;  %v10036_v46 = vld [vmem:[#allocation11 + $0x7f4] sm:$0xf]  ;;  %v2369_v51 = vpop.f32.mrf.mxu0  ;;  %v7681_v23 = vor.u32 %v10024_v45, %v7678_v8  ;;  %v10127_v45 = vld [vmem:[#allocation14 + $0x1c4] sm:$0xf0]  ;;  %v2644_v8 = vmax.f32 %v11276_v33, 0.0 }
 0x1b3   :  { %v7860_v51 = vld [vmem:[#allocation14 + $0x10] sm:$0xf] }
 0x1b4   :  { %2610 = vmatpush.bf16.msra.mxu3 %v7345_v47  ;;  %2632 = vmatpush.bf16.msrb.mxu1 %v7825_v54  ;;  %v7726_v47 = vld [vmem:[#allocation11 + $0x808] sm:$0xf0]  ;;  %v2382_v52 = vpop.f32.mrf.mxu1  ;;  %v10081_v54 = vld [vmem:[#allocation14 + $0x54] sm:$0xf0] }
 0x1b5   :  { %v7729_v58 = vor.u32 %v10036_v46, %v7726_v47  ;;  %v726_v46 = vperm.slane %v11271_v53, 2  ;;  %v7869_v47 = vor.u32 %v10075_v35, %v7868_v34  ;;  %v10073_v52 = vld [vmem:[#allocation14 + $0x14] sm:$0xf0]  ;;  %v10107_v35 = vld [vmem:[#allocation14 + $0x124] sm:$0xf0] }
 0x1b6   :  { %2598 = vmatpush.bf16.msra.mxu2 %v7129_v61  ;;  %2620 = vmatpush.bf16.msrb.mxu0 %v7609_v4  ;;  %v7893_v61 = vor.u32 %v10081_v54, %v7892_v49  ;;  %v7705_v4 = vor.u32 %v10030_v63, %v7702_v0  ;;  %v2316_v54 = vadd.f32 %v11285_v15, %v11281_v48  ;;  %v10113_v53 = vld [vmem:[#allocation14 + $0x154] sm:$0xf0]  ;;  %v7852_v15 = vld [vmem:[#allocation14] sm:$0xf] }
 0x1b8   :  { %2611 = vmatpush.bf16.msra.mxu3 %v7321_v62  ;;  %2633 = vmatpush.bf16.msrb.mxu1 %v7801_v5  ;;  %v7957_v62 = vor.u32 %v10097_v56, %v7956_v55  ;;  %v9976_v5 = vld [vmem:[#allocation11 + $0x614] sm:$0xf] }
 0x1b9   :  { %v7489_v22 = vor.u32 %v9976_v5, %v7486_v6  ;;  %v7924_v56 = vld [vmem:[#allocation14 + $0x90] sm:$0xf]  ;;  %v10111_v5 = vld [vmem:[#allocation14 + $0x144] sm:$0xf0]  ;;  %v8076_v6 = vld [vmem:[#allocation14 + $0x1c0] sm:$0xf] }
 0x1ba   :  { %2599 = vmatpush.bf16.msra.mxu2 %v7105_v18  ;;  %2621 = vmatpush.bf16.msrb.mxu0 %v7585_v20  ;;  %v8036_v18 = vld [vmem:[#allocation14 + $0x170] sm:$0xf] }
 0x1bb   :  { %v8100_v20 = vld [vmem:[#allocation14 + $0x1f0] sm:$0xf] }
 0x1bc   :  { %2612 = vmatpush.bf16.msra.mxu3 %v7297_v19  ;;  %2634 = vmatpush.bf16.msrb.mxu1 %v7777_v21  ;;  %v10117_v19 = vld [vmem:[#allocation14 + $0x174] sm:$0xf0] }
 0x1bd   :  { %2600 = vmatmul.bf16.vlgmr.msra.gmra.mxu2 %v11247_v31  ;;  %v7884_v31 = vld [vmem:[#allocation14 + $0x40] sm:$0xf]  ;;  %v10133_v21 = vld [vmem:[#allocation14 + $0x1f4] sm:$0xf0]  ;;  %v8037_v37 = vor.u32 %v10117_v19, %v8036_v18  ;;  %v8077_v18 = vor.u32 %v10127_v45, %v8076_v6  ;;  %v10098_v6 = vld [vmem:[#allocation14 + $0xe4] sm:$0xf] }
 0x1be   :  { %3238 = vmatpush.bf16.msrb.mxu2 %v7909_v24  ;;  %2622 = vmatpush.bf16.msrb.mxu0 %v7561_v39  ;;  %v7885_v7 = vor.u32 %v10079_v1, %v7884_v31  ;;  %v7877_v24 = vor.u32 %v10077_v13, %v7876_v9  ;;  %v10091_v39 = vld [vmem:[#allocation14 + $0xa4] sm:$0xf0]  ;;  %v8101_v41 = vor.u32 %v10133_v21, %v8100_v20  ;;  %v10109_v19 = vld [vmem:[#allocation14 + $0x134] sm:$0xf0]  ;;  %v8068_v20 = vld [vmem:[#allocation14 + $0x1b0] sm:$0xf] }
 0x1bf   :  { %2613 = vmatmul.bf16.vlgmr.msra.gmra.mxu3 %v11249_v36  ;;  %v7948_v36 = vld [vmem:[#allocation14 + $0xc0] sm:$0xf]  ;;  %v7933_v49 = vor.u32 %v10091_v39, %v7932_v38  ;;  %v10071_v31 = vld [vmem:[#allocation14 + $0x4] sm:$0xf0]  ;;  %v2329_v1 = vadd.f32 %v11287_v16, %v2316_v54  ;;  %v10125_v21 = vld [vmem:[#allocation14 + $0x1b4] sm:$0xf0] }
 0x1c0   :  { %3251 = vmatpush.bf16.msrb.mxu3 %v7973_v25  ;;  %2635 = vmatpush.bf16.msrb.mxu1 %v7753_v40  ;;  %v7949_v50 = vor.u32 %v10095_v2, %v7948_v36  ;;  %v7941_v25 = vor.u32 %v10093_v17, %v7940_v14  ;;  %v11303_v27 = vpop.f32.mrf.mxu2  ;;  %v8028_v40 = vld [vmem:[#allocation14 + $0x160] sm:$0xf]  ;;  %v7853_v16 = vor.u32 %v10071_v31, %v7852_v15  ;;  %v8004_v17 = vld [vmem:[#allocation14 + $0x130] sm:$0xf]  ;;  %v10123_v38 = vld [vmem:[#allocation14 + $0x1a4] sm:$0xf0] }
 0x1c1   :  { %v8029_v55 = vor.u32 %v10115_v42, %v8028_v40  ;;  %v7916_v2 = vld [vmem:[#allocation14 + $0x80] sm:$0xf]  ;;  %v2645_v13 = vmax.f32 %v2329_v1, 0.0  ;;  %v8069_v34 = vor.u32 %v10125_v21, %v8068_v20  ;;  %v10105_v42 = vld [vmem:[#allocation14 + $0x114] sm:$0xf0] }
 0x1c2   :  { %3239 = vmatpush.bf16.msrb.mxu2 %v7901_v43  ;;  %2623 = vmatpush.bf16.msrb.mxu0 %v7537_v57  ;;  %v11305_v28 = vpop.f32.mrf.mxu3  ;;  %v8092_v43 = vld [vmem:[#allocation14 + $0x1e0] sm:$0xf]  ;;  %v10089_v57 = vld [vmem:[#allocation14 + $0x94] sm:$0xf0]  ;;  %v7966_v45 = vld [vmem:[#allocation14 + $0xe8] sm:$0xf0] }
 0x1c3   :  { %v7925_v63 = vor.u32 %v10089_v57, %v7924_v56  ;;  %v11323_v33 = vpack.c.bf16 %v2645_v13, %v2645_v13  ;;  %v11329_v54 = vld [vmem:[#allocation12] sm:$0x3f]  ;;  %v7980_v56 = vld [vmem:[#allocation14 + $0x100] sm:$0xf]  ;;  %v10103_v57 = vld [vmem:[#allocation14 + $0x104] sm:$0xf0] }
 0x1c4   :  { %3252 = vmatpush.bf16.msrb.mxu3 %v7965_v44  ;;  %2636 = vmatpush.bf16.msrb.mxu1 %v7729_v58  ;;  %v10131_v44 = vld [vmem:[#allocation14 + $0x1e4] sm:$0xf0]  ;;  %v8020_v58 = vld [vmem:[#allocation14 + $0x150] sm:$0xf]  ;;  %v7981_v31 = vor.u32 %v10103_v57, %v7980_v56  ;;  %v7894_v20 = vld [vmem:[#allocation14 + $0x58] sm:$0xf0] }
 0x1c5   :  { %v8093_v59 = vor.u32 %v10131_v44, %v8092_v43  ;;  %v8021_v36 = vor.u32 %v10113_v53, %v8020_v58  ;;  %v8052_v44 = vld [vmem:[#allocation14 + $0x190] sm:$0xf]  ;;  %v8044_v53 = vld [vmem:[#allocation14 + $0x180] sm:$0xf]  ;;  %v10096_v21 = vld [vmem:[#allocation14 + $0xd4] sm:$0xf] }
 0x1c6   :  { %3240 = vmatpush.bf16.msrb.mxu2 %v7893_v61  ;;  %2624 = vmatpush.bf16.msrb.mxu0 %v7513_v3  ;;  %v10129_v61 = vld [vmem:[#allocation14 + $0x1d4] sm:$0xf0]  ;;  %v8012_v3 = vld [vmem:[#allocation14 + $0x140] sm:$0xf]  ;;  %v10076_v56 = vld [vmem:[#allocation14 + $0x34] sm:$0xf] }
 0x1c7   :  { %v8013_v14 = vor.u32 %v10111_v5, %v8012_v3 }
 0x1c8   :  { %3253 = vmatpush.bf16.msrb.mxu3 %v7957_v62  ;;  %2637 = vmatpush.bf16.msrb.mxu1 %v7705_v4  ;;  %v7861_v62 = vor.u32 %v10073_v52, %v7860_v51  ;;  %v2395_v0 = vpop.f32.mrf.mxu2  ;;  %v2342_v4 = vadd.f32 %v11291_v29, %v726_v46  ;;  %v10149_v51 = vld [vmem:[#allocation14 + $0x274] sm:$0xf0] }
 0x1c9   :  { %v10100_v0 = vld [vmem:[#allocation14 + $0xf4] sm:$0xf] }
 0x1ca   :  { %3241 = vmatpush.bf16.msrb.mxu2 %v7885_v7  ;;  %2625 = vmatpush.bf16.msrb.mxu0 %v7489_v22  ;;  %v2408_v48 = vpop.f32.mrf.mxu3  ;;  %v11314_v7 = vpop.f32.mrf.mxu0  ;;  %v2355_v29 = vadd.f32 %v11293_v32, %v2342_v4  ;;  %v11320_v22 = vpack.c.bf16 %v2644_v8, %v2644_v8  ;;  %v8148_v8 = vld [vmem:[#allocation14 + $0x250] sm:$0xf] }
 0x1cb   :  { %v7974_v48 = vld [vmem:[#allocation14 + $0xf8] sm:$0xf0] }
 0x1cc   :  { %3254 = vmatpush.bf16.msrb.mxu3 %v7949_v50  ;;  %2638 = vmatpush.bf16.msrb.mxu1 %v7681_v23  ;;  %v11316_v50 = vpop.f32.mrf.mxu1  ;;  %v2368_v23 = vadd.f32 %v11297_v10, %v2355_v29  ;;  %v7977_v5 = vor.u32 %v10100_v0, %v7974_v48  ;;  %v10080_v29 = vld [vmem:[#allocation14 + $0x54] sm:$0xf]  ;;  %v10090_v0 = vld [vmem:[#allocation14 + $0xa4] sm:$0xf]  ;;  %v8116_v48 = vld [vmem:[#allocation14 + $0x210] sm:$0xf] }
 0x1cd   :  { %2626 = vmatmul.bf16.vlgmr.msrb.gmra.mxu0 %v11243_v26  ;;  %v10087_v26 = vld [vmem:[#allocation14 + $0x84] sm:$0xf0] }
 0x1ce   :  { %3242 = vmatpush.bf16.msrb.mxu2 %v7877_v24  ;;  %3264 = vmatpush.bf16.msra.mxu0 %v8037_v37  ;;  %v7917_v9 = vor.u32 %v10087_v26, %v7916_v2  ;;  %v8005_v24 = vor.u32 %v10109_v19, %v8004_v17  ;;  %v8060_v37 = vld [vmem:[#allocation14 + $0x1a0] sm:$0xf]  ;;  %v2381_v10 = vadd.f32 %v11299_v11, %v2368_v23  ;;  %v10143_v17 = vld [vmem:[#allocation14 + $0x244] sm:$0xf0]  ;;  %v7958_v23 = vld [vmem:[#allocation14 + $0xd8] sm:$0xf0] }
 0x1cf   :  { %2639 = vmatmul.bf16.vlgmr.msrb.gmra.mxu1 %v11245_v30  ;;  %v8085_v30 = vor.u32 %v10129_v61, %v8084_v60  ;;  %v8061_v43 = vor.u32 %v10123_v38, %v8060_v37  ;;  %v10119_v61 = vld [vmem:[#allocation14 + $0x184] sm:$0xf0]  ;;  %v7969_v19 = vor.u32 %v10098_v6, %v7966_v45  ;;  %v10078_v38 = vld [vmem:[#allocation14 + $0x44] sm:$0xf]  ;;  %v10072_v6 = vld [vmem:[#allocation14 + $0x14] sm:$0xf] }
 0x1d0   :  { %3255 = vmatpush.bf16.msrb.mxu3 %v7941_v25  ;;  %3277 = vmatpush.bf16.msra.mxu1 %v8101_v41  ;;  %v7996_v25 = vld [vmem:[#allocation14 + $0x120] sm:$0xf]  ;;  %v7988_v41 = vld [vmem:[#allocation14 + $0x110] sm:$0xf]  ;;  %v2394_v46 = vadd.f32 %v11303_v27, %v2381_v10  ;;  %v8045_v1 = vor.u32 %v10119_v61, %v8044_v53  ;;  %v7950_v10 = vld [vmem:[#allocation14 + $0xc8] sm:$0xf0] }
 0x1d1   :  { %v7997_v40 = vor.u32 %v10107_v35, %v7996_v25  ;;  %v7989_v11 = vor.u32 %v10105_v42, %v7988_v41  ;;  %v8156_v27 = vld [vmem:[#allocation14 + $0x260] sm:$0xf]  ;;  %v10141_v41 = vld [vmem:[#allocation14 + $0x234] sm:$0xf0]  ;;  %v7942_v53 = vld [vmem:[#allocation14 + $0xb8] sm:$0xf0] }
 0x1d2   :  { %3243 = vmatpush.bf16.msrb.mxu2 %v7869_v47  ;;  %3265 = vmatpush.bf16.msra.mxu0 %v8029_v55  ;;  %v2421_v32 = vpop.f32.mrf.mxu0  ;;  %v10121_v47 = vld [vmem:[#allocation14 + $0x194] sm:$0xf0]  ;;  %v727_v55 = vperm.slane %v11329_v54, 3  ;;  %v2407_v60 = vadd.f32 %v11305_v28, %v2394_v46  ;;  %v7902_v28 = vld [vmem:[#allocation14 + $0x68] sm:$0xf0] }
 0x1d3   :  { %v8053_v58 = vor.u32 %v10121_v47, %v8052_v44  ;;  %v7886_v32 = vld [vmem:[#allocation14 + $0x48] sm:$0xf0]  ;;  %v7862_v45 = vld [vmem:[#allocation14 + $0x18] sm:$0xf0] }
 0x1d4   :  { %3256 = vmatpush.bf16.msrb.mxu3 %v7933_v49  ;;  %3278 = vmatpush.bf16.msra.mxu1 %v8093_v59  ;;  %v2434_v39 = vpop.f32.mrf.mxu1  ;;  %v8164_v49 = vld [vmem:[#allocation14 + $0x270] sm:$0xf]  ;;  %v10084_v59 = vld [vmem:[#allocation14 + $0x74] sm:$0xf]  ;;  %v2646_v2 = vmax.f32 %v2407_v60, 0.0  ;;  %v2420_v26 = vadd.f32 %v11314_v7, %v727_v55 }
 0x1d5   :  { %v8165_v52 = vor.u32 %v10149_v51, %v8164_v49  ;;  %v10094_v39 = vld [vmem:[#allocation14 + $0xc4] sm:$0xf]  ;;  %v7889_v49 = vor.u32 %v10078_v38, %v7886_v32  ;;  %v10139_v55 = vld [vmem:[#allocation14 + $0x224] sm:$0xf0] }
 0x1d6   :  { %3244 = vmatpush.bf16.msrb.mxu2 %v7861_v62  ;;  %3266 = vmatpush.bf16.msra.mxu0 %v8021_v36  ;;  %v10147_v62 = vld [vmem:[#allocation14 + $0x264] sm:$0xf0]  ;;  %v10082_v36 = vld [vmem:[#allocation14 + $0x64] sm:$0xf]  ;;  %v2433_v7 = vadd.f32 %v11316_v50, %v2420_v26  ;;  %v7961_v50 = vor.u32 %v10096_v21, %v7958_v23  ;;  %v7953_v51 = vor.u32 %v10094_v39, %v7950_v10 }
 0x1d7   :  { %v8157_v15 = vor.u32 %v10147_v62, %v8156_v27  ;;  %v7905_v13 = vor.u32 %v10082_v36, %v7902_v28  ;;  %v10074_v27 = vld [vmem:[#allocation14 + $0x24] sm:$0xf]  ;;  %v7870_v62 = vld [vmem:[#allocation14 + $0x28] sm:$0xf0]  ;;  %v10135_v26 = vld [vmem:[#allocation14 + $0x204] sm:$0xf0] }
 0x1d8   :  { %3257 = vmatpush.bf16.msrb.mxu3 %v7925_v63  ;;  %3279 = vmatpush.bf16.msra.mxu1 %v8085_v30  ;;  %v7910_v63 = vld [vmem:[#allocation14 + $0x78] sm:$0xf0]  ;;  %v10086_v23 = vld [vmem:[#allocation14 + $0x84] sm:$0xf] }
 0x1d9   :  { %v7913_v3 = vor.u32 %v10084_v59, %v7910_v63  ;;  %v10092_v59 = vld [vmem:[#allocation14 + $0xb4] sm:$0xf]  ;;  %v8038_v28 = vld [vmem:[#allocation14 + $0x178] sm:$0xf0] }
 0x1da   :  { %3245 = vmatpush.bf16.msrb.mxu2 %v7853_v16  ;;  %3267 = vmatpush.bf16.msra.mxu0 %v8013_v14  ;;  %v10145_v16 = vld [vmem:[#allocation14 + $0x254] sm:$0xf0]  ;;  %v8140_v14 = vld [vmem:[#allocation14 + $0x240] sm:$0xf]  ;;  %v7945_v63 = vor.u32 %v10092_v59, %v7942_v53  ;;  %v10142_v53 = vld [vmem:[#allocation14 + $0x244] sm:$0xf] }
 0x1dc   :  { %3258 = vmatpush.bf16.msrb.mxu3 %v7917_v9  ;;  %3280 = vmatpush.bf16.msra.mxu1 %v8077_v18  ;;  %v8149_v9 = vor.u32 %v10145_v16, %v8148_v8  ;;  %v11334_v18 = vpack.c.bf16 %v2646_v2, %v2646_v2  ;;  %v8108_v2 = vld [vmem:[#allocation14 + $0x200] sm:$0xf] }
 0x1dd   :  { %3246 = vmatmul.bf16.vlgmr.msrb.gmra.mxu2 %v11320_v22  ;;  %v8109_v16 = vor.u32 %v10135_v26, %v8108_v2  ;;  %v10140_v2 = vld [vmem:[#allocation14 + $0x234] sm:$0xf]  ;;  %v8134_v26 = vld [vmem:[#allocation14 + $0x238] sm:$0xf0] }
 0x1de   :  { %3268 = vmatpush.bf16.msra.mxu0 %v8005_v24  ;;  %3290 = vmatpush.bf16.msra.mxu2 %v8165_v52  ;;  %v8141_v24 = vor.u32 %v10143_v17, %v8140_v14  ;;  %v8124_v52 = vld [vmem:[#allocation14 + $0x220] sm:$0xf]  ;;  %v10114_v17 = vld [vmem:[#allocation14 + $0x164] sm:$0xf] }
 0x1df   :  { %3259 = vmatmul.bf16.vlgmr.msrb.gmra.mxu3 %v11323_v33  ;;  %v8125_v57 = vor.u32 %v10139_v55, %v8124_v52  ;;  %v8150_v52 = vld [vmem:[#allocation14 + $0x258] sm:$0xf0]  ;;  %v10110_v55 = vld [vmem:[#allocation14 + $0x144] sm:$0xf] }
 0x1e0   :  { %3281 = vmatpush.bf16.msra.mxu1 %v8069_v34  ;;  %v2445_v30 = vpop.f32.mrf.mxu2  ;;  %v7897_v34 = vor.u32 %v10080_v29, %v7894_v20  ;;  %v7865_v29 = vor.u32 %v10072_v6, %v7862_v45  ;;  %v7854_v20 = vld [vmem:[#allocation14 + $0x8] sm:$0xf0]  ;;  %v10159_v6 = vld [vmem:[#allocation14 + $0x2c4] sm:$0xf0]  ;;  %v10164_v45 = vld [vmem:[#allocation14 + $0x2f4] sm:$0xf] }
 0x1e1   :  { %v2446_v25 = vadd.f32 %v2445_v30, %v2433_v7  ;;  %v8030_v7 = vld [vmem:[#allocation14 + $0x168] sm:$0xf0] }
 0x1e2   :  { %3269 = vmatpush.bf16.msra.mxu0 %v7997_v40  ;;  %v2458_v4 = vpop.f32.mrf.mxu3  ;;  %3291 = vmatpush.bf16.msra.mxu2 %v8157_v15  ;;  %v8132_v40 = vld [vmem:[#allocation14 + $0x230] sm:$0xf]  ;;  %v10137_v15 = vld [vmem:[#allocation14 + $0x214] sm:$0xf0] }
 0x1e3   :  { %v2459_v42 = vadd.f32 %v2458_v4, %v2446_v25  ;;  %v8117_v36 = vor.u32 %v10137_v15, %v8116_v48  ;;  %v10116_v4 = vld [vmem:[#allocation14 + $0x174] sm:$0xf]  ;;  %v8212_v15 = vld [vmem:[#allocation14 + $0x2d0] sm:$0xf] }
 0x1e4   :  { %3282 = vmatpush.bf16.msra.mxu1 %v8061_v43  ;;  %v8133_v43 = vor.u32 %v10141_v41, %v8132_v40  ;;  %v8041_v14 = vor.u32 %v10116_v4, %v8038_v28  ;;  %v10148_v25 = vld [vmem:[#allocation14 + $0x274] sm:$0xf]  ;;  %v8158_v40 = vld [vmem:[#allocation14 + $0x268] sm:$0xf0]  ;;  %v8204_v28 = vld [vmem:[#allocation14 + $0x2c0] sm:$0xf] }
 0x1e5   :  { %v10112_v41 = vld [vmem:[#allocation14 + $0x154] sm:$0xf]  ;;  %v7998_v4 = vld [vmem:[#allocation14 + $0x128] sm:$0xf0] }
 0x1e6   :  { %3270 = vmatpush.bf16.msra.mxu0 %v7989_v11  ;;  %3292 = vmatpush.bf16.msra.mxu2 %v8149_v9  ;;  %v7878_v11 = vld [vmem:[#allocation14 + $0x38] sm:$0xf0]  ;;  %v10088_v9 = vld [vmem:[#allocation14 + $0x94] sm:$0xf] }
 0x1e7   :  { %v7881_v61 = vor.u32 %v10076_v56, %v7878_v11  ;;  %v8014_v56 = vld [vmem:[#allocation14 + $0x148] sm:$0xf0] }
 0x1e8   :  { %3283 = vmatpush.bf16.msra.mxu1 %v8053_v58  ;;  %v2447_v35 = vpop.f32.mrf.mxu2  ;;  %v8017_v11 = vor.u32 %v10110_v55, %v8014_v56  ;;  %v10160_v55 = vld [vmem:[#allocation14 + $0x2d4] sm:$0xf]  ;;  %v8180_v56 = vld [vmem:[#allocation14 + $0x290] sm:$0xf] }
 0x1e9   :  { %v8033_v35 = vor.u32 %v10114_v17, %v8030_v7  ;;  %v10138_v17 = vld [vmem:[#allocation14 + $0x224] sm:$0xf]  ;;  %v8126_v7 = vld [vmem:[#allocation14 + $0x228] sm:$0xf0] }
 0x1ea   :  { %3271 = vmatpush.bf16.msra.mxu0 %v7981_v31  ;;  %v2460_v37 = vpop.f32.mrf.mxu3  ;;  %3293 = vmatpush.bf16.msra.mxu2 %v8141_v24  ;;  %v2471_v44 = vpop.f32.mrf.mxu0  ;;  %v7918_v24 = vld [vmem:[#allocation14 + $0x88] sm:$0xf0] }
 0x1eb   :  { %v2472_v47 = vadd.f32 %v2471_v44, %v2459_v42  ;;  %v7921_v38 = vor.u32 %v10086_v23, %v7918_v24  ;;  %v8022_v42 = vld [vmem:[#allocation14 + $0x158] sm:$0xf0]  ;;  %v8228_v44 = vld [vmem:[#allocation14 + $0x2f0] sm:$0xf]  ;;  %v10157_v23 = vld [vmem:[#allocation14 + $0x2b4] sm:$0xf0] }
 0x1ec   :  { %3284 = vmatpush.bf16.msra.mxu1 %v8045_v1  ;;  %v2484_v46 = vpop.f32.mrf.mxu1  ;;  %v7934_v1 = vld [vmem:[#allocation14 + $0xa8] sm:$0xf0]  ;;  %v10162_v24 = vld [vmem:[#allocation14 + $0x2e4] sm:$0xf] }
 0x1ed   :  { %3272 = vmatmul.bf16.vlgmr.msra.gmra.mxu0 %v11334_v18  ;;  %v2485_v58 = vadd.f32 %v2484_v46, %v2472_v47  ;;  %v7937_v8 = vor.u32 %v10090_v0, %v7934_v1  ;;  %v10165_v46 = vld [vmem:[#allocation14 + $0x2f4] sm:$0xf0]  ;;  %v8006_v0 = vld [vmem:[#allocation14 + $0x138] sm:$0xf0] }
 0x1ee   :  { %3316 = vmatpush.bf16.msrb.mxu0 %v7913_v3  ;;  %3294 = vmatpush.bf16.msra.mxu2 %v8133_v43  ;;  %v8025_v43 = vor.u32 %v10112_v41, %v8022_v42  ;;  %v8188_v42 = vld [vmem:[#allocation14 + $0x2a0] sm:$0xf] }
 0x1ef   :  { %v2647_v60 = vmax.f32 %v2485_v58, 0.0  ;;  %v10163_v58 = vld [vmem:[#allocation14 + $0x2e4] sm:$0xf0] }
 0x1f0   :  { %3329 = vmatpush.bf16.msrb.mxu1 %v7977_v5  ;;  %v7873_v5 = vor.u32 %v10074_v27, %v7870_v62  ;;  %v8142_v62 = vld [vmem:[#allocation14 + $0x248] sm:$0xf0] }
 0x1f1   :  { %v11338_v31 = vpack.c.bf16 %v2647_v60, %v2647_v60 }
 0x1f2   :  { %3317 = vmatpush.bf16.msrb.mxu0 %v7905_v13  ;;  %3295 = vmatpush.bf16.msra.mxu2 %v8125_v57  ;;  %v2473_v3 = vpop.f32.mrf.mxu0  ;;  %v7926_v13 = vld [vmem:[#allocation14 + $0x98] sm:$0xf0]  ;;  %v8220_v57 = vld [vmem:[#allocation14 + $0x2e0] sm:$0xf] }
 0x1f3   :  { %3285 = vmatmul.bf16.vlgmr.msra.gmra.mxu1 %v11338_v31  ;;  %v7929_v21 = vor.u32 %v10088_v9, %v7926_v13  ;;  %v8221_v60 = vor.u32 %v10163_v58, %v8220_v57  ;;  %v728_v13 = vperm.slane %v11329_v54, 4  ;;  %v8110_v57 = vld [vmem:[#allocation14 + $0x208] sm:$0xf0] }
 0x1f4   :  { %3330 = vmatpush.bf16.msrb.mxu1 %v7969_v19  ;;  %v2486_v30 = vpop.f32.mrf.mxu1  ;;  %v10070_v19 = vld [vmem:[#allocation14 + $0x4] sm:$0xf] }
 0x1f5   :  { %v7857_v37 = vor.u32 %v10070_v19, %v7854_v20  ;;  %v10106_v30 = vld [vmem:[#allocation14 + $0x124] sm:$0xf]  ;;  %v7990_v19 = vld [vmem:[#allocation14 + $0x118] sm:$0xf0] }
 0x1f6   :  { %3318 = vmatpush.bf16.msrb.mxu0 %v7897_v34  ;;  %3296 = vmatpush.bf16.msra.mxu2 %v8117_v36  ;;  %v8166_v34 = vld [vmem:[#allocation14 + $0x278] sm:$0xf0] }
 0x1f7   :  { %v8169_v32 = vor.u32 %v10148_v25, %v8166_v34  ;;  %v8222_v34 = vld [vmem:[#allocation14 + $0x2e8] sm:$0xf0] }
 0x1f8   :  { %3331 = vmatpush.bf16.msrb.mxu1 %v7961_v50  ;;  %v10146_v50 = vld [vmem:[#allocation14 + $0x264] sm:$0xf]  ;;  %v8225_v41 = vor.u32 %v10162_v24, %v8222_v34 }
 0x1f9   :  { %v8161_v47 = vor.u32 %v10146_v50, %v8158_v40  ;;  %v8129_v40 = vor.u32 %v10138_v17, %v8126_v7 }
 0x1fa   :  { %3319 = vmatpush.bf16.msrb.mxu0 %v7889_v49  ;;  %3297 = vmatpush.bf16.msra.mxu2 %v8109_v16  ;;  %v10144_v49 = vld [vmem:[#allocation14 + $0x254] sm:$0xf]  ;;  %v8205_v16 = vor.u32 %v10159_v6, %v8204_v28 }
 0x1fb   :  { %v8153_v59 = vor.u32 %v10144_v49, %v8150_v52 }
 0x1fc   :  { %3332 = vmatpush.bf16.msrb.mxu1 %v7953_v51  ;;  %v8229_v51 = vor.u32 %v10165_v46, %v8228_v44  ;;  %v10136_v44 = vld [vmem:[#allocation14 + $0x214] sm:$0xf]  ;;  %v8118_v46 = vld [vmem:[#allocation14 + $0x218] sm:$0xf0] }
 0x1fd   :  { %v8121_v52 = vor.u32 %v10136_v44, %v8118_v46  ;;  %v10122_v44 = vld [vmem:[#allocation14 + $0x1a4] sm:$0xf]  ;;  %v8062_v46 = vld [vmem:[#allocation14 + $0x1a8] sm:$0xf0] }
 0x1fe   :  { %3320 = vmatpush.bf16.msrb.mxu0 %v7881_v61  ;;  %3342 = vmatpush.bf16.msrb.mxu2 %v8041_v14  ;;  %v8137_v14 = vor.u32 %v10140_v2, %v8134_v26  ;;  %v8102_v26 = vld [vmem:[#allocation14 + $0x1f8] sm:$0xf0] }
 0x1ff   :  { %3303 = vmatpush.bf16.msra.mxu3 %v8229_v51 }
 0x200   :  { %3333 = vmatpush.bf16.msrb.mxu1 %v7945_v63  ;;  %v11341_v39 = vpop.f32.mrf.mxu2  ;;  %v10108_v63 = vld [vmem:[#allocation14 + $0x134] sm:$0xf] }
 0x201   :  { %v8009_v48 = vor.u32 %v10108_v63, %v8006_v0 }
 0x202   :  { %3321 = vmatpush.bf16.msrb.mxu0 %v7873_v5  ;;  %v11343_v10 = vpop.f32.mrf.mxu3  ;;  %3343 = vmatpush.bf16.msrb.mxu2 %v8033_v35  ;;  %v8001_v5 = vor.u32 %v10106_v30, %v7998_v4  ;;  %v10102_v35 = vld [vmem:[#allocation14 + $0x104] sm:$0xf]  ;;  %v8198_v4 = vld [vmem:[#allocation14 + $0x2b8] sm:$0xf0] }
 0x203   :  { %3304 = vmatpush.bf16.msra.mxu3 %v8221_v60 }
 0x204   :  { %3334 = vmatpush.bf16.msrb.mxu1 %v7937_v8  ;;  %v8230_v8 = vld [vmem:[#allocation14 + $0x2f8] sm:$0xf0] }
 0x205   :  { %v8233_v9 = vor.u32 %v10164_v45, %v8230_v8  ;;  %v8094_v45 = vld [vmem:[#allocation14 + $0x1e8] sm:$0xf0] }
 0x206   :  { %3322 = vmatpush.bf16.msrb.mxu0 %v7865_v29  ;;  %3344 = vmatpush.bf16.msrb.mxu2 %v8025_v43  ;;  %v10104_v29 = vld [vmem:[#allocation14 + $0x114] sm:$0xf]  ;;  %v10155_v43 = vld [vmem:[#allocation14 + $0x2a4] sm:$0xf0] }
 0x207   :  { %v7993_v20 = vor.u32 %v10104_v29, %v7990_v19  ;;  %v8189_v49 = vor.u32 %v10155_v43, %v8188_v42  ;;  %v10128_v29 = vld [vmem:[#allocation14 + $0x1d4] sm:$0xf]  ;;  %v8086_v19 = vld [vmem:[#allocation14 + $0x1d8] sm:$0xf0] }
 0x208   :  { %3335 = vmatpush.bf16.msrb.mxu1 %v7929_v21  ;;  %v2499_v61 = vpop.f32.mrf.mxu2  ;;  %v8196_v21 = vld [vmem:[#allocation14 + $0x2b0] sm:$0xf]  ;;  %v8070_v42 = vld [vmem:[#allocation14 + $0x1b8] sm:$0xf0] }
 0x209   :  { %v8197_v25 = vor.u32 %v10157_v23, %v8196_v21  ;;  %v8089_v21 = vor.u32 %v10128_v29, %v8086_v19  ;;  %v8182_v23 = vld [vmem:[#allocation14 + $0x298] sm:$0xf0] }
 0x20a   :  { %3323 = vmatpush.bf16.msrb.mxu0 %v7857_v37  ;;  %v2512_v27 = vpop.f32.mrf.mxu3  ;;  %3345 = vmatpush.bf16.msrb.mxu2 %v8017_v11  ;;  %v2523_v1 = vpop.f32.mrf.mxu0  ;;  %v7982_v37 = vld [vmem:[#allocation14 + $0x108] sm:$0xf0]  ;;  %v10134_v11 = vld [vmem:[#allocation14 + $0x204] sm:$0xf] }
 0x20b   :  { %v8113_v61 = vor.u32 %v10134_v11, %v8110_v57  ;;  %v10158_v27 = vld [vmem:[#allocation14 + $0x2c4] sm:$0xf]  ;;  %v8046_v57 = vld [vmem:[#allocation14 + $0x188] sm:$0xf0] }
 0x20c   :  { %3336 = vmatpush.bf16.msrb.mxu1 %v7921_v38  ;;  %v11347_v36 = vpop.f32.mrf.mxu1  ;;  %v2498_v38 = vadd.f32 %v11341_v39, %v728_v13  ;;  %v8214_v39 = vld [vmem:[#allocation14 + $0x2d8] sm:$0xf0]  ;;  %v10118_v11 = vld [vmem:[#allocation14 + $0x184] sm:$0xf] }
 0x20d   :  { %3324 = vmatmul.bf16.vlgmr.msrb.gmra.mxu0 %v11320_v22  ;;  %v10161_v22 = vld [vmem:[#allocation14 + $0x2d4] sm:$0xf0]  ;;  %v8217_v58 = vor.u32 %v10160_v55, %v8214_v39  ;;  %v8054_v55 = vld [vmem:[#allocation14 + $0x198] sm:$0xf0] }
 0x20e   :  { %3368 = vmatpush.bf16.msra.mxu0 %v8169_v32  ;;  %v8213_v3 = vor.u32 %v10161_v22, %v8212_v15  ;;  %3346 = vmatpush.bf16.msrb.mxu2 %v8009_v48  ;;  %v2511_v51 = vadd.f32 %v11343_v10, %v2498_v38  ;;  %v8172_v15 = vld [vmem:[#allocation14 + $0x280] sm:$0xf]  ;;  %v10151_v22 = vld [vmem:[#allocation14 + $0x284] sm:$0xf0]  ;;  %v10150_v38 = vld [vmem:[#allocation14 + $0x284] sm:$0xf] }
 0x20f   :  { %3337 = vmatmul.bf16.vlgmr.msrb.gmra.mxu1 %v11323_v33  ;;  %v8145_v33 = vor.u32 %v10142_v53, %v8142_v62  ;;  %v8206_v62 = vld [vmem:[#allocation14 + $0x2c8] sm:$0xf0]  ;;  %v8173_v2 = vor.u32 %v10151_v22, %v8172_v15 }
 0x210   :  { %3305 = vmatpush.bf16.msra.mxu3 %v8213_v3  ;;  %3381 = vmatpush.bf16.msra.mxu1 %v8233_v9  ;;  %v2524_v53 = vadd.f32 %v2523_v1, %v2511_v51  ;;  %v8209_v63 = vor.u32 %v10158_v27, %v8206_v62  ;;  %v10132_v1 = vld [vmem:[#allocation14 + $0x1f4] sm:$0xf]  ;;  %v8190_v9 = vld [vmem:[#allocation14 + $0x2a8] sm:$0xf0]  ;;  %v8065_v51 = vor.u32 %v10122_v44, %v8062_v46 }
 0x211   :  { %v10156_v3 = vld [vmem:[#allocation14 + $0x2b4] sm:$0xf]  ;;  %v8105_v30 = vor.u32 %v10132_v1, %v8102_v26  ;;  %v2752_v1 = vld [vmem:[#allocation15] sm:$0x3] }
 0x212   :  { %3369 = vmatpush.bf16.msra.mxu0 %v8161_v47  ;;  %3347 = vmatpush.bf16.msrb.mxu2 %v8001_v5  ;;  %v2525_v32 = vpop.f32.mrf.mxu0  ;;  %v7985_v47 = vor.u32 %v10102_v35, %v7982_v37  ;;  %v2537_v10 = vadd.f32 %v11347_v36, %v2524_v53  ;;  %v8201_v5 = vor.u32 %v10156_v3, %v8198_v4  ;;  %v10130_v36 = vld [vmem:[#allocation14 + $0x1e4] sm:$0xf]  ;;  %v8078_v37 = vld [vmem:[#allocation14 + $0x1c8] sm:$0xf0]  ;;  %v2754_v26 = vperm.slane %v2752_v1, 0 }
 0x213   :  { %v8097_v8 = vor.u32 %v10130_v36, %v8094_v45  ;;  %v10126_v35 = vld [vmem:[#allocation14 + $0x1c4] sm:$0xf]  ;;  %v8382_v44 = vld [vmem:[#allocation18 + $0x138] sm:$0xf0] }
 0x214   :  { %3306 = vmatpush.bf16.msra.mxu3 %v8205_v16  ;;  %v2538_v50 = vpop.f32.mrf.mxu1  ;;  %3382 = vmatpush.bf16.msra.mxu1 %v8225_v41  ;;  %v10154_v16 = vld [vmem:[#allocation14 + $0x2a4] sm:$0xf]  ;;  %v8081_v32 = vor.u32 %v10126_v35, %v8078_v37  ;;  %v10124_v41 = vld [vmem:[#allocation14 + $0x1b4] sm:$0xf]  ;;  %v10208_v35 = vld [vmem:[#allocation18 + $0x154] sm:$0xf] }
 0x215   :  { %v8174_v50 = vld [vmem:[#allocation14 + $0x288] sm:$0xf0]  ;;  %v8073_v43 = vor.u32 %v10124_v41, %v8070_v42  ;;  %v10205_v41 = vld [vmem:[#allocation18 + $0x134] sm:$0xf0]  ;;  %v10202_v42 = vld [vmem:[#allocation18 + $0x124] sm:$0xf] }
 0x216   :  { %3370 = vmatpush.bf16.msra.mxu0 %v8153_v59  ;;  %3348 = vmatpush.bf16.msrb.mxu2 %v7993_v20  ;;  %v10153_v59 = vld [vmem:[#allocation14 + $0x294] sm:$0xf0]  ;;  %v10152_v20 = vld [vmem:[#allocation14 + $0x294] sm:$0xf]  ;;  %v8385_v46 = vor.u32 %v10202_v42, %v8382_v44 }
 0x217   :  { %v8181_v60 = vor.u32 %v10153_v59, %v8180_v56  ;;  %v8185_v34 = vor.u32 %v10152_v20, %v8182_v23  ;;  %v729_v56 = vperm.slane %v11329_v54, 5  ;;  %v10169_v44 = vld [vmem:[#allocation18 + $0x14] sm:$0xf0] }
 0x218   :  { %3307 = vmatpush.bf16.msra.mxu3 %v8197_v25  ;;  %3383 = vmatpush.bf16.msra.mxu1 %v8217_v58 }
 0x21a   :  { %3371 = vmatpush.bf16.msra.mxu0 %v8145_v33  ;;  %3349 = vmatpush.bf16.msrb.mxu2 %v7985_v47 }
 0x21c   :  { %3308 = vmatpush.bf16.msra.mxu3 %v8189_v49  ;;  %3384 = vmatpush.bf16.msra.mxu1 %v8209_v63 }
 0x21e   :  { %3372 = vmatpush.bf16.msra.mxu0 %v8137_v14  ;;  %v8193_v14 = vor.u32 %v10154_v16, %v8190_v9 }
 0x220   :  { %3309 = vmatpush.bf16.msra.mxu3 %v8181_v60  ;;  %v2549_v0 = vpop.f32.mrf.mxu2  ;;  %3385 = vmatpush.bf16.msra.mxu1 %v8201_v5  ;;  %v8049_v60 = vor.u32 %v10118_v11, %v8046_v57  ;;  %v8332_v11 = vld [vmem:[#allocation18 + $0xc0] sm:$0xf]  ;;  %v10193_v57 = vld [vmem:[#allocation18 + $0xd4] sm:$0xf0] }
 0x221   :  { %v2550_v33 = vadd.f32 %v2549_v0, %v2537_v10 }
 0x222   :  { %3373 = vmatpush.bf16.msra.mxu0 %v8129_v40  ;;  %v2562_v48 = vpop.f32.mrf.mxu3  ;;  %v8177_v40 = vor.u32 %v10150_v38, %v8174_v50  ;;  %v8406_v38 = vld [vmem:[#allocation18 + $0x168] sm:$0xf0] }
 0x223   :  { %v2563_v28 = vadd.f32 %v2562_v48, %v2550_v33 }
 0x224   :  { %3310 = vmatpush.bf16.msra.mxu3 %v8173_v2  ;;  %3386 = vmatpush.bf16.msra.mxu1 %v8193_v14  ;;  %v2755_v14 = vperm.slane %v2752_v1, 1  ;;  %v10206_v1 = vld [vmem:[#allocation18 + $0x13c] sm:$0xf0] }
 0x225   :  { %v2648_v6 = vmax.f32 %v2563_v28, 0.0 }
 0x226   :  { %3374 = vmatpush.bf16.msra.mxu0 %v8121_v52  ;;  %v10120_v52 = vld [vmem:[#allocation14 + $0x194] sm:$0xf] }
 0x227   :  { %v2654_v13 = vpack.c.bf16 %v2648_v6, %v2648_v6  ;;  %v8057_v39 = vor.u32 %v10120_v52, %v8054_v55  ;;  %v8358_v55 = vld [vmem:[#allocation18 + $0x108] sm:$0xf0] }
 0x228   :  { %3355 = vmatpush.bf16.msrb.mxu3 %v8105_v30  ;;  %v2551_v17 = vpop.f32.mrf.mxu2  ;;  %3387 = vmatpush.bf16.msra.mxu1 %v8185_v34  ;;  %v10211_v34 = vld [vmem:[#allocation18 + $0x164] sm:$0xf0] }
 0x229   :  { %3298 = vmatmul.bf16.vlgmr.msra.gmra.mxu2 %v2654_v13 }
 0x22a   :  { %3375 = vmatpush.bf16.msra.mxu0 %v8113_v61  ;;  %v2564_v7 = vpop.f32.mrf.mxu3  ;;  %v2575_v24 = vpop.f32.mrf.mxu0 }
 0x22b   :  { %v2576_v58 = vadd.f32 %v2575_v24, %v729_v56 }
 0x22c   :  { %3356 = vmatpush.bf16.msrb.mxu3 %v8097_v8  ;;  %v2588_v25 = vpop.f32.mrf.mxu1  ;;  %3388 = vmatpush.bf16.msra.mxu1 %v8177_v40  ;;  %v8380_v40 = vld [vmem:[#allocation18 + $0x120] sm:$0xf] }
 0x22d   :  { %3376 = vmatmul.bf16.vlgmr.msra.gmra.mxu0 %v2654_v13  ;;  %v2589_v61 = vadd.f32 %v2588_v25, %v2576_v58  ;;  %v8404_v25 = vld [vmem:[#allocation18 + $0x150] sm:$0xf]  ;;  %v10190_v58 = vld [vmem:[#allocation18 + $0xc4] sm:$0xf] }
 0x22e   :  { %v8405_v37 = vor.u32 %v10211_v34, %v8404_v25  ;;  %v10172_v25 = vld [vmem:[#allocation18 + $0x34] sm:$0xf] }
 0x230   :  { %3357 = vmatpush.bf16.msrb.mxu3 %v8089_v21  ;;  %3693 = vmatpush.bf16.msra.mxu2 %v8405_v37  ;;  %v8340_v37 = vld [vmem:[#allocation18 + $0xc8] sm:$0xf] }
 0x232   :  { %v2577_v47 = vpop.f32.mrf.mxu0 }
 0x233   :  { %v8356_v47 = vld [vmem:[#allocation18 + $0xf0] sm:$0xf] }
 0x234   :  { %3358 = vmatpush.bf16.msrb.mxu3 %v8081_v32  ;;  %v2590_v49 = vpop.f32.mrf.mxu1  ;;  %v8409_v32 = vor.u32 %v10208_v35, %v8406_v38  ;;  %v8262_v35 = vld [vmem:[#allocation18 + $0x48] sm:$0xf0]  ;;  %v10194_v38 = vld [vmem:[#allocation18 + $0xdc] sm:$0xf0] }
 0x235   :  { %v10199_v49 = vld [vmem:[#allocation18 + $0x104] sm:$0xf0] }
 0x236   :  { %v8357_v52 = vor.u32 %v10199_v49, %v8356_v47  ;;  %v8238_v49 = vld [vmem:[#allocation18 + $0x18] sm:$0xf0] }
 0x238   :  { %3359 = vmatpush.bf16.msrb.mxu3 %v8073_v43  ;;  %v8381_v43 = vor.u32 %v10205_v41, %v8380_v40  ;;  %v10191_v40 = vld [vmem:[#allocation18 + $0xcc] sm:$0xf]  ;;  %v8342_v41 = vld [vmem:[#allocation18 + $0xe0] sm:$0xf0] }
 0x239   :  { %3350 = vmatmul.bf16.vlgmr.msrb.gmra.mxu2 %v11334_v18  ;;  %v8345_v42 = vor.u32 %v10191_v40, %v8342_v41  ;;  %v8350_v40 = vld [vmem:[#allocation18 + $0xe8] sm:$0xf0] }
 0x23a   :  { %3694 = vmatpush.bf16.msra.mxu2 %v8381_v43  ;;  %v8236_v43 = vld [vmem:[#allocation18] sm:$0xf] }
 0x23b   :  { %v8237_v47 = vor.u32 %v10169_v44, %v8236_v43  ;;  %v8324_v43 = vld [vmem:[#allocation18 + $0xa0] sm:$0xf]  ;;  %v10189_v44 = vld [vmem:[#allocation18 + $0xb4] sm:$0xf0] }
 0x23c   :  { %3360 = vmatpush.bf16.msrb.mxu3 %v8065_v51  ;;  %v10196_v51 = vld [vmem:[#allocation18 + $0xf4] sm:$0xf] }
 0x23e   :  { %3695 = vmatpush.bf16.msra.mxu2 %v8357_v52  ;;  %v10188_v52 = vld [vmem:[#allocation18 + $0xac] sm:$0xf0] }
 0x240   :  { %3361 = vmatpush.bf16.msrb.mxu3 %v8057_v39  ;;  %v2601_v59 = vpop.f32.mrf.mxu2  ;;  %v8361_v39 = vor.u32 %v10196_v51, %v8358_v55  ;;  %v8316_v51 = vld [vmem:[#allocation18 + $0x98] sm:$0xf] }
 0x241   :  { %v2602_v27 = vadd.f32 %v2601_v59, %v2589_v61  ;;  %v8333_v59 = vor.u32 %v10193_v57, %v8332_v11  ;;  %v10212_v61 = vld [vmem:[#allocation18 + $0x16c] sm:$0xf0]  ;;  %v8317_v11 = vor.u32 %v10188_v52, %v8316_v51  ;;  %v10185_v57 = vld [vmem:[#allocation18 + $0x9c] sm:$0xf] }
 0x242   :  { %v2614_v53 = vpop.f32.mrf.mxu3  ;;  %v8300_v52 = vld [vmem:[#allocation18 + $0x70] sm:$0xf] }
 0x243   :  { %v2615_v10 = vadd.f32 %v2614_v53, %v2602_v27  ;;  %v8334_v53 = vld [vmem:[#allocation18 + $0xd8] sm:$0xf0]  ;;  %3696 = vmatpush.bf16.msra.mxu2 %v8333_v59  ;;  %v8420_v59 = vld [vmem:[#allocation18 + $0x160] sm:$0xf] }
 0x244   :  { %3362 = vmatpush.bf16.msrb.mxu3 %v8049_v60  ;;  %v8412_v60 = vld [vmem:[#allocation18 + $0x158] sm:$0xf]  ;;  %v8337_v27 = vor.u32 %v10190_v58, %v8334_v53  ;;  %v8318_v58 = vld [vmem:[#allocation18 + $0xb0] sm:$0xf0] }
 0x245   :  { %v8321_v53 = vor.u32 %v10185_v57, %v8318_v58  ;;  %v8302_v57 = vld [vmem:[#allocation18 + $0x88] sm:$0xf0] }
 0x248   :  { %v2603_v62 = vpop.f32.mrf.mxu2 }
 0x249   :  { %v8413_v62 = vor.u32 %v10212_v61, %v8412_v60  ;;  %v10213_v60 = vld [vmem:[#allocation18 + $0x174] sm:$0xf0]  ;;  %v10210_v61 = vld [vmem:[#allocation18 + $0x164] sm:$0xf] }
 0x24a   :  { %v2616_v63 = vpop.f32.mrf.mxu3  ;;  %v2627_v0 = vpop.f32.mrf.mxu0 }
 0x24b   :  { %v2628_v15 = vadd.f32 %v2627_v0, %v2615_v10  ;;  %v10209_v63 = vld [vmem:[#allocation18 + $0x15c] sm:$0xf]  ;;  %v8414_v10 = vld [vmem:[#allocation18 + $0x170] sm:$0xf0]  ;;  %v8308_v0 = vld [vmem:[#allocation18 + $0x90] sm:$0xf]  ;;  %3719 = vmatpush.bf16.msrb.mxu0 %v8413_v62  ;;  %v8421_v62 = vor.u32 %v10213_v60, %v8420_v59 }
 0x24c   :  { %v2640_v48 = vpop.f32.mrf.mxu1  ;;  %v10177_v60 = vld [vmem:[#allocation18 + $0x54] sm:$0xf0] }
 0x24d   :  { %v2641_v22 = vadd.f32 %v2640_v48, %v2628_v15  ;;  %v8417_v48 = vor.u32 %v10209_v63, %v8414_v10  ;;  %v10187_v15 = vld [vmem:[#allocation18 + $0xa4] sm:$0xf0] }
 0x24e   :  { %v8292_v10 = vld [vmem:[#allocation18 + $0x68] sm:$0xf] }
 0x24f   :  { %v2649_v18 = vmax.f32 %v2641_v22, 0.0  ;;  %v10184_v22 = vld [vmem:[#allocation18 + $0x94] sm:$0xf]  ;;  %3732 = vmatpush.bf16.msrb.mxu1 %v8417_v48 }
 0x251   :  { %v2655_v33 = vpack.c.bf16 %v2649_v18, %v2649_v18  ;;  %v8310_v18 = vld [vmem:[#allocation18 + $0xa8] sm:$0xf0] }
 0x252   :  { %v2629_v54 = vpop.f32.mrf.mxu0 }
 0x253   :  { %3311 = vmatmul.bf16.vlgmr.msra.gmra.mxu3 %v2655_v33  ;;  %3389 = vmatmul.bf16.vlgmr.msra.gmra.mxu1 %v2655_v33  ;;  %v8309_v33 = vor.u32 %v10187_v15, %v8308_v0  ;;  %v8313_v54 = vor.u32 %v10184_v22, %v8310_v18  ;;  %v10182_v0 = vld [vmem:[#allocation18 + $0x7c] sm:$0xf0]  ;;  %v10179_v15 = vld [vmem:[#allocation18 + $0x6c] sm:$0xf]  ;;  %v8294_v22 = vld [vmem:[#allocation18 + $0x80] sm:$0xf0] }
 0x254   :  { %v2642_v2 = vpop.f32.mrf.mxu1  ;;  %3706 = vmatpush.bf16.msra.mxu3 %v8409_v32  ;;  %v8265_v32 = vor.u32 %v10172_v25, %v8262_v35  ;;  %v8293_v48 = vor.u32 %v10182_v0, %v8292_v10  ;;  %v8396_v18 = vld [vmem:[#allocation18 + $0x130] sm:$0xf] }
 0x255   :  { %v8388_v2 = vld [vmem:[#allocation18 + $0x128] sm:$0xf]  ;;  %3697 = vmatpush.bf16.msra.mxu2 %v8309_v33  ;;  %v8348_v35 = vld [vmem:[#allocation18 + $0xd0] sm:$0xf] }
 0x258   :  { %3707 = vmatpush.bf16.msra.mxu3 %v8385_v46  ;;  %v10166_v46 = vld [vmem:[#allocation18 + $0x4] sm:$0xf] }
 0x25c   :  { %3708 = vmatpush.bf16.msra.mxu3 %v8361_v39  ;;  %v8241_v39 = vor.u32 %v10166_v46, %v8238_v49  ;;  %v10186_v46 = vld [vmem:[#allocation18 + $0xa4] sm:$0xf]  ;;  %v8326_v49 = vld [vmem:[#allocation18 + $0xb8] sm:$0xf0] }
 0x25d   :  { %v8329_v51 = vor.u32 %v10186_v46, %v8326_v49  ;;  %v9178_v46 = vld [vmem:[#allocation21 + $0x5d0] sm:$0xf] }
 0x260   :  { %v3247_v3 = vpop.f32.mrf.mxu2  ;;  %3709 = vmatpush.bf16.msra.mxu3 %v8337_v27  ;;  %v8422_v27 = vld [vmem:[#allocation18 + $0x178] sm:$0xf0] }
 0x261   :  { %v3248_v4 = vadd.f32 %v3247_v3, %v2754_v26  ;;  %v10203_v26 = vld [vmem:[#allocation18 + $0x12c] sm:$0xf]  ;;  %v8389_v3 = vor.u32 %v10206_v1, %v8388_v2  ;;  %v8425_v63 = vor.u32 %v10210_v61, %v8422_v27  ;;  %v10207_v2 = vld [vmem:[#allocation18 + $0x144] sm:$0xf0]  ;;  %v10204_v1 = vld [vmem:[#allocation18 + $0x134] sm:$0xf] }
 0x262   :  { %v3260_v30 = vpop.f32.mrf.mxu3  ;;  %v10174_v27 = vld [vmem:[#allocation18 + $0x44] sm:$0xf] }
 0x263   :  { %v3261_v28 = vadd.f32 %v3260_v30, %v3248_v4  ;;  %3363 = vmatmul.bf16.vlgmr.msrb.gmra.mxu3 %v11338_v31  ;;  %v8390_v30 = vld [vmem:[#allocation18 + $0x140] sm:$0xf0]  ;;  %3720 = vmatpush.bf16.msrb.mxu0 %v8389_v3 }
 0x264   :  { %v8393_v4 = vor.u32 %v10203_v26, %v8390_v30  ;;  %3710 = vmatpush.bf16.msra.mxu3 %v8313_v54  ;;  %v8297_v54 = vor.u32 %v10179_v15, %v8294_v22  ;;  %v8398_v26 = vld [vmem:[#allocation18 + $0x148] sm:$0xf0]  ;;  %v8397_v30 = vor.u32 %v10207_v2, %v8396_v18 }
 0x266   :  { %3733 = vmatpush.bf16.msrb.mxu1 %v8393_v4  ;;  %v8401_v4 = vor.u32 %v10204_v1, %v8398_v26  ;;  %v10171_v26 = vld [vmem:[#allocation18 + $0x24] sm:$0xf0] }
 0x268   :  { %v3249_v5 = vpop.f32.mrf.mxu2 }
 0x269   :  { %v8284_v5 = vld [vmem:[#allocation18 + $0x60] sm:$0xf] }
 0x26a   :  { %v3262_v6 = vpop.f32.mrf.mxu3  ;;  %v3273_v36 = vpop.f32.mrf.mxu0 }
 0x26b   :  { %v3274_v45 = vadd.f32 %v3273_v36, %v3261_v28  ;;  %v10181_v6 = vld [vmem:[#allocation18 + $0x74] sm:$0xf0]  ;;  %v10178_v36 = vld [vmem:[#allocation18 + $0x64] sm:$0xf] }
 0x270   :  { %v3286_v16 = vpop.f32.mrf.mxu1 }
 0x271   :  { %v11356_v9 = vadd.f32 %v3286_v16, %v3274_v45  ;;  %v8285_v45 = vor.u32 %v10181_v6, %v8284_v5  ;;  %v8364_v16 = vld [vmem:[#allocation18 + $0xf8] sm:$0xf]  ;;  %v10176_v6 = vld [vmem:[#allocation18 + $0x4c] sm:$0xf0] }
 0x272   :  { %v3275_v8 = vpop.f32.mrf.mxu0  ;;  %v8268_v5 = vld [vmem:[#allocation18 + $0x38] sm:$0xf] }
 0x273   :  { %v8286_v8 = vld [vmem:[#allocation18 + $0x78] sm:$0xf0]  ;;  %3698 = vmatpush.bf16.msra.mxu2 %v8285_v45 }
 0x278   :  { %v3288_v13 = vpop.f32.mrf.mxu1 }
 0x279   :  { %v10200_v13 = vld [vmem:[#allocation18 + $0x10c] sm:$0xf0] }
 0x28a   :  { %v3325_v17 = vpop.f32.mrf.mxu0 }
 0x28b   :  { %v3326_v7 = vadd.f32 %v3325_v17, %v2755_v14  ;;  %v8289_v14 = vor.u32 %v10178_v36, %v8286_v8  ;;  %v8365_v17 = vor.u32 %v10200_v13, %v8364_v16  ;;  %v10173_v36 = vld [vmem:[#allocation18 + $0x3c] sm:$0xf]  ;;  %v8269_v8 = vor.u32 %v10176_v6, %v8268_v5  ;;  %v8270_v16 = vld [vmem:[#allocation18 + $0x50] sm:$0xf0] }
 0x28c   :  { %v3338_v29 = vpop.f32.mrf.mxu1  ;;  %v8273_v13 = vor.u32 %v10173_v36, %v8270_v16  ;;  %v3402_v16 = vld [vmem:[#allocation17 + $0x8] sm:$0xff] }
 0x28d   :  { %v11358_v19 = vadd.f32 %v3338_v29, %v3326_v7  ;;  %v10197_v7 = vld [vmem:[#allocation18 + $0xfc] sm:$0xf]  ;;  %v8366_v29 = vld [vmem:[#allocation18 + $0x110] sm:$0xf0]  ;;  %3711 = vmatpush.bf16.msra.mxu3 %v8289_v14  ;;  %3721 = vmatpush.bf16.msrb.mxu0 %v8365_v17  ;;  %v10198_v17 = vld [vmem:[#allocation18 + $0x104] sm:$0xf] }
 0x291   :  { %3712 = vmatpush.bf16.msra.mxu3 %v8265_v32 }
 0x292   :  { %v3327_v20 = vpop.f32.mrf.mxu0 }
 0x293   :  { %v8369_v20 = vor.u32 %v10197_v7, %v8366_v29  ;;  %v8374_v7 = vld [vmem:[#allocation18 + $0x118] sm:$0xf0] }
 0x294   :  { %v3340_v21 = vpop.f32.mrf.mxu1  ;;  %v8377_v29 = vor.u32 %v10198_v17, %v8374_v7 }
 0x295   :  { %v8260_v21 = vld [vmem:[#allocation18 + $0x30] sm:$0xf]  ;;  %3734 = vmatpush.bf16.msrb.mxu1 %v8369_v20  ;;  %3713 = vmatpush.bf16.msra.mxu3 %v8241_v39  ;;  %v8244_v20 = vld [vmem:[#allocation18 + $0x8] sm:$0xf] }
 0x296   :  { %v10183_v39 = vld [vmem:[#allocation18 + $0x84] sm:$0xf0] }
 0x297   :  { %v8301_v58 = vor.u32 %v10183_v39, %v8300_v52  ;;  %v8578_v52 = vld [vmem:[#allocation21 + $0x120] sm:$0xf]  ;;  %v10253_v39 = vld [vmem:[#allocation21 + $0x134] sm:$0xf0] }
 0x299   :  { %3735 = vmatpush.bf16.msrb.mxu1 %v8345_v42  ;;  %3758 = vmatpush.bf16.msrb.mxu3 %v8425_v63  ;;  %v3401_v63 = vld [vmem:[#allocation17] sm:$0xff] }
 0x29a   :  { %v3774_v0 = vunpack.c.l.b16 %v3401_v63 }
 0x29d   :  { %3736 = vmatpush.bf16.msrb.mxu1 %v8321_v53  ;;  %3759 = vmatpush.bf16.msrb.mxu3 %v8401_v4  ;;  %v8276_v53 = vld [vmem:[#allocation18 + $0x40] sm:$0xf] }
 0x29e   :  { %v8277_v22 = vor.u32 %v10177_v60, %v8276_v53  ;;  %v8962_v53 = vld [vmem:[#allocation21 + $0x420] sm:$0xf]  ;;  %v10349_v60 = vld [vmem:[#allocation21 + $0x434] sm:$0xf0] }
 0x2a1   :  { %3737 = vmatpush.bf16.msrb.mxu1 %v8297_v54  ;;  %3760 = vmatpush.bf16.msrb.mxu3 %v8377_v29  ;;  %v3780_v54 = vpack.c.b16 %v3774_v0, %v3774_v0  ;;  %v10247_v0 = vld [vmem:[#allocation21 + $0x104] sm:$0xf0] }
 0x2a5   :  { %3738 = vmatpush.bf16.msrb.mxu1 %v8273_v13  ;;  %v3776_v13 = vunpack.c.l.b16 %v3402_v16 }
 0x2aa   :  { %v11360_v23 = vpop.f32.mrf.mxu0 }
 0x2ac   :  { %v11362_v31 = vpop.f32.mrf.mxu2 }
 0x2ad   :  { %v3300_v33 = vadd.f32 %v11362_v31, %v11356_v9  ;;  %v8372_v9 = vld [vmem:[#allocation18 + $0x100] sm:$0xf]  ;;  %v10201_v31 = vld [vmem:[#allocation18 + $0x114] sm:$0xf0] }
 0x2ae   :  { %v8373_v14 = vor.u32 %v10201_v31, %v8372_v9  ;;  %v3403_v9 = vld [vmem:[#allocation17 + $0x10] sm:$0xff]  ;;  %v3398_v31 = vld [vmem:[#allocation6] sm:$0xff] }
 0x2af   :  { %v3778_v17 = vunpack.c.l.b16 %v3403_v9 }
 0x2b2   :  { %v3379_v24 = vpop.f32.mrf.mxu0 }
 0x2b3   :  { %v10175_v24 = vld [vmem:[#allocation18 + $0x44] sm:$0xf0] }
 0x2b4   :  { %v3301_v50 = vpop.f32.mrf.mxu2  ;;  %v8261_v34 = vor.u32 %v10175_v24, %v8260_v21  ;;  %v10170_v21 = vld [vmem:[#allocation18 + $0x1c] sm:$0xf0]  ;;  %v10167_v24 = vld [vmem:[#allocation18 + $0xc] sm:$0xf] }
 0x2b5   :  { %v8341_v50 = vor.u32 %v10194_v38, %v8340_v37  ;;  %v8245_v25 = vor.u32 %v10170_v21, %v8244_v20  ;;  %v10195_v37 = vld [vmem:[#allocation18 + $0xe4] sm:$0xf0]  ;;  %v3782_v20 = vpack.c.b16 %v3776_v13, %v3776_v13  ;;  %v10235_v13 = vld [vmem:[#allocation21 + $0xa4] sm:$0xf0] }
 0x2b6   :  { %3699 = vmatpush.bf16.msra.mxu2 %v8261_v34  ;;  %v8246_v34 = vld [vmem:[#allocation18 + $0x20] sm:$0xf0]  ;;  %v8349_v32 = vor.u32 %v10195_v37, %v8348_v35 }
 0x2b7   :  { %3722 = vmatpush.bf16.msrb.mxu0 %v8341_v50  ;;  %v8249_v38 = vor.u32 %v10167_v24, %v8246_v34  ;;  %v10192_v50 = vld [vmem:[#allocation18 + $0xd4] sm:$0xf]  ;;  %v3797_v37 = vsel %vm3789_vm2, %v3782_v20, 0  ;;  %v10331_v20 = vld [vmem:[#allocation21 + $0x3a4] sm:$0xf0] }
 0x2b8   :  { %v8353_v42 = vor.u32 %v10192_v50, %v8350_v40  ;;  %v10259_v40 = vld [vmem:[#allocation21 + $0x164] sm:$0xf0] }
 0x2b9   :  { %3739 = vmatpush.bf16.msrb.mxu1 %v8249_v38 }
 0x2ba   :  { %3700 = vmatpush.bf16.msra.mxu2 %v8237_v47  ;;  %3761 = vmatpush.bf16.msrb.mxu3 %v8353_v42  ;;  %v8325_v47 = vor.u32 %v10189_v44, %v8324_v43  ;;  %v10307_v42 = vld [vmem:[#allocation21 + $0x2e4] sm:$0xf0]  ;;  %v8986_v43 = vld [vmem:[#allocation21 + $0x450] sm:$0xf] }
 0x2bb   :  { %3723 = vmatpush.bf16.msrb.mxu0 %v8317_v11  ;;  %v10180_v11 = vld [vmem:[#allocation18 + $0x74] sm:$0xf]  ;;  %v10355_v44 = vld [vmem:[#allocation21 + $0x464] sm:$0xf0] }
 0x2bc   :  { %v11364_v56 = vpop.f32.mrf.mxu2  ;;  %v8305_v59 = vor.u32 %v10180_v11, %v8302_v57  ;;  %v8770_v11 = vld [vmem:[#allocation21 + $0x2a0] sm:$0xf]  ;;  %v10301_v57 = vld [vmem:[#allocation21 + $0x2b4] sm:$0xf0] }
 0x2bd   :  { %v3352_v61 = vadd.f32 %v11364_v56, %v11358_v19  ;;  %v8254_v19 = vld [vmem:[#allocation18 + $0x28] sm:$0xf0]  ;;  %v3791_v56 = vsel %vm3789_vm2, %v3780_v54, 0 }
 0x2be   :  { %3745 = vmatpush.bf16.msrb.mxu2 %v8421_v62  ;;  %3762 = vmatpush.bf16.msrb.mxu3 %v8329_v51  ;;  %v8278_v62 = vld [vmem:[#allocation18 + $0x58] sm:$0xf0]  ;;  %v10343_v54 = vld [vmem:[#allocation21 + $0x404] sm:$0xf0] }
 0x2bf   :  { %3724 = vmatpush.bf16.msrb.mxu0 %v8293_v48  ;;  %v3775_v48 = vunpack.c.h.b16 %v3401_v63  ;;  %v8281_v18 = vor.u32 %v10174_v27, %v8278_v62  ;;  %v10397_v27 = vld [vmem:[#allocation21 + $0x5b4] sm:$0xf0]  ;;  %v8579_v62 = vor.u32 %v10253_v39, %v8578_v52  ;;  %v8771_v63 = vor.u32 %v10301_v57, %v8770_v11  ;;  %v8626_v39 = vld [vmem:[#allocation21 + $0x180] sm:$0xf]  ;;  %v9370_v57 = vld [vmem:[#allocation21 + $0x750] sm:$0xf] }
 0x2c0   :  { %v10217_v52 = vld [vmem:[#allocation21 + $0x14] sm:$0xf0] }
 0x2c1   :  { %v3781_v2 = vpack.c.b16 %v3775_v48, %v3775_v48  ;;  %v8746_v48 = vld [vmem:[#allocation21 + $0x270] sm:$0xf]  ;;  %v10265_v11 = vld [vmem:[#allocation21 + $0x194] sm:$0xf0] }
 0x2c2   :  { %3746 = vmatpush.bf16.msrb.mxu2 %v8397_v30  ;;  %3763 = vmatpush.bf16.msrb.mxu3 %v8305_v59 }
 0x2c3   :  { %3725 = vmatpush.bf16.msrb.mxu0 %v8269_v8  ;;  %v3794_v30 = vsel %vm3789_vm2, %v3781_v2, 0  ;;  %v9130_v2 = vld [vmem:[#allocation21 + $0x570] sm:$0xf] }
 0x2c4   :  { %v3353_v28 = vpop.f32.mrf.mxu2  ;;  %3828 = vmatpush.bf16.msra.mxu1 %v3794_v30  ;;  %v8722_v30 = vld [vmem:[#allocation21 + $0x240] sm:$0xf] }
 0x2c6   :  { %3747 = vmatpush.bf16.msrb.mxu2 %v8373_v14  ;;  %3764 = vmatpush.bf16.msrb.mxu3 %v8281_v18  ;;  %v3777_v14 = vunpack.c.h.b16 %v3402_v16 }
 0x2c7   :  { %3726 = vmatpush.bf16.msrb.mxu0 %v8245_v25  ;;  %v3784_v25 = vpack.c.b16 %v3778_v17, %v3778_v17  ;;  %v10283_v17 = vld [vmem:[#allocation21 + $0x224] sm:$0xf0] }
 0x2c8   :  { %v3783_v21 = vpack.c.b16 %v3777_v14, %v3777_v14  ;;  %v8698_v14 = vld [vmem:[#allocation21 + $0x210] sm:$0xf] }
 0x2ca   :  { %3748 = vmatpush.bf16.msrb.mxu2 %v8349_v32  ;;  %v3800_v38 = vsel %vm3789_vm2, %v3783_v21, 0  ;;  %v3803_v32 = vsel %vm3789_vm2, %v3784_v25, 0  ;;  %v9082_v21 = vld [vmem:[#allocation21 + $0x510] sm:$0xf] }
 0x2cb   :  { %3815 = vmatpush.bf16.msra.mxu0 %v3791_v56  ;;  %v10241_v56 = vld [vmem:[#allocation21 + $0xd4] sm:$0xf0] }
 0x2ce   :  { %3749 = vmatpush.bf16.msrb.mxu2 %v8325_v47  ;;  %v10403_v47 = vld [vmem:[#allocation21 + $0x5e4] sm:$0xf0] }
 0x2cf   :  { %v9179_v59 = vor.u32 %v10403_v47, %v9178_v46  ;;  %v10271_v46 = vld [vmem:[#allocation21 + $0x1c4] sm:$0xf0] }
 0x2d0   :  { %v11366_v55 = vpop.f32.mrf.mxu1 }
 0x2d2   :  { %3750 = vmatpush.bf16.msrb.mxu2 %v8301_v58  ;;  %v8987_v58 = vor.u32 %v10355_v44, %v8986_v43  ;;  %v10223_v43 = vld [vmem:[#allocation21 + $0x44] sm:$0xf0]  ;;  %v8650_v44 = vld [vmem:[#allocation21 + $0x1b0] sm:$0xf] }
 0x2d6   :  { %v3312_v3 = vpop.f32.mrf.mxu3  ;;  %3751 = vmatpush.bf16.msrb.mxu2 %v8277_v22  ;;  %v8963_v22 = vor.u32 %v10349_v60, %v8962_v53  ;;  %v8627_v60 = vor.u32 %v10265_v11, %v8626_v39  ;;  %v8580_v39 = vld [vmem:[#allocation21 + $0x138] sm:$0xf0] }
 0x2d7   :  { %v11370_v28 = vadd.f32 %v3312_v3, %v3300_v33  ;;  %v8252_v33 = vld [vmem:[#allocation18 + $0x10] sm:$0xf]  ;;  %v10168_v3 = vld [vmem:[#allocation18 + $0x14] sm:$0xf] }
 0x2d8   :  { %v3392_v45 = vpop.f32.mrf.mxu1  ;;  %v8253_v5 = vor.u32 %v10171_v26, %v8252_v33  ;;  %v8257_v6 = vor.u32 %v10168_v3, %v8254_v19  ;;  %v8938_v33 = vld [vmem:[#allocation21 + $0x3f0] sm:$0xf]  ;;  %v8530_v19 = vld [vmem:[#allocation21 + $0xc0] sm:$0xf] }
 0x2d9   :  { %6611 = vst [vmem:[#allocation28] sm:$0xff] %v11370_v28  ;;  %v8531_v16 = vor.u32 %v10241_v56, %v8530_v19  ;;  %v9514_v56 = vld [vmem:[#allocation21 + $0x870] sm:$0xf] }
 0x2da   :  { %3752 = vmatpush.bf16.msrb.mxu2 %v8253_v5  ;;  %3765 = vmatpush.bf16.msrb.mxu3 %v8257_v6  ;;  %v8939_v5 = vor.u32 %v10343_v54, %v8938_v33  ;;  %v9058_v33 = vld [vmem:[#allocation21 + $0x4e0] sm:$0xf]  ;;  %6634 = dma.vmem_to_hbm [thread:$0]  %s6630_s5, 128, %s6632_s0, [#allocation29]  }
 0x2de   :  { %v3314_v41 = vpop.f32.mrf.mxu3 }
 0x2df   :  { %v8794_v41 = vld [vmem:[#allocation21 + $0x2d0] sm:$0xf] }
 0x2e0   :  { %v8795_v51 = vor.u32 %v10307_v42, %v8794_v41  ;;  %v8458_v42 = vld [vmem:[#allocation21 + $0x30] sm:$0xf] }
 0x2e1   :  { %v8459_v47 = vor.u32 %v10223_v43, %v8458_v42 }
 0x2e6   :  { %v3364_v10 = vpop.f32.mrf.mxu3 }
 0x2e7   :  { %v3365_v15 = vadd.f32 %v3364_v10, %v3352_v61  ;;  %v9154_v61 = vld [vmem:[#allocation21 + $0x5a0] sm:$0xf]  ;;  %v8554_v10 = vld [vmem:[#allocation21 + $0xf0] sm:$0xf] }
 0x2e8   :  { %v9155_v18 = vor.u32 %v10397_v27, %v9154_v61  ;;  %v8555_v26 = vor.u32 %v10247_v0, %v8554_v10  ;;  %v9538_v10 = vld [vmem:[#allocation21 + $0x8a0] sm:$0xf] }
 0x2e9   :  { %v3378_v1 = vadd.f32 %v11360_v23, %v3365_v15  ;;  %v10295_v15 = vld [vmem:[#allocation21 + $0x284] sm:$0xf0] }
 0x2ea   :  { %v8747_v3 = vor.u32 %v10295_v15, %v8746_v48  ;;  %v10493_v48 = vld [vmem:[#allocation21 + $0x8b4] sm:$0xf0] }
 0x2eb   :  { %v3391_v4 = vadd.f32 %v11366_v55, %v3378_v1  ;;  %v3779_v55 = vunpack.c.h.b16 %v3403_v9  ;;  %v10391_v1 = vld [vmem:[#allocation21 + $0x584] sm:$0xf0]  ;;  %v9539_v15 = vor.u32 %v10493_v48, %v9538_v10  ;;  %v10292_v48 = vld [vmem:[#allocation21 + $0x274] sm:$0xf] }
 0x2ec   :  { %v9131_v6 = vor.u32 %v10391_v1, %v9130_v2  ;;  %v10373_v2 = vld [vmem:[#allocation21 + $0x4f4] sm:$0xf0]  ;;  %v9322_v1 = vld [vmem:[#allocation21 + $0x6f0] sm:$0xf] }
 0x2ed   :  { %v3394_v36 = vmax.f32 %v3391_v4, -4.0  ;;  %v3785_v34 = vpack.c.b16 %v3779_v55, %v3779_v55  ;;  %v10289_v4 = vld [vmem:[#allocation21 + $0x254] sm:$0xf0] }
 0x2ee   :  { %v3366_v45 = vpop.f32.mrf.mxu3  ;;  %v8723_v9 = vor.u32 %v10289_v4, %v8722_v30  ;;  %v10487_v30 = vld [vmem:[#allocation21 + $0x884] sm:$0xf0] }
 0x2ef   :  { %v3395_v8 = vmin.f32 %v3394_v36, 15.0  ;;  %v3806_v50 = vsel %vm3789_vm2, %v3785_v34, 0  ;;  %v8914_v36 = vld [vmem:[#allocation21 + $0x3c0] sm:$0xf]  ;;  %v10337_v45 = vld [vmem:[#allocation21 + $0x3d4] sm:$0xf0]  ;;  %v8699_v34 = vor.u32 %v10283_v17, %v8698_v14  ;;  %v9515_v4 = vor.u32 %v10487_v30, %v9514_v56 }
 0x2f0   :  { %v8915_v55 = vor.u32 %v10337_v45, %v8914_v36  ;;  %v9034_v36 = vld [vmem:[#allocation21 + $0x4b0] sm:$0xf]  ;;  %v10481_v14 = vld [vmem:[#allocation21 + $0x854] sm:$0xf0] }
 0x2f1   :  { %v3396_v23 = vmul.f32 1.442695, %v3395_v8  ;;  %v9106_v8 = vld [vmem:[#allocation21 + $0x540] sm:$0xf] }
 0x2f3   :  { %10575 = vpow2.f32 %v3396_v23  ;;  %v10385_v23 = vld [vmem:[#allocation21 + $0x554] sm:$0xf0] }
 0x2f9   :  { %v10576_v7 = vpop.eup %10575 }
 0x2fa   :  { %v3399_v29 = vmul.f32 %v10576_v7, %v3398_v31  ;;  %6612 = vst [vmem:[#allocation30] sm:$0xff] %v10576_v7  ;;  %v8506_v31 = vld [vmem:[#allocation21 + $0x90] sm:$0xf]  ;;  %v9107_v7 = vor.u32 %v10385_v23, %v9106_v8  ;;  %v10367_v8 = vld [vmem:[#allocation21 + $0x4c4] sm:$0xf0] }
 0x2fb   :  { %v8507_v25 = vor.u32 %v10235_v13, %v8506_v31  ;;  %v9298_v23 = vld [vmem:[#allocation21 + $0x6c0] sm:$0xf]  ;;  %6645 = dma.vmem_to_hbm [thread:$0]  %s6641_s30, 128, %s6643_s6, [#allocation29]  }
 0x2fc   :  { %v3400_v24 = vadd.f32 %v3399_v29, %v11370_v28  ;;  %v8602_v28 = vld [vmem:[#allocation21 + $0x150] sm:$0xf]  ;;  %v9490_v13 = vld [vmem:[#allocation21 + $0x840] sm:$0xf] }
 0x2fd   :  { %v8603_v49 = vor.u32 %v10259_v40, %v8602_v28  ;;  %v8890_v29 = vld [vmem:[#allocation21 + $0x390] sm:$0xf]  ;;  %v9491_v17 = vor.u32 %v10481_v14, %v9490_v13  ;;  %v8484_v13 = vld [vmem:[#allocation21 + $0x78] sm:$0xf0]  ;;  %v10274_v14 = vld [vmem:[#allocation21 + $0x1e4] sm:$0xf] }
 0x2fe   :  { %v3404_v35 = vpack.c.bf16 %v3400_v24, %v3400_v24  ;;  %v10379_v24 = vld [vmem:[#allocation21 + $0x524] sm:$0xf0] }
 0x2ff   :  { %v9083_v28 = vor.u32 %v10379_v24, %v9082_v21  ;;  %v10361_v21 = vld [vmem:[#allocation21 + $0x494] sm:$0xf0]  ;;  %v9274_v24 = vld [vmem:[#allocation21 + $0x690] sm:$0xf] }
 0x300   :  { %3701 = vmatmul.bf16.vlgmr.msra.gmra.mxu2 %v3404_v35  ;;  %3714 = vmatmul.bf16.vlgmr.msra.gmra.mxu3 %v3404_v35 }
 0x301   :  { %3727 = vmatmul.bf16.vlgmr.msrb.gmra.mxu0 %v3404_v35  ;;  %3740 = vmatmul.bf16.vlgmr.msrb.gmra.mxu1 %v3404_v35 }
 0x302   :  { %3841 = vmatpush.bf16.msrb.mxu0 %v3797_v37  ;;  %3854 = vmatpush.bf16.msrb.mxu1 %v3800_v38  ;;  %v10229_v37 = vld [vmem:[#allocation21 + $0x74] sm:$0xf0]  ;;  %v8674_v38 = vld [vmem:[#allocation21 + $0x1e0] sm:$0xf] }
 0x303   :  { %3867 = vmatpush.bf16.msra.mxu2 %v3803_v32  ;;  %3880 = vmatpush.bf16.msra.mxu3 %v3806_v50  ;;  %v10277_v32 = vld [vmem:[#allocation21 + $0x1f4] sm:$0xf0]  ;;  %v8891_v50 = vor.u32 %v10331_v20, %v8890_v29  ;;  %v9010_v29 = vld [vmem:[#allocation21 + $0x480] sm:$0xf] }
 0x304   :  { %v8675_v41 = vor.u32 %v10277_v32, %v8674_v38  ;;  %v10475_v38 = vld [vmem:[#allocation21 + $0x824] sm:$0xf0]  ;;  %v10256_v32 = vld [vmem:[#allocation21 + $0x154] sm:$0xf] }
 0x310   :  { %3753 = vmatmul.bf16.vlgmr.msrb.gmra.mxu2 %v3404_v35  ;;  %3766 = vmatmul.bf16.vlgmr.msrb.gmra.mxu3 %v3404_v35  ;;  %v8482_v35 = vld [vmem:[#allocation21 + $0x60] sm:$0xf] }
 0x311   :  { %8426 = vmatmul.msk.bf16.vlgmr.msra.gmra.mxu0 %vm3786_vm3, %v11210_v12  ;;  %8427 = vmatmul.msk.bf16.vlgmr.msra.gmra.mxu1 %vm3786_vm3, %v11210_v12  ;;  %v8483_v40 = vor.u32 %v10229_v37, %v8482_v35  ;;  %v9466_v37 = vld [vmem:[#allocation21 + $0x810] sm:$0xf] }
 0x312   :  { %5660 = vmatpush.bf16.msra.mxu0 %v8603_v49  ;;  %5673 = vmatpush.bf16.msra.mxu1 %v8795_v51  ;;  %v8651_v49 = vor.u32 %v10271_v46, %v8650_v44  ;;  %v8434_v51 = vld [vmem:[#allocation21] sm:$0xf]  ;;  %v10421_v46 = vld [vmem:[#allocation21 + $0x674] sm:$0xf0] }
 0x313   :  { %5686 = vmatpush.bf16.msrb.mxu2 %v8987_v58  ;;  %5699 = vmatpush.bf16.msrb.mxu3 %v9179_v59  ;;  %v9562_v58 = vld [vmem:[#allocation21 + $0x8d0] sm:$0xf]  ;;  %v10499_v59 = vld [vmem:[#allocation21 + $0x8e4] sm:$0xf0]  ;;  %v8435_v53 = vor.u32 %v10217_v52, %v8434_v51  ;;  %v9250_v44 = vld [vmem:[#allocation21 + $0x660] sm:$0xf] }
 0x314   :  { %v9563_v27 = vor.u32 %v10499_v59, %v9562_v58  ;;  %v10469_v51 = vld [vmem:[#allocation21 + $0x7f4] sm:$0xf0]  ;;  %v10250_v52 = vld [vmem:[#allocation21 + $0x124] sm:$0xf]  ;;  %v8772_v58 = vld [vmem:[#allocation21 + $0x2b8] sm:$0xf0] }
 0x316   :  { %5661 = vmatpush.bf16.msra.mxu0 %v8579_v62  ;;  %5674 = vmatpush.bf16.msra.mxu1 %v8771_v63  ;;  %v9346_v62 = vld [vmem:[#allocation21 + $0x720] sm:$0xf]  ;;  %v10445_v63 = vld [vmem:[#allocation21 + $0x734] sm:$0xf0] }
 0x317   :  { %5687 = vmatpush.bf16.msrb.mxu2 %v8963_v22  ;;  %5700 = vmatpush.bf16.msrb.mxu3 %v9155_v18  ;;  %v9347_v0 = vor.u32 %v10445_v63, %v9346_v62  ;;  %v8866_v22 = vld [vmem:[#allocation21 + $0x360] sm:$0xf]  ;;  %v10325_v18 = vld [vmem:[#allocation21 + $0x374] sm:$0xf0]  ;;  %v10463_v62 = vld [vmem:[#allocation21 + $0x7c4] sm:$0xf0] }
 0x318   :  { %v8867_v54 = vor.u32 %v10325_v18, %v8866_v22  ;;  %v10244_v63 = vld [vmem:[#allocation21 + $0xf4] sm:$0xf] }
 0x31a   :  { %5662 = vmatpush.bf16.msra.mxu0 %v8555_v26  ;;  %5675 = vmatpush.bf16.msra.mxu1 %v8747_v3  ;;  %v10439_v26 = vld [vmem:[#allocation21 + $0x704] sm:$0xf0]  ;;  %v9059_v3 = vor.u32 %v10373_v2, %v9058_v33  ;;  %v9202_v33 = vld [vmem:[#allocation21 + $0x600] sm:$0xf] }
 0x31b   :  { %5688 = vmatpush.bf16.msrb.mxu2 %v8939_v5  ;;  %5701 = vmatpush.bf16.msrb.mxu3 %v9131_v6  ;;  %v9323_v19 = vor.u32 %v10439_v26, %v9322_v1  ;;  %v8842_v5 = vld [vmem:[#allocation21 + $0x330] sm:$0xf]  ;;  %v10319_v6 = vld [vmem:[#allocation21 + $0x344] sm:$0xf0]  ;;  %v9394_v2 = vld [vmem:[#allocation21 + $0x780] sm:$0xf] }
 0x31c   :  { %v8843_v45 = vor.u32 %v10319_v6, %v8842_v5  ;;  %v10457_v26 = vld [vmem:[#allocation21 + $0x794] sm:$0xf0]  ;;  %v8724_v5 = vld [vmem:[#allocation21 + $0x258] sm:$0xf0] }
 0x31d   :  { %v9395_v56 = vor.u32 %v10457_v26, %v9394_v2  ;;  %v8964_v2 = vld [vmem:[#allocation21 + $0x438] sm:$0xf0] }
 0x31e   :  { %5663 = vmatpush.bf16.msra.mxu0 %v8531_v16  ;;  %5676 = vmatpush.bf16.msra.mxu1 %v8723_v9  ;;  %v10433_v16 = vld [vmem:[#allocation21 + $0x6d4] sm:$0xf0]  ;;  %v9035_v9 = vor.u32 %v10367_v8, %v9034_v36  ;;  %v10232_v36 = vld [vmem:[#allocation21 + $0x94] sm:$0xf]  ;;  %v9156_v26 = vld [vmem:[#allocation21 + $0x5b8] sm:$0xf0] }
 0x31f   :  { %5689 = vmatpush.bf16.msrb.mxu2 %v8915_v55  ;;  %5702 = vmatpush.bf16.msrb.mxu3 %v9107_v7  ;;  %v9299_v31 = vor.u32 %v10433_v16, %v9298_v23  ;;  %v8818_v55 = vld [vmem:[#allocation21 + $0x300] sm:$0xf]  ;;  %v10313_v7 = vld [vmem:[#allocation21 + $0x314] sm:$0xf0]  ;;  %v10280_v8 = vld [vmem:[#allocation21 + $0x214] sm:$0xf] }
 0x320   :  { %8430 = vmatmul.msk.bf16.vlgmr.msra.gmra.mxu2 %vm3786_vm3, %v11210_v12  ;;  %8431 = vmatmul.msk.bf16.vlgmr.msra.gmra.mxu3 %vm3786_vm3, %v11210_v12  ;;  %v8819_v20 = vor.u32 %v10313_v7, %v8818_v55  ;;  %v8700_v16 = vld [vmem:[#allocation21 + $0x228] sm:$0xf0]  ;;  %v8676_v55 = vld [vmem:[#allocation21 + $0x1f8] sm:$0xf0] }
 0x321   :  { %8428 = vmatmul.msk.bf16.vlgmr.msrb.gmra.mxu0 %vm3786_vm3, %v11210_v12  ;;  %8429 = vmatmul.msk.bf16.vlgmr.msrb.gmra.mxu1 %vm3786_vm3, %v11210_v12  ;;  %v10451_v12 = vld [vmem:[#allocation21 + $0x764] sm:$0xf0] }
 0x322   :  { %5664 = vmatpush.bf16.msra.mxu0 %v8507_v25  ;;  %5677 = vmatpush.bf16.msra.mxu1 %v8699_v34  ;;  %v9371_v61 = vor.u32 %v10451_v12, %v9370_v57  ;;  %v10427_v25 = vld [vmem:[#allocation21 + $0x6a4] sm:$0xf0]  ;;  %v9011_v34 = vor.u32 %v10361_v21, %v9010_v29  ;;  %v8583_v57 = vor.u32 %v10250_v52, %v8580_v39  ;;  %v10298_v12 = vld [vmem:[#allocation21 + $0x2a4] sm:$0xf]  ;;  %v10220_v21 = vld [vmem:[#allocation21 + $0x34] sm:$0xf] }
 0x323   :  { %5690 = vmatpush.bf16.msrb.mxu2 %v8891_v50  ;;  %5703 = vmatpush.bf16.msrb.mxu3 %v9083_v28  ;;  %v9275_v35 = vor.u32 %v10427_v25, %v9274_v24  ;;  %v9467_v50 = vor.u32 %v10475_v38, %v9466_v37  ;;  %v8604_v28 = vld [vmem:[#allocation21 + $0x168] sm:$0xf0]  ;;  %v8775_v59 = vor.u32 %v10298_v12, %v8772_v58 }
 0x324   :  { %v8607_v42 = vor.u32 %v10256_v32, %v8604_v28  ;;  %v8460_v24 = vld [vmem:[#allocation21 + $0x48] sm:$0xf0]  ;;  %v8436_v28 = vld [vmem:[#allocation21 + $0x18] sm:$0xf0] }
 0x325   :  { %v8463_v25 = vor.u32 %v10220_v21, %v8460_v24 }
 0x326   :  { %5665 = vmatpush.bf16.msra.mxu0 %v8483_v40  ;;  %5678 = vmatpush.bf16.msra.mxu1 %v8675_v41  ;;  %v10304_v40 = vld [vmem:[#allocation21 + $0x2d4] sm:$0xf]  ;;  %v8796_v41 = vld [vmem:[#allocation21 + $0x2e8] sm:$0xf0] }
 0x327   :  { %5691 = vmatpush.bf16.msrb.mxu2 %v8867_v54  ;;  %5704 = vmatpush.bf16.msrb.mxu3 %v9059_v3  ;;  %v8799_v43 = vor.u32 %v10304_v40, %v8796_v41  ;;  %v10409_v54 = vld [vmem:[#allocation21 + $0x614] sm:$0xf0]  ;;  %v10238_v3 = vld [vmem:[#allocation21 + $0xc4] sm:$0xf] }
 0x328   :  { %v9203_v1 = vor.u32 %v10409_v54, %v9202_v33  ;;  %v10262_v40 = vld [vmem:[#allocation21 + $0x184] sm:$0xf] }
 0x32a   :  { %5666 = vmatpush.bf16.msra.mxu0 %v8459_v47  ;;  %5679 = vmatpush.bf16.msra.mxu1 %v8651_v49  ;;  %v9442_v47 = vld [vmem:[#allocation21 + $0x7e0] sm:$0xf]  ;;  %v9251_v49 = vor.u32 %v10421_v46, %v9250_v44 }
 0x32b   :  { %5692 = vmatpush.bf16.msrb.mxu2 %v8843_v45  ;;  %5705 = vmatpush.bf16.msrb.mxu3 %v9035_v9  ;;  %v9443_v11 = vor.u32 %v10469_v51, %v9442_v47  ;;  %v8508_v45 = vld [vmem:[#allocation21 + $0xa8] sm:$0xf0]  ;;  %v8703_v9 = vor.u32 %v10280_v8, %v8700_v16  ;;  %v11400_v47 = vld [vmem:[#allocation20] sm:$0x3f] }
 0x32c   :  { %v8511_v23 = vor.u32 %v10232_v36, %v8508_v45  ;;  %v3888_v52 = vperm.slane %v11400_v47, 0  ;;  %v3889_v39 = vperm.slane %v11400_v47, 1  ;;  %v9132_v36 = vld [vmem:[#allocation21 + $0x588] sm:$0xf0]  ;;  %v3891_v16 = vperm.slane %v11400_v47, 3 }
 0x32e   :  { %5667 = vmatpush.bf16.msra.mxu0 %v8435_v53  ;;  %5680 = vmatpush.bf16.msra.mxu1 %v8627_v60  ;;  %v9226_v53 = vld [vmem:[#allocation21 + $0x630] sm:$0xf]  ;;  %v10415_v60 = vld [vmem:[#allocation21 + $0x644] sm:$0xf0] }
 0x32f   :  { %5693 = vmatpush.bf16.msrb.mxu2 %v8819_v20  ;;  %5706 = vmatpush.bf16.msrb.mxu3 %v9011_v34  ;;  %v8679_v20 = vor.u32 %v10274_v14, %v8676_v55  ;;  %v10268_v34 = vld [vmem:[#allocation21 + $0x1b4] sm:$0xf]  ;;  %v8916_v14 = vld [vmem:[#allocation21 + $0x3d8] sm:$0xf0] }
 0x330   :  { %v9108_v55 = vld [vmem:[#allocation21 + $0x558] sm:$0xf0] }
 0x332   :  { %5712 = vmatpush.bf16.msrb.mxu0 %v9371_v61  ;;  %5725 = vmatpush.bf16.msrb.mxu1 %v9563_v27  ;;  %v9227_v61 = vor.u32 %v10415_v60, %v9226_v53  ;;  %v9418_v27 = vld [vmem:[#allocation21 + $0x7b0] sm:$0xf] }
 0x333   :  { %5738 = vmatpush.bf16.msra.mxu2 %v8607_v42  ;;  %5751 = vmatpush.bf16.msra.mxu3 %v8799_v43  ;;  %v9419_v10 = vor.u32 %v10463_v62, %v9418_v27  ;;  %v8628_v42 = vld [vmem:[#allocation21 + $0x198] sm:$0xf0]  ;;  %v10400_v27 = vld [vmem:[#allocation21 + $0x5d4] sm:$0xf]  ;;  %v9180_v62 = vld [vmem:[#allocation21 + $0x5e8] sm:$0xf0] }
 0x334   :  { %v8631_v46 = vor.u32 %v10262_v40, %v8628_v42  ;;  %v9084_v42 = vld [vmem:[#allocation21 + $0x528] sm:$0xf0] }
 0x336   :  { %5713 = vmatpush.bf16.msrb.mxu0 %v9347_v0  ;;  %5726 = vmatpush.bf16.msrb.mxu1 %v9539_v15  ;;  %v8556_v0 = vld [vmem:[#allocation21 + $0x108] sm:$0xf0] }
 0x337   :  { %5739 = vmatpush.bf16.msra.mxu2 %v8583_v57  ;;  %5752 = vmatpush.bf16.msra.mxu3 %v8775_v59  ;;  %v8748_v15 = vld [vmem:[#allocation21 + $0x288] sm:$0xf0]  ;;  %v8559_v22 = vor.u32 %v10244_v63, %v8556_v0  ;;  %v10352_v59 = vld [vmem:[#allocation21 + $0x454] sm:$0xf] }
 0x338   :  { %v8751_v18 = vor.u32 %v10292_v48, %v8748_v15 }
 0x33a   :  { %5714 = vmatpush.bf16.msrb.mxu0 %v9323_v19  ;;  %5727 = vmatpush.bf16.msrb.mxu1 %v9515_v4  ;;  %v8532_v19 = vld [vmem:[#allocation21 + $0xd8] sm:$0xf0]  ;;  %v10286_v4 = vld [vmem:[#allocation21 + $0x244] sm:$0xf] }
 0x33b   :  { %5740 = vmatpush.bf16.msra.mxu2 %v8559_v22  ;;  %5753 = vmatpush.bf16.msra.mxu3 %v8751_v18  ;;  %v8535_v30 = vor.u32 %v10238_v3, %v8532_v19  ;;  %v8727_v6 = vor.u32 %v10286_v4, %v8724_v5  ;;  %v9183_v22 = vor.u32 %v10400_v27, %v9180_v62  ;;  %v10346_v18 = vld [vmem:[#allocation21 + $0x424] sm:$0xf]  ;;  %v10340_v4 = vld [vmem:[#allocation21 + $0x3f4] sm:$0xf]  ;;  %v8940_v5 = vld [vmem:[#allocation21 + $0x408] sm:$0xf0] }
 0x33c   :  { %v10370_v27 = vld [vmem:[#allocation21 + $0x4e4] sm:$0xf]  ;;  %v9060_v62 = vld [vmem:[#allocation21 + $0x4f8] sm:$0xf0] }
 0x33e   :  { %5715 = vmatpush.bf16.msrb.mxu0 %v9299_v31  ;;  %5728 = vmatpush.bf16.msrb.mxu1 %v9491_v17  ;;  %v10226_v31 = vld [vmem:[#allocation21 + $0x64] sm:$0xf] }
 0x33f   :  { %5741 = vmatpush.bf16.msra.mxu2 %v8535_v30  ;;  %5754 = vmatpush.bf16.msra.mxu3 %v8727_v6  ;;  %v8487_v17 = vor.u32 %v10226_v31, %v8484_v13  ;;  %v10388_v6 = vld [vmem:[#allocation21 + $0x574] sm:$0xf]  ;;  %v10334_v13 = vld [vmem:[#allocation21 + $0x3c4] sm:$0xf] }
 0x340   :  { %v9135_v31 = vor.u32 %v10388_v6, %v9132_v36  ;;  %v10364_v6 = vld [vmem:[#allocation21 + $0x4b4] sm:$0xf]  ;;  %v9036_v36 = vld [vmem:[#allocation21 + $0x4c8] sm:$0xf0] }
 0x342   :  { %5716 = vmatpush.bf16.msrb.mxu0 %v9275_v35  ;;  %5729 = vmatpush.bf16.msrb.mxu1 %v9467_v50  ;;  %v8652_v35 = vld [vmem:[#allocation21 + $0x1c8] sm:$0xf0]  ;;  %v10214_v50 = vld [vmem:[#allocation21 + $0x4] sm:$0xf] }
 0x343   :  { %5742 = vmatpush.bf16.msra.mxu2 %v8511_v23  ;;  %5755 = vmatpush.bf16.msra.mxu3 %v8703_v9  ;;  %v8655_v37 = vor.u32 %v10268_v34, %v8652_v35  ;;  %v8439_v41 = vor.u32 %v10214_v50, %v8436_v28  ;;  %v3890_v23 = vperm.slane %v11400_v47, 2  ;;  %v8943_v9 = vor.u32 %v10340_v4, %v8940_v5  ;;  %v8892_v50 = vld [vmem:[#allocation21 + $0x3a8] sm:$0xf0] }
 0x344   :  { %v8919_v34 = vor.u32 %v10334_v13, %v8916_v14 }
 0x346   :  { %5717 = vmatpush.bf16.msrb.mxu0 %v9251_v49  ;;  %5730 = vmatpush.bf16.msrb.mxu1 %v9443_v11 }
 0x347   :  { %5743 = vmatpush.bf16.msra.mxu2 %v8487_v17  ;;  %5756 = vmatpush.bf16.msra.mxu3 %v8679_v20  ;;  %v10382_v17 = vld [vmem:[#allocation21 + $0x544] sm:$0xf] }
 0x348   :  { %v9111_v35 = vor.u32 %v10382_v17, %v9108_v55  ;;  %v9039_v55 = vor.u32 %v10364_v6, %v9036_v36  ;;  %v8538_v6 = vld [vmem:[#allocation21 + $0xc8] sm:$0xf]  ;;  %v10242_v36 = vld [vmem:[#allocation21 + $0xdc] sm:$0xf0] }
 0x34a   :  { %5718 = vmatpush.bf16.msrb.mxu0 %v9227_v61  ;;  %5731 = vmatpush.bf16.msrb.mxu1 %v9419_v10  ;;  %v8988_v61 = vld [vmem:[#allocation21 + $0x468] sm:$0xf0] }
 0x34b   :  { %5744 = vmatpush.bf16.msra.mxu2 %v8463_v25  ;;  %5757 = vmatpush.bf16.msra.mxu3 %v8655_v37  ;;  %v8991_v15 = vor.u32 %v10352_v59, %v8988_v61  ;;  %v3892_v37 = vperm.slane %v11400_v47, 4 }
 0x34e   :  { %5719 = vmatpush.bf16.msrb.mxu0 %v9203_v1  ;;  %5732 = vmatpush.bf16.msrb.mxu1 %v9395_v56  ;;  %v10394_v1 = vld [vmem:[#allocation21 + $0x5a4] sm:$0xf]  ;;  %v8967_v56 = vor.u32 %v10346_v18, %v8964_v2  ;;  %v9348_v2 = vld [vmem:[#allocation21 + $0x738] sm:$0xf0] }
 0x34f   :  { %5745 = vmatpush.bf16.msra.mxu2 %v8439_v41  ;;  %5758 = vmatpush.bf16.msra.mxu3 %v8631_v46  ;;  %v9159_v30 = vor.u32 %v10394_v1, %v9156_v26  ;;  %v10376_v41 = vld [vmem:[#allocation21 + $0x514] sm:$0xf]  ;;  %v10490_v1 = vld [vmem:[#allocation21 + $0x8a4] sm:$0xf] }
 0x350   :  { %v10496_v46 = vld [vmem:[#allocation21 + $0x8d4] sm:$0xf] }
 0x37e   :  { %v11396_v7 = vpop.f32.mrf.mxu0  ;;  %v11398_v29 = vpop.f32.mrf.mxu1 }
 0x383   :  { %v3702_v38 = vpop.f32.mrf.mxu2  ;;  %v3715_v32 = vpop.f32.mrf.mxu3 }
 0x386   :  { %v3730_v43 = vpop.f32.mrf.mxu0  ;;  %v3743_v44 = vpop.f32.mrf.mxu1 }
 0x387   :  { %v10448_v43 = vld [vmem:[#allocation21 + $0x754] sm:$0xf]  ;;  %v9372_v44 = vld [vmem:[#allocation21 + $0x768] sm:$0xf0] }
 0x38b   :  { %v3704_v49 = vpop.f32.mrf.mxu2  ;;  %v3717_v51 = vpop.f32.mrf.mxu3 }
 0x38e   :  { %v3817_v11 = vpop.f32.mrf.mxu0  ;;  %v3830_v57 = vpop.f32.mrf.mxu1 }
 0x38f   :  { %v3818_v12 = vadd.f32 %v3817_v11, %v3702_v38  ;;  %v3831_v58 = vadd.f32 %v3830_v57, %v3715_v32  ;;  %v3893_v38 = vperm.slane %v11400_v47, 5  ;;  %v10328_v32 = vld [vmem:[#allocation21 + $0x394] sm:$0xf]  ;;  %v9087_v47 = vor.u32 %v10376_v41, %v9084_v42  ;;  %v8802_v41 = vld [vmem:[#allocation21 + $0x2d8] sm:$0xf] }
 0x390   :  { %v10308_v42 = vld [vmem:[#allocation21 + $0x2ec] sm:$0xf0] }
 0x391   :  { %v3900_v53 = vadd.f32 %v3888_v52, %v3818_v12  ;;  %v3901_v60 = vadd.f32 %v3889_v39, %v3831_v58  ;;  %v8895_v39 = vor.u32 %v10328_v32, %v8892_v50  ;;  %v10322_v12 = vld [vmem:[#allocation21 + $0x364] sm:$0xf]  ;;  %v8868_v58 = vld [vmem:[#allocation21 + $0x378] sm:$0xf0] }
 0x392   :  { %v10478_v32 = vld [vmem:[#allocation21 + $0x844] sm:$0xf]  ;;  %v9492_v50 = vld [vmem:[#allocation21 + $0x858] sm:$0xf0] }
 0x393   :  { %v3906_v63 = vmax.f32 %v3900_v53, 0.0  ;;  %v3907_v10 = vmax.f32 %v3901_v60, 0.0  ;;  %v3754_v0 = vpop.f32.mrf.mxu2  ;;  %v3767_v48 = vpop.f32.mrf.mxu3  ;;  %v9375_v60 = vor.u32 %v10448_v43, %v9372_v44 }
 0x395   :  { %v11404_v33 = vpack.c.bf16 %v3906_v63, %v3906_v63  ;;  %v11406_v54 = vpack.c.bf16 %v3907_v10, %v3907_v10  ;;  %v10442_v63 = vld [vmem:[#allocation21 + $0x724] sm:$0xf] }
 0x396   :  { %v3819_v3 = vpop.f32.mrf.mxu0  ;;  %v3832_v19 = vpop.f32.mrf.mxu1  ;;  %v9351_v4 = vor.u32 %v10442_v63, %v9348_v2  ;;  %v10248_v2 = vld [vmem:[#allocation21 + $0x10c] sm:$0xf0] }
 0x397   :  { %5668 = vmatmul.bf16.vlgmr.msra.gmra.mxu0 %v11404_v33  ;;  %5681 = vmatmul.bf16.vlgmr.msra.gmra.mxu1 %v11406_v54  ;;  %v8871_v3 = vor.u32 %v10322_v12, %v8868_v58  ;;  %v9063_v19 = vor.u32 %v10370_v27, %v9060_v62  ;;  %v8778_v12 = vld [vmem:[#allocation21 + $0x2a8] sm:$0xf]  ;;  %v10302_v58 = vld [vmem:[#allocation21 + $0x2bc] sm:$0xf0]  ;;  %v10418_v27 = vld [vmem:[#allocation21 + $0x664] sm:$0xf] }
 0x398   :  { %5764 = vmatpush.bf16.msra.mxu0 %v8991_v15  ;;  %5777 = vmatpush.bf16.msra.mxu1 %v9183_v22  ;;  %v9252_v62 = vld [vmem:[#allocation21 + $0x678] sm:$0xf0] }
 0x39b   :  { %v3756_v45 = vpop.f32.mrf.mxu2  ;;  %v3769_v8 = vpop.f32.mrf.mxu3 }
 0x39c   :  { %5765 = vmatpush.bf16.msra.mxu0 %v8967_v56  ;;  %5778 = vmatpush.bf16.msra.mxu1 %v9159_v30  ;;  %v10316_v56 = vld [vmem:[#allocation21 + $0x334] sm:$0xf]  ;;  %v8844_v30 = vld [vmem:[#allocation21 + $0x348] sm:$0xf0] }
 0x39d   :  { %v10436_v45 = vld [vmem:[#allocation21 + $0x6f4] sm:$0xf]  ;;  %v8847_v17 = vor.u32 %v10316_v56, %v8844_v30 }
 0x39e   :  { %v3843_v20 = vpop.f32.mrf.mxu0  ;;  %v3856_v21 = vpop.f32.mrf.mxu1 }
 0x39f   :  { %v3844_v24 = vadd.f32 %v3843_v20, %v11396_v7  ;;  %v3857_v25 = vadd.f32 %v3856_v21, %v11398_v29  ;;  %v9564_v7 = vld [vmem:[#allocation21 + $0x8e8] sm:$0xf0]  ;;  %v10310_v20 = vld [vmem:[#allocation21 + $0x304] sm:$0xf]  ;;  %v8820_v21 = vld [vmem:[#allocation21 + $0x318] sm:$0xf0] }
 0x3a0   :  { %5766 = vmatpush.bf16.msra.mxu0 %v8943_v9  ;;  %5779 = vmatpush.bf16.msra.mxu1 %v9135_v31  ;;  %v9567_v61 = vor.u32 %v10496_v46, %v9564_v7  ;;  %v10484_v9 = vld [vmem:[#allocation21 + $0x874] sm:$0xf]  ;;  %v9516_v31 = vld [vmem:[#allocation21 + $0x888] sm:$0xf0]  ;;  %v8823_v43 = vor.u32 %v10310_v20, %v8820_v21  ;;  %v9495_v7 = vor.u32 %v10478_v32, %v9492_v50  ;;  %v9396_v21 = vld [vmem:[#allocation21 + $0x798] sm:$0xf0] }
 0x3a1   :  { %v3902_v28 = vadd.f32 %v3890_v23, %v3844_v24  ;;  %v3903_v40 = vadd.f32 %v3891_v16, %v3857_v25  ;;  %v9324_v16 = vld [vmem:[#allocation21 + $0x708] sm:$0xf0]  ;;  %v10358_v24 = vld [vmem:[#allocation21 + $0x484] sm:$0xf]  ;;  %v9186_v32 = vld [vmem:[#allocation21 + $0x5d8] sm:$0xf] }
 0x3a2   :  { %v9327_v25 = vor.u32 %v10436_v45, %v9324_v16  ;;  %v8730_v45 = vld [vmem:[#allocation21 + $0x248] sm:$0xf]  ;;  %v10290_v16 = vld [vmem:[#allocation21 + $0x25c] sm:$0xf0]  ;;  %v10404_v50 = vld [vmem:[#allocation21 + $0x5ec] sm:$0xf0] }
 0x3a3   :  { %v3908_v49 = vmax.f32 %v3902_v28, 0.0  ;;  %v3909_v29 = vmax.f32 %v3903_v40, 0.0  ;;  %v3869_v51 = vpop.f32.mrf.mxu2  ;;  %v3882_v52 = vpop.f32.mrf.mxu3  ;;  %v8610_v28 = vld [vmem:[#allocation21 + $0x158] sm:$0xf]  ;;  %v10260_v40 = vld [vmem:[#allocation21 + $0x16c] sm:$0xf0]  ;;  %v8731_v20 = vor.u32 %v10290_v16, %v8730_v45 }
 0x3a4   :  { %5767 = vmatpush.bf16.msra.mxu0 %v8919_v34  ;;  %5780 = vmatpush.bf16.msra.mxu1 %v9111_v35  ;;  %v3870_v11 = vadd.f32 %v3869_v51, %v3754_v0  ;;  %v3883_v57 = vadd.f32 %v3882_v52, %v3767_v48  ;;  %v9540_v0 = vld [vmem:[#allocation21 + $0x8b8] sm:$0xf0]  ;;  %v9519_v34 = vor.u32 %v10484_v9, %v9516_v31  ;;  %v9570_v45 = vld [vmem:[#allocation21 + $0x8d8] sm:$0xf]  ;;  %v10500_v16 = vld [vmem:[#allocation21 + $0x8ec] sm:$0xf0] }
 0x3a5   :  { %v11416_v59 = vpack.c.bf16 %v3908_v49, %v3908_v49  ;;  %v11418_v53 = vpack.c.bf16 %v3909_v29, %v3909_v29  ;;  %v9543_v5 = vor.u32 %v10490_v1, %v9540_v0  ;;  %v9012_v35 = vld [vmem:[#allocation21 + $0x498] sm:$0xf0]  ;;  %v10424_v49 = vld [vmem:[#allocation21 + $0x694] sm:$0xf]  ;;  %v9276_v29 = vld [vmem:[#allocation21 + $0x6a8] sm:$0xf0]  ;;  %v8611_v51 = vor.u32 %v10260_v40, %v8610_v28 }
 0x3a6   :  { %v3904_v10 = vadd.f32 %v3892_v37, %v3870_v11  ;;  %v3905_v15 = vadd.f32 %v3893_v38, %v3883_v57  ;;  %v3845_v22 = vpop.f32.mrf.mxu0  ;;  %v3858_v18 = vpop.f32.mrf.mxu1  ;;  %v10430_v37 = vld [vmem:[#allocation21 + $0x6c4] sm:$0xf]  ;;  %v9300_v38 = vld [vmem:[#allocation21 + $0x6d8] sm:$0xf0]  ;;  %v9015_v44 = vor.u32 %v10358_v24, %v9012_v35  ;;  %v8803_v52 = vor.u32 %v10308_v42, %v8802_v41  ;;  %v9468_v11 = vld [vmem:[#allocation21 + $0x828] sm:$0xf0] }
 0x3a7   :  { %5694 = vmatmul.bf16.vlgmr.msrb.gmra.mxu2 %v11416_v59  ;;  %5707 = vmatmul.bf16.vlgmr.msrb.gmra.mxu3 %v11418_v53  ;;  %v9303_v46 = vor.u32 %v10430_v37, %v9300_v38  ;;  %v8586_v57 = vld [vmem:[#allocation21 + $0x128] sm:$0xf]  ;;  %v9444_v22 = vld [vmem:[#allocation21 + $0x7f8] sm:$0xf0]  ;;  %v8562_v18 = vld [vmem:[#allocation21 + $0xf8] sm:$0xf] }
 0x3a8   :  { %v3910_v48 = vmax.f32 %v3904_v10, 0.0  ;;  %v3911_v26 = vmax.f32 %v3905_v15, 0.0  ;;  %5768 = vmatpush.bf16.msra.mxu0 %v8895_v39  ;;  %5781 = vmatpush.bf16.msra.mxu1 %v9087_v47  ;;  %v10472_v39 = vld [vmem:[#allocation21 + $0x814] sm:$0xf]  ;;  %v10254_v47 = vld [vmem:[#allocation21 + $0x13c] sm:$0xf0]  ;;  %v8779_v10 = vor.u32 %v10302_v58, %v8778_v12  ;;  %v8563_v56 = vor.u32 %v10248_v2, %v8562_v18 }
 0x3a9   :  { %5790 = vmatpush.bf16.msrb.mxu2 %v9375_v60  ;;  %5803 = vmatpush.bf16.msrb.mxu3 %v9567_v61  ;;  %v9279_v60 = vor.u32 %v10424_v49, %v9276_v29  ;;  %v9471_v61 = vor.u32 %v10472_v39, %v9468_v11  ;;  %v8587_v63 = vor.u32 %v10254_v47, %v8586_v57  ;;  %v10466_v15 = vld [vmem:[#allocation21 + $0x7e4] sm:$0xf]  ;;  %v8754_v1 = vld [vmem:[#allocation21 + $0x278] sm:$0xf]  ;;  %v10296_v0 = vld [vmem:[#allocation21 + $0x28c] sm:$0xf0] }
 0x3aa   :  { %v11422_v8 = vpack.c.bf16 %v3910_v48, %v3910_v48  ;;  %v11424_v23 = vpack.c.bf16 %v3911_v26, %v3911_v26  ;;  %v9255_v48 = vor.u32 %v10418_v27, %v9252_v62  ;;  %v9447_v26 = vor.u32 %v10466_v15, %v9444_v22  ;;  %v8514_v24 = vld [vmem:[#allocation21 + $0x98] sm:$0xf]  ;;  %v10284_v35 = vld [vmem:[#allocation21 + $0x22c] sm:$0xf0]  ;;  %v8682_v49 = vld [vmem:[#allocation21 + $0x1e8] sm:$0xf] }
 0x3ab   :  { %v3871_v13 = vpop.f32.mrf.mxu2  ;;  %v3884_v14 = vpop.f32.mrf.mxu3  ;;  %v8755_v30 = vor.u32 %v10296_v0, %v8754_v1  ;;  %v8994_v37 = vld [vmem:[#allocation21 + $0x458] sm:$0xf]  ;;  %v10356_v38 = vld [vmem:[#allocation21 + $0x46c] sm:$0xf0]  ;;  %v10278_v29 = vld [vmem:[#allocation21 + $0x1fc] sm:$0xf0] }
 0x3ac   :  { %5769 = vmatpush.bf16.msra.mxu0 %v8871_v3  ;;  %5782 = vmatpush.bf16.msra.mxu1 %v9063_v19  ;;  %v10412_v3 = vld [vmem:[#allocation21 + $0x634] sm:$0xf]  ;;  %v9228_v19 = vld [vmem:[#allocation21 + $0x648] sm:$0xf0]  ;;  %v10406_v13 = vld [vmem:[#allocation21 + $0x604] sm:$0xf]  ;;  %v8683_v47 = vor.u32 %v10278_v29, %v8682_v49 }
 0x3ad   :  { %5791 = vmatpush.bf16.msrb.mxu2 %v9351_v4  ;;  %5804 = vmatpush.bf16.msrb.mxu3 %v9543_v5  ;;  %v10460_v4 = vld [vmem:[#allocation21 + $0x7b4] sm:$0xf]  ;;  %v9420_v5 = vld [vmem:[#allocation21 + $0x7c8] sm:$0xf0]  ;;  %v9231_v9 = vor.u32 %v10412_v3, %v9228_v19  ;;  %v9204_v14 = vld [vmem:[#allocation21 + $0x618] sm:$0xf0] }
 0x3ae   :  { %5720 = vmatmul.bf16.vlgmr.msrb.gmra.mxu0 %v11422_v8  ;;  %5733 = vmatmul.bf16.vlgmr.msrb.gmra.mxu1 %v11424_v23  ;;  %v9423_v31 = vor.u32 %v10460_v4, %v9420_v5  ;;  %v9207_v28 = vor.u32 %v10406_v13, %v9204_v14  ;;  %v9162_v39 = vld [vmem:[#allocation21 + $0x5a8] sm:$0xf]  ;;  %v10398_v11 = vld [vmem:[#allocation21 + $0x5bc] sm:$0xf0]  ;;  %v8466_v12 = vld [vmem:[#allocation21 + $0x38] sm:$0xf] }
 0x3af   :  { %v10224_v58 = vld [vmem:[#allocation21 + $0x4c] sm:$0xf0]  ;;  %v8658_v27 = vld [vmem:[#allocation21 + $0x1b8] sm:$0xf]  ;;  %v8442_v1 = vld [vmem:[#allocation21 + $0x8] sm:$0xf] }
 0x3b0   :  { %5770 = vmatpush.bf16.msra.mxu0 %v8847_v17  ;;  %5783 = vmatpush.bf16.msra.mxu1 %v9039_v55  ;;  %v10454_v17 = vld [vmem:[#allocation21 + $0x784] sm:$0xf]  ;;  %v8539_v55 = vor.u32 %v10242_v36, %v8538_v6  ;;  %v10272_v62 = vld [vmem:[#allocation21 + $0x1cc] sm:$0xf0]  ;;  %v9138_v15 = vld [vmem:[#allocation21 + $0x578] sm:$0xf]  ;;  %v8467_v18 = vor.u32 %v10224_v58, %v8466_v12 }
 0x3b1   :  { %5792 = vmatpush.bf16.msrb.mxu2 %v9327_v25  ;;  %5805 = vmatpush.bf16.msrb.mxu3 %v9519_v34  ;;  %v10236_v25 = vld [vmem:[#allocation21 + $0xac] sm:$0xf0]  ;;  %v8706_v34 = vld [vmem:[#allocation21 + $0x218] sm:$0xf]  ;;  %v9399_v40 = vor.u32 %v10454_v17, %v9396_v21  ;;  %v8659_v2 = vor.u32 %v10272_v62, %v8658_v27  ;;  %v10218_v0 = vld [vmem:[#allocation21 + $0x1c] sm:$0xf0]  ;;  %v9571_v21 = vor.u32 %v10500_v16, %v9570_v45 }
 0x3b2   :  { %v8515_v41 = vor.u32 %v10236_v25, %v8514_v24  ;;  %v8707_v42 = vor.u32 %v10284_v35, %v8706_v34  ;;  %v10392_v22 = vld [vmem:[#allocation21 + $0x58c] sm:$0xf0]  ;;  %v10266_v19 = vld [vmem:[#allocation21 + $0x19c] sm:$0xf0]  ;;  %v9114_v4 = vld [vmem:[#allocation21 + $0x548] sm:$0xf] }
 0x3b3   :  { %v9139_v3 = vor.u32 %v10392_v22, %v9138_v15  ;;  %v10386_v5 = vld [vmem:[#allocation21 + $0x55c] sm:$0xf0]  ;;  %v9378_v6 = vld [vmem:[#allocation21 + $0x758] sm:$0xf]  ;;  %v10452_v36 = vld [vmem:[#allocation21 + $0x76c] sm:$0xf0] }
 0x3b4   :  { %5771 = vmatpush.bf16.msra.mxu0 %v8823_v43  ;;  %5784 = vmatpush.bf16.msra.mxu1 %v9015_v44  ;;  %v8490_v43 = vld [vmem:[#allocation21 + $0x68] sm:$0xf]  ;;  %v10230_v44 = vld [vmem:[#allocation21 + $0x7c] sm:$0xf0]  ;;  %v9115_v14 = vor.u32 %v10386_v5, %v9114_v4  ;;  %v8898_v17 = vld [vmem:[#allocation21 + $0x398] sm:$0xf] }
 0x3b5   :  { %5793 = vmatpush.bf16.msrb.mxu2 %v9303_v46  ;;  %5806 = vmatpush.bf16.msrb.mxu3 %v9495_v7  ;;  %v8995_v46 = vor.u32 %v10356_v38, %v8994_v37  ;;  %v9187_v7 = vor.u32 %v10404_v50, %v9186_v32  ;;  %v8491_v57 = vor.u32 %v10230_v44, %v8490_v43  ;;  %v9090_v24 = vld [vmem:[#allocation21 + $0x518] sm:$0xf]  ;;  %v10380_v25 = vld [vmem:[#allocation21 + $0x52c] sm:$0xf0]  ;;  %v9354_v34 = vld [vmem:[#allocation21 + $0x728] sm:$0xf] }
 0x3b6   :  { %v10446_v35 = vld [vmem:[#allocation21 + $0x73c] sm:$0xf0]  ;;  %v9546_v37 = vld [vmem:[#allocation21 + $0x8a8] sm:$0xf]  ;;  %v9091_v50 = vor.u32 %v10380_v25, %v9090_v24  ;;  %v9522_v49 = vld [vmem:[#allocation21 + $0x878] sm:$0xf] }
 0x3b7   :  { %5746 = vmatmul.bf16.vlgmr.msra.gmra.mxu2 %v11404_v33  ;;  %5759 = vmatmul.bf16.vlgmr.msra.gmra.mxu3 %v11406_v54  ;;  %v10494_v38 = vld [vmem:[#allocation21 + $0x8bc] sm:$0xf0]  ;;  %v9066_v43 = vld [vmem:[#allocation21 + $0x4e8] sm:$0xf]  ;;  %v10488_v29 = vld [vmem:[#allocation21 + $0x88c] sm:$0xf0] }
 0x3b8   :  { %5816 = vmatpush.bf16.msrb.mxu0 %v8611_v51  ;;  %5829 = vmatpush.bf16.msrb.mxu1 %v8803_v52  ;;  %v8970_v51 = vld [vmem:[#allocation21 + $0x428] sm:$0xf]  ;;  %v10350_v52 = vld [vmem:[#allocation21 + $0x43c] sm:$0xf0]  ;;  %v9042_v12 = vld [vmem:[#allocation21 + $0x4b8] sm:$0xf] }
 0x3b9   :  { %5794 = vmatpush.bf16.msrb.mxu2 %v9279_v60  ;;  %5807 = vmatpush.bf16.msrb.mxu3 %v9471_v61  ;;  %v8971_v60 = vor.u32 %v10350_v52, %v8970_v51  ;;  %v9163_v61 = vor.u32 %v10398_v11, %v9162_v39  ;;  %v10374_v44 = vld [vmem:[#allocation21 + $0x4fc] sm:$0xf0]  ;;  %v8850_v39 = vld [vmem:[#allocation21 + $0x338] sm:$0xf]  ;;  %v10320_v11 = vld [vmem:[#allocation21 + $0x34c] sm:$0xf0] }
 0x3ba   :  { %v9067_v52 = vor.u32 %v10374_v44, %v9066_v43  ;;  %v10368_v58 = vld [vmem:[#allocation21 + $0x4cc] sm:$0xf0]  ;;  %v9498_v27 = vld [vmem:[#allocation21 + $0x848] sm:$0xf]  ;;  %v10482_v62 = vld [vmem:[#allocation21 + $0x85c] sm:$0xf0] }
 0x3bb   :  { %v8826_v15 = vld [vmem:[#allocation21 + $0x308] sm:$0xf]  ;;  %v10314_v22 = vld [vmem:[#allocation21 + $0x31c] sm:$0xf0]  ;;  %v10305_v4 = vld [vmem:[#allocation21 + $0x2dc] sm:$0xf] }
 0x3bc   :  { %5817 = vmatpush.bf16.msrb.mxu0 %v8587_v63  ;;  %5830 = vmatpush.bf16.msrb.mxu1 %v8779_v10  ;;  %v8946_v63 = vld [vmem:[#allocation21 + $0x3f8] sm:$0xf]  ;;  %v10344_v10 = vld [vmem:[#allocation21 + $0x40c] sm:$0xf0]  ;;  %v8804_v5 = vld [vmem:[#allocation21 + $0x2f0] sm:$0xf0] }
 0x3bd   :  { %5795 = vmatpush.bf16.msrb.mxu2 %v9255_v48  ;;  %5808 = vmatpush.bf16.msrb.mxu3 %v9447_v26  ;;  %v8634_v48 = vld [vmem:[#allocation21 + $0x188] sm:$0xf]  ;;  %v8947_v26 = vor.u32 %v10344_v10, %v8946_v63  ;;  %v8851_v63 = vor.u32 %v10320_v11, %v8850_v39  ;;  %v9043_v10 = vor.u32 %v10368_v58, %v9042_v12  ;;  %v10299_v24 = vld [vmem:[#allocation21 + $0x2ac] sm:$0xf]  ;;  %v8780_v25 = vld [vmem:[#allocation21 + $0x2c0] sm:$0xf0] }
 0x3be   :  { %5772 = vmatmul.bf16.vlgmr.msra.gmra.mxu0 %v11416_v59  ;;  %5785 = vmatmul.bf16.vlgmr.msra.gmra.mxu1 %v11418_v53  ;;  %v10293_v43 = vld [vmem:[#allocation21 + $0x27c] sm:$0xf]  ;;  %v8756_v44 = vld [vmem:[#allocation21 + $0x290] sm:$0xf0]  ;;  %v10458_v11 = vld [vmem:[#allocation21 + $0x79c] sm:$0xf0] }
 0x3bf   :  { %v8759_v39 = vor.u32 %v10293_v43, %v8756_v44  ;;  %v10287_v12 = vld [vmem:[#allocation21 + $0x24c] sm:$0xf]  ;;  %v8732_v58 = vld [vmem:[#allocation21 + $0x260] sm:$0xf0] }
 0x3c0   :  { %5818 = vmatpush.bf16.msrb.mxu0 %v8563_v56  ;;  %5831 = vmatpush.bf16.msrb.mxu1 %v8755_v30  ;;  %v8922_v56 = vld [vmem:[#allocation21 + $0x3c8] sm:$0xf]  ;;  %v10338_v30 = vld [vmem:[#allocation21 + $0x3dc] sm:$0xf0]  ;;  %v10215_v43 = vld [vmem:[#allocation21 + $0xc] sm:$0xf] }
 0x3c1   :  { %5796 = vmatpush.bf16.msrb.mxu2 %v9231_v9  ;;  %5809 = vmatpush.bf16.msrb.mxu3 %v9423_v31  ;;  %v8443_v9 = vor.u32 %v10218_v0, %v8442_v1  ;;  %v8635_v31 = vor.u32 %v10266_v19, %v8634_v48  ;;  %v8923_v13 = vor.u32 %v10338_v30, %v8922_v56  ;;  %v10362_v0 = vld [vmem:[#allocation21 + $0x49c] sm:$0xf0]  ;;  %v9282_v48 = vld [vmem:[#allocation21 + $0x698] sm:$0xf]  ;;  %v10476_v19 = vld [vmem:[#allocation21 + $0x82c] sm:$0xf0] }
 0x3c2   :  { %v9499_v1 = vor.u32 %v10482_v62, %v9498_v27  ;;  %v10257_v56 = vld [vmem:[#allocation21 + $0x15c] sm:$0xf]  ;;  %v8612_v30 = vld [vmem:[#allocation21 + $0x170] sm:$0xf0]  ;;  %v8444_v44 = vld [vmem:[#allocation21 + $0x20] sm:$0xf0] }
 0x3c3   :  { %v10401_v27 = vld [vmem:[#allocation21 + $0x5dc] sm:$0xf]  ;;  %v9188_v62 = vld [vmem:[#allocation21 + $0x5f0] sm:$0xf0] }
 0x3c4   :  { %5819 = vmatpush.bf16.msrb.mxu0 %v8539_v55  ;;  %5832 = vmatpush.bf16.msrb.mxu1 %v8731_v20  ;;  %v10332_v55 = vld [vmem:[#allocation21 + $0x3ac] sm:$0xf0]  ;;  %v9379_v20 = vor.u32 %v10452_v36, %v9378_v6  ;;  %v8827_v6 = vor.u32 %v10314_v22, %v8826_v15  ;;  %v8735_v22 = vor.u32 %v10287_v12, %v8732_v58  ;;  %v10497_v12 = vld [vmem:[#allocation21 + $0x8dc] sm:$0xf]  ;;  %v9572_v58 = vld [vmem:[#allocation21 + $0x8f0] sm:$0xf0] }
 0x3c5   :  { %5797 = vmatpush.bf16.msrb.mxu2 %v9207_v28  ;;  %5810 = vmatpush.bf16.msrb.mxu3 %v9399_v40  ;;  %v8899_v32 = vor.u32 %v10332_v55, %v8898_v17  ;;  %v8874_v28 = vld [vmem:[#allocation21 + $0x368] sm:$0xf]  ;;  %v10326_v40 = vld [vmem:[#allocation21 + $0x37c] sm:$0xf0] }
 0x3c6   :  { %v8875_v51 = vor.u32 %v10326_v40, %v8874_v28  ;;  %v9450_v17 = vld [vmem:[#allocation21 + $0x7e8] sm:$0xf]  ;;  %v10470_v55 = vld [vmem:[#allocation21 + $0x7fc] sm:$0xf0]  ;;  %v9426_v28 = vld [vmem:[#allocation21 + $0x7b8] sm:$0xf] }
 0x3c7   :  { %v10464_v40 = vld [vmem:[#allocation21 + $0x7cc] sm:$0xf0] }
 0x3c8   :  { %5820 = vmatpush.bf16.msrb.mxu0 %v8515_v41  ;;  %5833 = vmatpush.bf16.msrb.mxu1 %v8707_v42  ;;  %v9355_v41 = vor.u32 %v10446_v35, %v9354_v34  ;;  %v9547_v42 = vor.u32 %v10494_v38, %v9546_v37  ;;  %v9451_v35 = vor.u32 %v10470_v55, %v9450_v17  ;;  %v9234_v37 = vld [vmem:[#allocation21 + $0x638] sm:$0xf]  ;;  %v10416_v38 = vld [vmem:[#allocation21 + $0x64c] sm:$0xf0]  ;;  %v10389_v17 = vld [vmem:[#allocation21 + $0x57c] sm:$0xf] }
 0x3c9   :  { %5842 = vmatpush.bf16.msra.mxu2 %v8995_v46  ;;  %5855 = vmatpush.bf16.msra.mxu3 %v9187_v7  ;;  %v9330_v46 = vld [vmem:[#allocation21 + $0x6f8] sm:$0xf]  ;;  %v10440_v7 = vld [vmem:[#allocation21 + $0x70c] sm:$0xf0]  ;;  %v9140_v55 = vld [vmem:[#allocation21 + $0x590] sm:$0xf0] }
 0x3ca   :  { %5798 = vmatmul.bf16.vlgmr.msrb.gmra.mxu2 %v11422_v8  ;;  %5811 = vmatmul.bf16.vlgmr.msrb.gmra.mxu3 %v11424_v23 }
 0x3cc   :  { %5821 = vmatpush.bf16.msrb.mxu0 %v8491_v57  ;;  %5834 = vmatpush.bf16.msrb.mxu1 %v8683_v47  ;;  %v9331_v57 = vor.u32 %v10440_v7, %v9330_v46  ;;  %v9523_v47 = vor.u32 %v10488_v29, %v9522_v49  ;;  %v9235_v46 = vor.u32 %v10416_v38, %v9234_v37  ;;  %v9210_v49 = vld [vmem:[#allocation21 + $0x608] sm:$0xf]  ;;  %v10410_v29 = vld [vmem:[#allocation21 + $0x61c] sm:$0xf0]  ;;  %v10269_v37 = vld [vmem:[#allocation21 + $0x1bc] sm:$0xf] }
 0x3cd   :  { %5843 = vmatpush.bf16.msra.mxu2 %v8971_v60  ;;  %5856 = vmatpush.bf16.msra.mxu3 %v9163_v61  ;;  %v9306_v60 = vld [vmem:[#allocation21 + $0x6c8] sm:$0xf]  ;;  %v10434_v61 = vld [vmem:[#allocation21 + $0x6dc] sm:$0xf0]  ;;  %v9427_v7 = vor.u32 %v10464_v40, %v9426_v28  ;;  %v8660_v38 = vld [vmem:[#allocation21 + $0x1d0] sm:$0xf0] }
 0x3ce   :  { %v10383_v28 = vld [vmem:[#allocation21 + $0x54c] sm:$0xf]  ;;  %v9116_v40 = vld [vmem:[#allocation21 + $0x560] sm:$0xf0] }
 0x3d0   :  { %5822 = vmatpush.bf16.msrb.mxu0 %v8467_v18  ;;  %5835 = vmatpush.bf16.msrb.mxu1 %v8659_v2  ;;  %v9018_v18 = vld [vmem:[#allocation21 + $0x488] sm:$0xf]  ;;  %v9307_v2 = vor.u32 %v10434_v61, %v9306_v60  ;;  %v10353_v60 = vld [vmem:[#allocation21 + $0x45c] sm:$0xf]  ;;  %v8996_v61 = vld [vmem:[#allocation21 + $0x470] sm:$0xf0] }
 0x3d1   :  { %5844 = vmatpush.bf16.msra.mxu2 %v8947_v26  ;;  %5857 = vmatpush.bf16.msra.mxu3 %v9139_v3  ;;  %v10428_v26 = vld [vmem:[#allocation21 + $0x6ac] sm:$0xf0]  ;;  %v9474_v3 = vld [vmem:[#allocation21 + $0x818] sm:$0xf]  ;;  %v9019_v36 = vor.u32 %v10362_v0, %v9018_v18  ;;  %v10233_v18 = vld [vmem:[#allocation21 + $0x9c] sm:$0xf]  ;;  %v9191_v0 = vor.u32 %v10401_v27, %v9188_v62 }
 0x3d2   :  { %v9283_v45 = vor.u32 %v10428_v26, %v9282_v48  ;;  %v9475_v16 = vor.u32 %v10476_v19, %v9474_v3  ;;  %v10281_v48 = vld [vmem:[#allocation21 + $0x21c] sm:$0xf]  ;;  %v8708_v26 = vld [vmem:[#allocation21 + $0x230] sm:$0xf0]  ;;  %v10347_v3 = vld [vmem:[#allocation21 + $0x42c] sm:$0xf] }
 0x3d3   :  { %v8972_v19 = vld [vmem:[#allocation21 + $0x440] sm:$0xf0] }
 0x3d4   :  { %5823 = vmatpush.bf16.msrb.mxu0 %v8443_v9  ;;  %5836 = vmatpush.bf16.msrb.mxu1 %v8635_v31  ;;  %v9258_v9 = vld [vmem:[#allocation21 + $0x668] sm:$0xf]  ;;  %v10422_v31 = vld [vmem:[#allocation21 + $0x67c] sm:$0xf0] }
 0x3d5   :  { %5845 = vmatpush.bf16.msra.mxu2 %v8923_v13  ;;  %5858 = vmatpush.bf16.msra.mxu3 %v9115_v14  ;;  %v8615_v13 = vor.u32 %v10257_v56, %v8612_v30  ;;  %v8807_v14 = vor.u32 %v10305_v4, %v8804_v5  ;;  %v9259_v34 = vor.u32 %v10422_v31, %v9258_v9  ;;  %v10395_v56 = vld [vmem:[#allocation21 + $0x5ac] sm:$0xf]  ;;  %v9164_v30 = vld [vmem:[#allocation21 + $0x5c0] sm:$0xf0] }
 0x3d6   :  { %v8711_v5 = vor.u32 %v10281_v48, %v8708_v26  ;;  %v10275_v9 = vld [vmem:[#allocation21 + $0x1ec] sm:$0xf]  ;;  %v8684_v31 = vld [vmem:[#allocation21 + $0x200] sm:$0xf0] }
 0x3d7   :  { %5824 = vmatmul.bf16.vlgmr.msrb.gmra.mxu0 %v11404_v33  ;;  %5837 = vmatmul.bf16.vlgmr.msrb.gmra.mxu1 %v11406_v54  ;;  %v10491_v48 = vld [vmem:[#allocation21 + $0x8ac] sm:$0xf]  ;;  %v9548_v26 = vld [vmem:[#allocation21 + $0x8c0] sm:$0xf0] }
 0x3d8   :  { %5868 = vmatpush.bf16.msra.mxu0 %v9379_v20  ;;  %5881 = vmatpush.bf16.msra.mxu1 %v9571_v21  ;;  %v10251_v20 = vld [vmem:[#allocation21 + $0x12c] sm:$0xf]  ;;  %v8588_v21 = vld [vmem:[#allocation21 + $0x140] sm:$0xf0] }
 0x3d9   :  { %5846 = vmatpush.bf16.msra.mxu2 %v8899_v32  ;;  %5859 = vmatpush.bf16.msra.mxu3 %v9091_v50  ;;  %v8591_v32 = vor.u32 %v10251_v20, %v8588_v21  ;;  %v8783_v50 = vor.u32 %v10299_v24, %v8780_v25  ;;  %v8687_v21 = vor.u32 %v10275_v9, %v8684_v31  ;;  %v10221_v24 = vld [vmem:[#allocation21 + $0x3c] sm:$0xf]  ;;  %v8468_v25 = vld [vmem:[#allocation21 + $0x50] sm:$0xf0] }
 0x3da   :  { %v10485_v9 = vld [vmem:[#allocation21 + $0x87c] sm:$0xf]  ;;  %v9524_v31 = vld [vmem:[#allocation21 + $0x890] sm:$0xf0] }
 0x3dc   :  { %5869 = vmatpush.bf16.msra.mxu0 %v9355_v41  ;;  %5882 = vmatpush.bf16.msra.mxu1 %v9547_v42  ;;  %v10245_v41 = vld [vmem:[#allocation21 + $0xfc] sm:$0xf]  ;;  %v8564_v42 = vld [vmem:[#allocation21 + $0x110] sm:$0xf0] }
 0x3dd   :  { %5847 = vmatpush.bf16.msra.mxu2 %v8875_v51  ;;  %5860 = vmatpush.bf16.msra.mxu3 %v9067_v52  ;;  %v9402_v51 = vld [vmem:[#allocation21 + $0x788] sm:$0xf]  ;;  %v8567_v52 = vor.u32 %v10245_v41, %v8564_v42  ;;  %v8471_v41 = vor.u32 %v10221_v24, %v8468_v25  ;;  %v8663_v42 = vor.u32 %v10269_v37, %v8660_v38  ;;  %v9020_v25 = vld [vmem:[#allocation21 + $0x4a0] sm:$0xf0]  ;;  %v10479_v37 = vld [vmem:[#allocation21 + $0x84c] sm:$0xf] }
 0x3de   :  { %v9527_v24 = vor.u32 %v10485_v9, %v9524_v31  ;;  %v9500_v38 = vld [vmem:[#allocation21 + $0x860] sm:$0xf0]  ;;  %v10243_v9 = vld [vmem:[#allocation21 + $0xe4] sm:$0xf0]  ;;  %v8738_v31 = vld [vmem:[#allocation21 + $0x250] sm:$0xf] }
 0x3e0   :  { %5870 = vmatpush.bf16.msra.mxu0 %v9331_v57  ;;  %5883 = vmatpush.bf16.msra.mxu1 %v9523_v47  ;;  %v10239_v57 = vld [vmem:[#allocation21 + $0xcc] sm:$0xf]  ;;  %v8540_v47 = vld [vmem:[#allocation21 + $0xe0] sm:$0xf0] }
 0x3e1   :  { %5848 = vmatpush.bf16.msra.mxu2 %v8851_v63  ;;  %5861 = vmatpush.bf16.msra.mxu3 %v9043_v10  ;;  %v9211_v63 = vor.u32 %v10410_v29, %v9210_v49  ;;  %v9403_v10 = vor.u32 %v10458_v11, %v9402_v51  ;;  %v8543_v15 = vor.u32 %v10239_v57, %v8540_v47  ;;  %v8636_v29 = vld [vmem:[#allocation21 + $0x1a0] sm:$0xf0]  ;;  %v10329_v51 = vld [vmem:[#allocation21 + $0x39c] sm:$0xf]  ;;  %v9092_v11 = vld [vmem:[#allocation21 + $0x530] sm:$0xf0] }
 0x3e2   :  { %v9119_v49 = vor.u32 %v10383_v28, %v9116_v40  ;;  %v10449_v57 = vld [vmem:[#allocation21 + $0x75c] sm:$0xf]  ;;  %v9380_v47 = vld [vmem:[#allocation21 + $0x770] sm:$0xf0]  ;;  %v8810_v28 = vld [vmem:[#allocation21 + $0x2e0] sm:$0xf] }
 0x3e3   :  { %v10309_v40 = vld [vmem:[#allocation21 + $0x2f4] sm:$0xf0] }
 0x3e4   :  { %5871 = vmatpush.bf16.msra.mxu0 %v9307_v2  ;;  %5884 = vmatpush.bf16.msra.mxu1 %v9499_v1  ;;  %v8516_v2 = vld [vmem:[#allocation21 + $0xb0] sm:$0xf0]  ;;  %v8999_v1 = vor.u32 %v10353_v60, %v8996_v61  ;;  %v8447_v60 = vor.u32 %v10215_v43, %v8444_v44  ;;  %v9503_v44 = vor.u32 %v10479_v37, %v9500_v38  ;;  %v8522_v37 = vld [vmem:[#allocation21 + $0xa0] sm:$0xf]  ;;  %v10237_v38 = vld [vmem:[#allocation21 + $0xb4] sm:$0xf0] }
 0x3e5   :  { %5849 = vmatpush.bf16.msra.mxu2 %v8827_v6  ;;  %5862 = vmatpush.bf16.msra.mxu3 %v9019_v36  ;;  %v8519_v4 = vor.u32 %v10233_v18, %v8516_v2  ;;  %v10227_v6 = vld [vmem:[#allocation21 + $0x6c] sm:$0xf]  ;;  %v8492_v36 = vld [vmem:[#allocation21 + $0x80] sm:$0xf0] }
 0x3e6   :  { %v8495_v20 = vor.u32 %v10227_v6, %v8492_v36  ;;  %v10371_v18 = vld [vmem:[#allocation21 + $0x4ec] sm:$0xf]  ;;  %v9068_v2 = vld [vmem:[#allocation21 + $0x500] sm:$0xf0]  ;;  %v10365_v6 = vld [vmem:[#allocation21 + $0x4bc] sm:$0xf] }
 0x3e7   :  { %v9044_v36 = vld [vmem:[#allocation21 + $0x4d0] sm:$0xf0] }
 0x3e8   :  { %5872 = vmatpush.bf16.msra.mxu0 %v9283_v45  ;;  %5885 = vmatpush.bf16.msra.mxu1 %v9475_v16  ;;  %v8975_v45 = vor.u32 %v10347_v3, %v8972_v19  ;;  %v9167_v16 = vor.u32 %v10395_v56, %v9164_v30  ;;  %v9071_v19 = vor.u32 %v10371_v18, %v9068_v2  ;;  %v10317_v56 = vld [vmem:[#allocation21 + $0x33c] sm:$0xf]  ;;  %v8852_v30 = vld [vmem:[#allocation21 + $0x350] sm:$0xf0]  ;;  %v10249_v18 = vld [vmem:[#allocation21 + $0x114] sm:$0xf0] }
 0x3e9   :  { %5894 = vmatpush.bf16.msrb.mxu2 %v8615_v13  ;;  %5907 = vmatpush.bf16.msrb.mxu3 %v8807_v14  ;;  %v10341_v13 = vld [vmem:[#allocation21 + $0x3fc] sm:$0xf]  ;;  %v8948_v14 = vld [vmem:[#allocation21 + $0x410] sm:$0xf0]  ;;  %v8762_v2 = vld [vmem:[#allocation21 + $0x280] sm:$0xf] }
 0x3ea   :  { %5850 = vmatmul.bf16.vlgmr.msra.gmra.mxu2 %v11416_v59  ;;  %5863 = vmatmul.bf16.vlgmr.msra.gmra.mxu3 %v11418_v53 }
 0x3ec   :  { %5873 = vmatpush.bf16.msra.mxu0 %v9259_v34  ;;  %5886 = vmatpush.bf16.msra.mxu1 %v9451_v35  ;;  %v8951_v34 = vor.u32 %v10341_v13, %v8948_v14  ;;  %v9143_v35 = vor.u32 %v10389_v17, %v9140_v55  ;;  %v8855_v13 = vor.u32 %v10317_v56, %v8852_v30  ;;  %v10311_v17 = vld [vmem:[#allocation21 + $0x30c] sm:$0xf]  ;;  %v8828_v55 = vld [vmem:[#allocation21 + $0x320] sm:$0xf0] }
 0x3ed   :  { %5895 = vmatpush.bf16.msrb.mxu2 %v8591_v32  ;;  %5908 = vmatpush.bf16.msrb.mxu3 %v8783_v50  ;;  %v10335_v32 = vld [vmem:[#allocation21 + $0x3cc] sm:$0xf]  ;;  %v8924_v50 = vld [vmem:[#allocation21 + $0x3e0] sm:$0xf0]  ;;  %v9047_v14 = vor.u32 %v10365_v6, %v9044_v36  ;;  %v10461_v6 = vld [vmem:[#allocation21 + $0x7bc] sm:$0xf] }
 0x3ee   :  { %v9428_v36 = vld [vmem:[#allocation21 + $0x7d0] sm:$0xf0] }
 0x3f0   :  { %5874 = vmatpush.bf16.msra.mxu0 %v9235_v46  ;;  %5887 = vmatpush.bf16.msra.mxu1 %v9427_v7  ;;  %v10263_v46 = vld [vmem:[#allocation21 + $0x18c] sm:$0xf]  ;;  %v8927_v7 = vor.u32 %v10335_v32, %v8924_v50  ;;  %v8618_v32 = vld [vmem:[#allocation21 + $0x160] sm:$0xf]  ;;  %v10261_v50 = vld [vmem:[#allocation21 + $0x174] sm:$0xf0] }
 0x3f1   :  { %5896 = vmatpush.bf16.msrb.mxu2 %v8567_v52  ;;  %5909 = vmatpush.bf16.msrb.mxu3 %v8759_v39  ;;  %v8900_v52 = vld [vmem:[#allocation21 + $0x3b0] sm:$0xf0]  ;;  %v10377_v39 = vld [vmem:[#allocation21 + $0x51c] sm:$0xf]  ;;  %v8639_v61 = vor.u32 %v10263_v46, %v8636_v29  ;;  %v8811_v29 = vor.u32 %v10309_v40, %v8810_v28  ;;  %v9002_v28 = vld [vmem:[#allocation21 + $0x460] sm:$0xf] }
 0x3f2   :  { %v8903_v27 = vor.u32 %v10329_v51, %v8900_v52  ;;  %v9095_v62 = vor.u32 %v10377_v39, %v9092_v11  ;;  %v10425_v46 = vld [vmem:[#allocation21 + $0x69c] sm:$0xf]  ;;  %v9476_v52 = vld [vmem:[#allocation21 + $0x830] sm:$0xf0]  ;;  %v8594_v39 = vld [vmem:[#allocation21 + $0x130] sm:$0xf] }
 0x3f3   :  { %v10473_v51 = vld [vmem:[#allocation21 + $0x81c] sm:$0xf]  ;;  %v10255_v11 = vld [vmem:[#allocation21 + $0x144] sm:$0xf0]  ;;  %v10357_v40 = vld [vmem:[#allocation21 + $0x474] sm:$0xf0] }
 0x3f4   :  { %5875 = vmatpush.bf16.msra.mxu0 %v9211_v63  ;;  %5888 = vmatpush.bf16.msra.mxu1 %v9403_v10  ;;  %v10323_v63 = vld [vmem:[#allocation21 + $0x36c] sm:$0xf]  ;;  %v8876_v10 = vld [vmem:[#allocation21 + $0x380] sm:$0xf0] }
 0x3f5   :  { %5897 = vmatpush.bf16.msrb.mxu2 %v8543_v15  ;;  %5910 = vmatpush.bf16.msrb.mxu3 %v8735_v22  ;;  %v9383_v15 = vor.u32 %v10449_v57, %v9380_v47  ;;  %v9575_v22 = vor.u32 %v10497_v12, %v9572_v58  ;;  %v8879_v3 = vor.u32 %v10323_v63, %v8876_v10  ;;  %v8786_v57 = vld [vmem:[#allocation21 + $0x2b0] sm:$0xf]  ;;  %v10303_v47 = vld [vmem:[#allocation21 + $0x2c4] sm:$0xf0]  ;;  %v11442_v12 = vld [vmem:[#allocation23] sm:$0x3f] }
 0x3f6   :  { %v8595_v63 = vor.u32 %v10255_v11, %v8594_v39  ;;  %v8787_v10 = vor.u32 %v10303_v47, %v8786_v57  ;;  %v9003_v39 = vor.u32 %v10357_v40, %v9002_v28  ;;  %v8690_v57 = vld [vmem:[#allocation21 + $0x1f0] sm:$0xf]  ;;  %v10279_v47 = vld [vmem:[#allocation21 + $0x204] sm:$0xf0] }
 0x3f7   :  { %5876 = vmatmul.bf16.vlgmr.msra.gmra.mxu0 %v11422_v8  ;;  %5889 = vmatmul.bf16.vlgmr.msra.gmra.mxu1 %v11424_v23 }
 0x3f8   :  { %5920 = vmatpush.bf16.msrb.mxu0 %v8999_v1  ;;  %5933 = vmatpush.bf16.msrb.mxu1 %v9191_v0  ;;  %v10443_v1 = vld [vmem:[#allocation21 + $0x72c] sm:$0xf]  ;;  %v9356_v0 = vld [vmem:[#allocation21 + $0x740] sm:$0xf0] }
 0x3f9   :  { %5898 = vmatpush.bf16.msrb.mxu2 %v8519_v4  ;;  %5911 = vmatpush.bf16.msrb.mxu3 %v8711_v5  ;;  %v9359_v4 = vor.u32 %v10443_v1, %v9356_v0  ;;  %v9551_v5 = vor.u32 %v10491_v48, %v9548_v26  ;;  %v10297_v1 = vld [vmem:[#allocation21 + $0x294] sm:$0xf0]  ;;  %v4208_v0 = vperm.slane %v11442_v12, 0 }
 0x3fa   :  { %v8763_v30 = vor.u32 %v10297_v1, %v8762_v2  ;;  %v8666_v2 = vld [vmem:[#allocation21 + $0x1c0] sm:$0xf]  ;;  %v10273_v1 = vld [vmem:[#allocation21 + $0x1d4] sm:$0xf0] }
 0x3fc   :  { %5921 = vmatpush.bf16.msrb.mxu0 %v8975_v45  ;;  %5934 = vmatpush.bf16.msrb.mxu1 %v9167_v16  ;;  %v10437_v45 = vld [vmem:[#allocation21 + $0x6fc] sm:$0xf]  ;;  %v9332_v16 = vld [vmem:[#allocation21 + $0x710] sm:$0xf0] }
 0x3fd   :  { %5899 = vmatpush.bf16.msrb.mxu2 %v8495_v20  ;;  %5912 = vmatpush.bf16.msrb.mxu3 %v8687_v21  ;;  %v10359_v20 = vld [vmem:[#allocation21 + $0x48c] sm:$0xf]  ;;  %v9335_v21 = vor.u32 %v10437_v45, %v9332_v16  ;;  %v8546_v45 = vld [vmem:[#allocation21 + $0xd0] sm:$0xf] }
 0x400   :  { %5922 = vmatpush.bf16.msrb.mxu0 %v8951_v34  ;;  %5935 = vmatpush.bf16.msrb.mxu1 %v9143_v35  ;;  %v10431_v34 = vld [vmem:[#allocation21 + $0x6cc] sm:$0xf]  ;;  %v9308_v35 = vld [vmem:[#allocation21 + $0x6e0] sm:$0xf0] }
 0x401   :  { %5900 = vmatpush.bf16.msrb.mxu2 %v8471_v41  ;;  %5913 = vmatpush.bf16.msrb.mxu3 %v8663_v42  ;;  %v8831_v41 = vor.u32 %v10311_v17, %v8828_v55  ;;  %v9023_v42 = vor.u32 %v10359_v20, %v9020_v25  ;;  %v9311_v43 = vor.u32 %v10431_v34, %v9308_v35  ;;  %v10407_v20 = vld [vmem:[#allocation21 + $0x60c] sm:$0xf]  ;;  %v9404_v35 = vld [vmem:[#allocation21 + $0x7a0] sm:$0xf0] }
 0x402   :  { %v9431_v55 = vor.u32 %v10461_v6, %v9428_v36  ;;  %v8547_v25 = vor.u32 %v10243_v9, %v8546_v45  ;;  %v10267_v45 = vld [vmem:[#allocation21 + $0x1a4] sm:$0xf0] }
 0x403   :  { %v10339_v9 = vld [vmem:[#allocation21 + $0x3e4] sm:$0xf0] }
 0x404   :  { %5923 = vmatpush.bf16.msrb.mxu0 %v8927_v7  ;;  %5936 = vmatpush.bf16.msrb.mxu1 %v9119_v49  ;;  %v9284_v7 = vld [vmem:[#allocation21 + $0x6b0] sm:$0xf0]  ;;  %v8619_v49 = vor.u32 %v10261_v50, %v8618_v32  ;;  %v8714_v32 = vld [vmem:[#allocation21 + $0x220] sm:$0xf]  ;;  %v10285_v50 = vld [vmem:[#allocation21 + $0x234] sm:$0xf0] }
 0x405   :  { %5901 = vmatpush.bf16.msrb.mxu2 %v8447_v60  ;;  %5914 = vmatpush.bf16.msrb.mxu3 %v8639_v61  ;;  %v9287_v58 = vor.u32 %v10425_v46, %v9284_v7  ;;  %v9479_v60 = vor.u32 %v10473_v51, %v9476_v52  ;;  %v10419_v61 = vld [vmem:[#allocation21 + $0x66c] sm:$0xf]  ;;  %v8523_v46 = vor.u32 %v10237_v38, %v8522_v37  ;;  %v8498_v51 = vld [vmem:[#allocation21 + $0x70] sm:$0xf]  ;;  %v10231_v52 = vld [vmem:[#allocation21 + $0x84] sm:$0xf0] }
 0x406   :  { %v8715_v7 = vor.u32 %v10285_v50, %v8714_v32  ;;  %v8906_v37 = vld [vmem:[#allocation21 + $0x3a0] sm:$0xf]  ;;  %v10333_v38 = vld [vmem:[#allocation21 + $0x3b4] sm:$0xf0] }
 0x408   :  { %5924 = vmatpush.bf16.msrb.mxu0 %v8903_v27  ;;  %5937 = vmatpush.bf16.msrb.mxu1 %v9095_v62  ;;  %v9260_v27 = vld [vmem:[#allocation21 + $0x680] sm:$0xf0]  ;;  %v10467_v62 = vld [vmem:[#allocation21 + $0x7ec] sm:$0xf] }
 0x409   :  { %5946 = vmatpush.bf16.msra.mxu2 %v9383_v15  ;;  %5959 = vmatpush.bf16.msra.mxu3 %v9575_v22  ;;  %v9452_v15 = vld [vmem:[#allocation21 + $0x800] sm:$0xf0]  ;;  %v8570_v22 = vld [vmem:[#allocation21 + $0x100] sm:$0xf]  ;;  %v9263_v48 = vor.u32 %v10419_v61, %v9260_v27  ;;  %v9170_v61 = vld [vmem:[#allocation21 + $0x5b0] sm:$0xf] }
 0x40a   :  { %5902 = vmatmul.bf16.vlgmr.msrb.gmra.mxu2 %v11404_v33  ;;  %5915 = vmatmul.bf16.vlgmr.msrb.gmra.mxu3 %v11406_v54  ;;  %v9455_v26 = vor.u32 %v10467_v62, %v9452_v15  ;;  %v8571_v56 = vor.u32 %v10249_v18, %v8570_v22  ;;  %v10399_v27 = vld [vmem:[#allocation21 + $0x5c4] sm:$0xf0]  ;;  %v8499_v62 = vor.u32 %v10231_v52, %v8498_v51  ;;  %v10225_v15 = vld [vmem:[#allocation21 + $0x54] sm:$0xf0] }
 0x40b   :  { %v9171_v18 = vor.u32 %v10399_v27, %v9170_v61  ;;  %v10495_v51 = vld [vmem:[#allocation21 + $0x8c4] sm:$0xf0]  ;;  %v9074_v61 = vld [vmem:[#allocation21 + $0x4f0] sm:$0xf]  ;;  %v9338_v27 = vld [vmem:[#allocation21 + $0x700] sm:$0xf] }
 0x40c   :  { %5925 = vmatpush.bf16.msrb.mxu0 %v8879_v3  ;;  %5938 = vmatpush.bf16.msrb.mxu1 %v9071_v19  ;;  %v10413_v3 = vld [vmem:[#allocation21 + $0x63c] sm:$0xf]  ;;  %v9236_v19 = vld [vmem:[#allocation21 + $0x650] sm:$0xf0] }
 0x40d   :  { %5947 = vmatpush.bf16.msra.mxu2 %v9359_v4  ;;  %5960 = vmatpush.bf16.msra.mxu3 %v9551_v5  ;;  %v9239_v17 = vor.u32 %v10413_v3, %v9236_v19  ;;  %v10393_v3 = vld [vmem:[#allocation21 + $0x594] sm:$0xf0] }
 0x410   :  { %5926 = vmatpush.bf16.msrb.mxu0 %v8855_v13  ;;  %5939 = vmatpush.bf16.msrb.mxu1 %v9047_v14  ;;  %v10291_v13 = vld [vmem:[#allocation21 + $0x264] sm:$0xf0] }
 0x411   :  { %5948 = vmatpush.bf16.msra.mxu2 %v9335_v21  ;;  %5961 = vmatpush.bf16.msra.mxu3 %v9527_v24  ;;  %v9212_v21 = vld [vmem:[#allocation21 + $0x620] sm:$0xf0]  ;;  %v10455_v24 = vld [vmem:[#allocation21 + $0x78c] sm:$0xf]  ;;  %v8739_v34 = vor.u32 %v10291_v13, %v8738_v31  ;;  %v9122_v31 = vld [vmem:[#allocation21 + $0x550] sm:$0xf] }
 0x412   :  { %v10387_v13 = vld [vmem:[#allocation21 + $0x564] sm:$0xf0] }
 0x414   :  { %5927 = vmatpush.bf16.msrb.mxu0 %v8831_v41  ;;  %5940 = vmatpush.bf16.msrb.mxu1 %v9023_v42  ;;  %v5669_v4 = vpop.f32.mrf.mxu0  ;;  %v5682_v5 = vpop.f32.mrf.mxu1  ;;  %v9194_v41 = vld [vmem:[#allocation21 + $0x5e0] sm:$0xf]  ;;  %v10405_v42 = vld [vmem:[#allocation21 + $0x5f4] sm:$0xf0] }
 0x415   :  { %5949 = vmatpush.bf16.msra.mxu2 %v9311_v43  ;;  %5962 = vmatpush.bf16.msra.mxu3 %v9503_v44  ;;  %v5670_v16 = vadd.f32 %v5669_v4, %v4208_v0  ;;  %v9215_v43 = vor.u32 %v10407_v20, %v9212_v21  ;;  %v9407_v44 = vor.u32 %v10455_v24, %v9404_v35  ;;  %v8954_v0 = vld [vmem:[#allocation21 + $0x400] sm:$0xf]  ;;  %v10219_v4 = vld [vmem:[#allocation21 + $0x24] sm:$0xf0]  ;;  %v10501_v21 = vld [vmem:[#allocation21 + $0x8f4] sm:$0xf0] }
 0x416   :  { %v9195_v11 = vor.u32 %v10405_v42, %v9194_v41  ;;  %v9578_v20 = vld [vmem:[#allocation21 + $0x8e0] sm:$0xf]  ;;  %v9123_v35 = vor.u32 %v10387_v13, %v9122_v31  ;;  %v10381_v42 = vld [vmem:[#allocation21 + $0x534] sm:$0xf0] }
 0x417   :  { %5928 = vmatmul.bf16.vlgmr.msrb.gmra.mxu0 %v11416_v59  ;;  %5941 = vmatmul.bf16.vlgmr.msrb.gmra.mxu1 %v11418_v53  ;;  %v11447_v14 = vadd.f32 %v5682_v5, %v5670_v16  ;;  %v8642_v5 = vld [vmem:[#allocation21 + $0x190] sm:$0xf]  ;;  %v9579_v50 = vor.u32 %v10501_v21, %v9578_v20  ;;  %v9098_v41 = vld [vmem:[#allocation21 + $0x520] sm:$0xf]  ;;  %v10363_v20 = vld [vmem:[#allocation21 + $0x4a4] sm:$0xf0] }
 0x418   :  { %5972 = vmatpush.bf16.msra.mxu0 %v8619_v49  ;;  %5985 = vmatpush.bf16.msra.mxu1 %v8811_v29  ;;  %v8930_v16 = vld [vmem:[#allocation21 + $0x3d0] sm:$0xf] }
 0x419   :  { %5950 = vmatpush.bf16.msra.mxu2 %v9287_v58  ;;  %5963 = vmatpush.bf16.msra.mxu3 %v9479_v60  ;;  %v8978_v58 = vld [vmem:[#allocation21 + $0x430] sm:$0xf]  ;;  %v10351_v60 = vld [vmem:[#allocation21 + $0x444] sm:$0xf0] }
 0x41a   :  { %v8979_v22 = vor.u32 %v10351_v60, %v8978_v58 }
 0x41c   :  { %5973 = vmatpush.bf16.msra.mxu0 %v8595_v63  ;;  %5986 = vmatpush.bf16.msra.mxu1 %v8787_v10  ;;  %v5671_v49 = vpop.f32.mrf.mxu0  ;;  %v5684_v29 = vpop.f32.mrf.mxu1  ;;  %v8691_v63 = vor.u32 %v10279_v47, %v8690_v57  ;;  %v8474_v10 = vld [vmem:[#allocation21 + $0x40] sm:$0xf]  ;;  %v8882_v57 = vld [vmem:[#allocation21 + $0x370] sm:$0xf]  ;;  %v10327_v47 = vld [vmem:[#allocation21 + $0x384] sm:$0xf0] }
 0x41d   :  { %5951 = vmatpush.bf16.msra.mxu2 %v9263_v48  ;;  %5964 = vmatpush.bf16.msra.mxu3 %v9455_v26  ;;  %v10345_v48 = vld [vmem:[#allocation21 + $0x414] sm:$0xf0]  ;;  %v9146_v26 = vld [vmem:[#allocation21 + $0x580] sm:$0xf]  ;;  %v8475_v19 = vor.u32 %v10225_v15, %v8474_v10  ;;  %v10447_v49 = vld [vmem:[#allocation21 + $0x744] sm:$0xf0] }
 0x41e   :  { %v8955_v6 = vor.u32 %v10345_v48, %v8954_v0  ;;  %v9147_v36 = vor.u32 %v10393_v3, %v9146_v26  ;;  %v9554_v29 = vld [vmem:[#allocation21 + $0x8b0] sm:$0xf]  ;;  %v9530_v10 = vld [vmem:[#allocation21 + $0x880] sm:$0xf]  ;;  %v10489_v15 = vld [vmem:[#allocation21 + $0x894] sm:$0xf0] }
 0x41f   :  { %v9555_v60 = vor.u32 %v10495_v51, %v9554_v29  ;;  %v10321_v0 = vld [vmem:[#allocation21 + $0x354] sm:$0xf0]  ;;  %v9531_v26 = vor.u32 %v10489_v15, %v9530_v10  ;;  %v10423_v29 = vld [vmem:[#allocation21 + $0x684] sm:$0xf0]  ;;  %v9242_v15 = vld [vmem:[#allocation21 + $0x640] sm:$0xf] }
 0x420   :  { %5974 = vmatpush.bf16.msra.mxu0 %v8571_v56  ;;  %5987 = vmatpush.bf16.msra.mxu1 %v8763_v30  ;;  %v8667_v56 = vor.u32 %v10273_v1, %v8666_v2  ;;  %v8450_v30 = vld [vmem:[#allocation21 + $0x10] sm:$0xf]  ;;  %v8858_v1 = vld [vmem:[#allocation21 + $0x340] sm:$0xf] }
 0x421   :  { %5952 = vmatpush.bf16.msra.mxu2 %v9239_v17  ;;  %5965 = vmatpush.bf16.msra.mxu3 %v9431_v55  ;;  %v9386_v17 = vld [vmem:[#allocation21 + $0x760] sm:$0xf]  ;;  %v10453_v55 = vld [vmem:[#allocation21 + $0x774] sm:$0xf0]  ;;  %v8451_v24 = vor.u32 %v10219_v4, %v8450_v30  ;;  %v9314_v4 = vld [vmem:[#allocation21 + $0x6d0] sm:$0xf]  ;;  %v8859_v31 = vor.u32 %v10321_v0, %v8858_v1 }
 0x422   :  { %v9387_v32 = vor.u32 %v10453_v55, %v9386_v17  ;;  %v10369_v30 = vld [vmem:[#allocation21 + $0x4d4] sm:$0xf0]  ;;  %v10315_v17 = vld [vmem:[#allocation21 + $0x324] sm:$0xf0]  ;;  %v9026_v55 = vld [vmem:[#allocation21 + $0x490] sm:$0xf] }
 0x424   :  { %5975 = vmatpush.bf16.msra.mxu0 %v8547_v25  ;;  %5988 = vmatpush.bf16.msra.mxu1 %v8739_v34  ;;  %v8643_v25 = vor.u32 %v10267_v45, %v8642_v5  ;;  %v8931_v34 = vor.u32 %v10339_v9, %v8930_v16  ;;  %v9506_v45 = vld [vmem:[#allocation21 + $0x850] sm:$0xf]  ;;  %v10483_v16 = vld [vmem:[#allocation21 + $0x864] sm:$0xf0] }
 0x425   :  { %5953 = vmatpush.bf16.msra.mxu2 %v9215_v43  ;;  %5966 = vmatpush.bf16.msra.mxu3 %v9407_v44  ;;  %v9362_v43 = vld [vmem:[#allocation21 + $0x730] sm:$0xf] }
 0x426   :  { %v9363_v58 = vor.u32 %v10447_v49, %v9362_v43  ;;  %v8834_v9 = vld [vmem:[#allocation21 + $0x310] sm:$0xf] }
 0x427   :  { %v9266_v49 = vld [vmem:[#allocation21 + $0x670] sm:$0xf] }
 0x428   :  { %5976 = vmatpush.bf16.msra.mxu0 %v8523_v46  ;;  %5989 = vmatpush.bf16.msra.mxu1 %v8715_v7 }
 0x429   :  { %5998 = vmatpush.bf16.msrb.mxu2 %v9003_v39  ;;  %6011 = vmatpush.bf16.msrb.mxu3 %v9195_v11  ;;  %v8907_v39 = vor.u32 %v10333_v38, %v8906_v37  ;;  %v9099_v11 = vor.u32 %v10381_v42, %v9098_v41  ;;  %v10477_v37 = vld [vmem:[#allocation21 + $0x834] sm:$0xf0]  ;;  %v10258_v38 = vld [vmem:[#allocation21 + $0x164] sm:$0xf]  ;;  %v8835_v41 = vor.u32 %v10315_v17, %v8834_v9  ;;  %v10411_v9 = vld [vmem:[#allocation21 + $0x624] sm:$0xf0] }
 0x42a   :  { %5954 = vmatmul.bf16.vlgmr.msra.gmra.mxu2 %v11422_v8  ;;  %5967 = vmatmul.bf16.vlgmr.msra.gmra.mxu3 %v11424_v23  ;;  %v5695_v28 = vpop.f32.mrf.mxu2  ;;  %v5708_v40 = vpop.f32.mrf.mxu3  ;;  %v9027_v42 = vor.u32 %v10363_v20, %v9026_v55  ;;  %v10459_v55 = vld [vmem:[#allocation21 + $0x7a4] sm:$0xf0]  ;;  %v10240_v20 = vld [vmem:[#allocation21 + $0xd4] sm:$0xf] }
 0x42b   :  { %v5696_v44 = vadd.f32 %v5695_v28, %v11447_v14  ;;  %v5721_v46 = vpop.f32.mrf.mxu0  ;;  %v5734_v7 = vpop.f32.mrf.mxu1  ;;  %v10375_v14 = vld [vmem:[#allocation21 + $0x504] sm:$0xf0]  ;;  %v10306_v28 = vld [vmem:[#allocation21 + $0x2e4] sm:$0xf] }
 0x42c   :  { %5977 = vmatpush.bf16.msra.mxu0 %v8499_v62  ;;  %5990 = vmatpush.bf16.msra.mxu1 %v8691_v63  ;;  %v10441_v63 = vld [vmem:[#allocation21 + $0x714] sm:$0xf0]  ;;  %v9075_v2 = vor.u32 %v10375_v14, %v9074_v61  ;;  %v8596_v61 = vld [vmem:[#allocation21 + $0x148] sm:$0xf0]  ;;  %v10300_v14 = vld [vmem:[#allocation21 + $0x2b4] sm:$0xf] }
 0x42d   :  { %5999 = vmatpush.bf16.msrb.mxu2 %v8979_v22  ;;  %6012 = vmatpush.bf16.msrb.mxu3 %v9171_v18  ;;  %v5709_v52 = vadd.f32 %v5708_v40, %v5696_v44  ;;  %v8883_v18 = vor.u32 %v10327_v47, %v8882_v57  ;;  %v9339_v48 = vor.u32 %v10441_v63, %v9338_v27  ;;  %v8812_v40 = vld [vmem:[#allocation21 + $0x2f8] sm:$0xf0]  ;;  %v10471_v57 = vld [vmem:[#allocation21 + $0x804] sm:$0xf0]  ;;  %v10252_v47 = vld [vmem:[#allocation21 + $0x134] sm:$0xf] }
 0x42e   :  { %v8788_v27 = vld [vmem:[#allocation21 + $0x2c8] sm:$0xf0]  ;;  %v9267_v63 = vor.u32 %v10423_v29, %v9266_v49  ;;  %v8599_v1 = vor.u32 %v10252_v47, %v8596_v61  ;;  %v10282_v49 = vld [vmem:[#allocation21 + $0x224] sm:$0xf]  ;;  %v8716_v29 = vld [vmem:[#allocation21 + $0x238] sm:$0xf0] }
 0x42f   :  { %v5722_v62 = vadd.f32 %v5721_v46, %v5709_v52  ;;  %v8815_v52 = vor.u32 %v10306_v28, %v8812_v40  ;;  %v8791_v0 = vor.u32 %v10300_v14, %v8788_v27  ;;  %v8719_v47 = vor.u32 %v10282_v49, %v8716_v29  ;;  %v10228_v61 = vld [vmem:[#allocation21 + $0x74] sm:$0xf]  ;;  %v8500_v14 = vld [vmem:[#allocation21 + $0x88] sm:$0xf0] }
 0x430   :  { %5978 = vmatpush.bf16.msra.mxu0 %v8475_v19  ;;  %5991 = vmatpush.bf16.msra.mxu1 %v8667_v56  ;;  %v9050_v56 = vld [vmem:[#allocation21 + $0x4c0] sm:$0xf]  ;;  %v10324_v29 = vld [vmem:[#allocation21 + $0x374] sm:$0xf] }
 0x431   :  { %6000 = vmatpush.bf16.msrb.mxu2 %v8955_v6  ;;  %6013 = vmatpush.bf16.msrb.mxu3 %v9147_v36  ;;  %v11454_v22 = vadd.f32 %v5734_v7, %v5722_v62  ;;  %v10435_v36 = vld [vmem:[#allocation21 + $0x6e4] sm:$0xf0]  ;;  %v9051_v13 = vor.u32 %v10369_v30, %v9050_v56  ;;  %v10294_v56 = vld [vmem:[#allocation21 + $0x284] sm:$0xf]  ;;  %v8764_v30 = vld [vmem:[#allocation21 + $0x298] sm:$0xf0] }
 0x432   :  { %v5697_v3 = vpop.f32.mrf.mxu2  ;;  %v5710_v19 = vpop.f32.mrf.mxu3  ;;  %v9315_v21 = vor.u32 %v10435_v36, %v9314_v4  ;;  %v8767_v17 = vor.u32 %v10294_v56, %v8764_v30  ;;  %v10270_v30 = vld [vmem:[#allocation21 + $0x1c4] sm:$0xf] }
 0x433   :  { %v5723_v5 = vpop.f32.mrf.mxu0  ;;  %v5736_v6 = vpop.f32.mrf.mxu1  ;;  %v10246_v3 = vld [vmem:[#allocation21 + $0x104] sm:$0xf]  ;;  %v8572_v19 = vld [vmem:[#allocation21 + $0x118] sm:$0xf0] }
 0x434   :  { %5979 = vmatpush.bf16.msra.mxu0 %v8451_v24  ;;  %5992 = vmatpush.bf16.msra.mxu1 %v8643_v25  ;;  %v9507_v24 = vor.u32 %v10483_v16, %v9506_v45  ;;  %v9290_v25 = vld [vmem:[#allocation21 + $0x6a0] sm:$0xf]  ;;  %v9218_v16 = vld [vmem:[#allocation21 + $0x610] sm:$0xf] }
 0x435   :  { %6001 = vmatpush.bf16.msrb.mxu2 %v8931_v34  ;;  %6014 = vmatpush.bf16.msrb.mxu3 %v9123_v35  ;;  %v10429_v34 = vld [vmem:[#allocation21 + $0x6b4] sm:$0xf0]  ;;  %v9482_v35 = vld [vmem:[#allocation21 + $0x820] sm:$0xf]  ;;  %v9219_v28 = vor.u32 %v10411_v9, %v9218_v16  ;;  %v9124_v16 = vld [vmem:[#allocation21 + $0x568] sm:$0xf0] }
 0x436   :  { %v9291_v43 = vor.u32 %v10429_v34, %v9290_v25  ;;  %v9483_v44 = vor.u32 %v10477_v37, %v9482_v35  ;;  %v10288_v34 = vld [vmem:[#allocation21 + $0x254] sm:$0xf]  ;;  %v8740_v35 = vld [vmem:[#allocation21 + $0x268] sm:$0xf0]  ;;  %v10354_v37 = vld [vmem:[#allocation21 + $0x464] sm:$0xf] }
 0x437   :  { %5980 = vmatmul.bf16.vlgmr.msra.gmra.mxu0 %v11404_v33  ;;  %5993 = vmatmul.bf16.vlgmr.msra.gmra.mxu1 %v11406_v54 }
 0x438   :  { %6024 = vmatpush.bf16.msrb.mxu0 %v9387_v32  ;;  %6037 = vmatpush.bf16.msrb.mxu1 %v9579_v50  ;;  %v4209_v32 = vperm.slane %v11442_v12, 1  ;;  %v8620_v50 = vld [vmem:[#allocation21 + $0x178] sm:$0xf0] }
 0x439   :  { %6002 = vmatpush.bf16.msrb.mxu2 %v8907_v39  ;;  %6015 = vmatpush.bf16.msrb.mxu3 %v9099_v11  ;;  %v8623_v51 = vor.u32 %v10258_v38, %v8620_v50  ;;  %v9458_v11 = vld [vmem:[#allocation21 + $0x7f0] sm:$0xf]  ;;  %v9004_v38 = vld [vmem:[#allocation21 + $0x478] sm:$0xf0] }
 0x43a   :  { %v5747_v46 = vpop.f32.mrf.mxu2  ;;  %v5760_v7 = vpop.f32.mrf.mxu3  ;;  %v9459_v10 = vor.u32 %v10471_v57, %v9458_v11  ;;  %v9196_v50 = vld [vmem:[#allocation21 + $0x5f8] sm:$0xf0]  ;;  %v9172_v11 = vld [vmem:[#allocation21 + $0x5c8] sm:$0xf0] }
 0x43b   :  { %v5748_v39 = vadd.f32 %v5747_v46, %v4209_v32  ;;  %v10402_v32 = vld [vmem:[#allocation21 + $0x5e4] sm:$0xf]  ;;  %v9007_v46 = vor.u32 %v10354_v37, %v9004_v38  ;;  %v8644_v37 = vld [vmem:[#allocation21 + $0x1a8] sm:$0xf0] }
 0x43c   :  { %6025 = vmatpush.bf16.msrb.mxu0 %v9363_v58  ;;  %6038 = vmatpush.bf16.msrb.mxu1 %v9555_v60  ;;  %v5773_v58 = vpop.f32.mrf.mxu0  ;;  %v5786_v60 = vpop.f32.mrf.mxu1  ;;  %v10330_v38 = vld [vmem:[#allocation21 + $0x3a4] sm:$0xf] }
 0x43d   :  { %6003 = vmatpush.bf16.msrb.mxu2 %v8883_v18  ;;  %6016 = vmatpush.bf16.msrb.mxu3 %v9075_v2  ;;  %v5761_v62 = vadd.f32 %v5760_v7, %v5748_v39  ;;  %v10417_v18 = vld [vmem:[#allocation21 + $0x654] sm:$0xf0]  ;;  %v9199_v7 = vor.u32 %v10402_v32, %v9196_v50  ;;  %v10396_v39 = vld [vmem:[#allocation21 + $0x5b4] sm:$0xf]  ;;  %v8908_v32 = vld [vmem:[#allocation21 + $0x3b8] sm:$0xf0] }
 0x43e   :  { %v9243_v5 = vor.u32 %v10417_v18, %v9242_v15  ;;  %v10342_v15 = vld [vmem:[#allocation21 + $0x404] sm:$0xf]  ;;  %v8956_v18 = vld [vmem:[#allocation21 + $0x418] sm:$0xf0] }
 0x43f   :  { %v5774_v2 = vadd.f32 %v5773_v58, %v5761_v62  ;;  %v9175_v62 = vor.u32 %v10396_v39, %v9172_v11  ;;  %v10378_v50 = vld [vmem:[#allocation21 + $0x524] sm:$0xf]  ;;  %v10372_v11 = vld [vmem:[#allocation21 + $0x4f4] sm:$0xf] }
 0x440   :  { %6026 = vmatpush.bf16.msrb.mxu0 %v9339_v48  ;;  %6039 = vmatpush.bf16.msrb.mxu1 %v9531_v26  ;;  %v9434_v48 = vld [vmem:[#allocation21 + $0x7c0] sm:$0xf]  ;;  %v10465_v26 = vld [vmem:[#allocation21 + $0x7d4] sm:$0xf0] }
 0x441   :  { %6004 = vmatpush.bf16.msrb.mxu2 %v8859_v31  ;;  %6017 = vmatpush.bf16.msrb.mxu3 %v9051_v13  ;;  %v11459_v4 = vadd.f32 %v5786_v60, %v5774_v2  ;;  %v9435_v6 = vor.u32 %v10465_v26, %v9434_v48  ;;  %v9410_v31 = vld [vmem:[#allocation21 + $0x790] sm:$0xf]  ;;  %v8575_v13 = vor.u32 %v10246_v3, %v8572_v19  ;;  %v10390_v2 = vld [vmem:[#allocation21 + $0x584] sm:$0xf]  ;;  %v8476_v3 = vld [vmem:[#allocation21 + $0x58] sm:$0xf0] }
 0x442   :  { %v5749_v36 = vpop.f32.mrf.mxu2  ;;  %v5762_v45 = vpop.f32.mrf.mxu3  ;;  %v9411_v40 = vor.u32 %v10459_v55, %v9410_v31  ;;  %v10222_v26 = vld [vmem:[#allocation21 + $0x44] sm:$0xf]  ;;  %v8959_v19 = vor.u32 %v10342_v15, %v8956_v18 }
 0x443   :  { %v8932_v36 = vld [vmem:[#allocation21 + $0x3e8] sm:$0xf0]  ;;  %v10384_v45 = vld [vmem:[#allocation21 + $0x554] sm:$0xf]  ;;  %v10318_v18 = vld [vmem:[#allocation21 + $0x344] sm:$0xf] }
 0x444   :  { %6027 = vmatpush.bf16.msrb.mxu0 %v9315_v21  ;;  %6040 = vmatpush.bf16.msrb.mxu1 %v9507_v24  ;;  %v8548_v21 = vld [vmem:[#allocation21 + $0xe8] sm:$0xf0]  ;;  %v5775_v24 = vpop.f32.mrf.mxu0  ;;  %v5788_v25 = vpop.f32.mrf.mxu1 }
 0x445   :  { %6005 = vmatpush.bf16.msrb.mxu2 %v8835_v41  ;;  %6018 = vmatpush.bf16.msrb.mxu3 %v9027_v42  ;;  %v8551_v41 = vor.u32 %v10240_v20, %v8548_v21  ;;  %v8743_v42 = vor.u32 %v10288_v34, %v8740_v35  ;;  %v10216_v21 = vld [vmem:[#allocation21 + $0x14] sm:$0xf]  ;;  %v8452_v24 = vld [vmem:[#allocation21 + $0x28] sm:$0xf0]  ;;  %v9127_v35 = vor.u32 %v10384_v45, %v9124_v16 }
 0x446   :  { %v10264_v25 = vld [vmem:[#allocation21 + $0x194] sm:$0xf]  ;;  %v8836_v45 = vld [vmem:[#allocation21 + $0x328] sm:$0xf0] }
 0x448   :  { %6028 = vmatpush.bf16.msrb.mxu0 %v9291_v43  ;;  %6041 = vmatpush.bf16.msrb.mxu1 %v9483_v44  ;;  %v10234_v43 = vld [vmem:[#allocation21 + $0xa4] sm:$0xf]  ;;  %v8524_v44 = vld [vmem:[#allocation21 + $0xb8] sm:$0xf0] }
 0x449   :  { %6050 = vmatpush.bf16.msra.mxu2 %v8623_v51  ;;  %6063 = vmatpush.bf16.msra.mxu3 %v8815_v52  ;;  %v10348_v51 = vld [vmem:[#allocation21 + $0x434] sm:$0xf]  ;;  %v8980_v52 = vld [vmem:[#allocation21 + $0x448] sm:$0xf0]  ;;  %v8527_v57 = vor.u32 %v10234_v43, %v8524_v44  ;;  %v9580_v43 = vld [vmem:[#allocation21 + $0x8f8] sm:$0xf0]  ;;  %v8455_v44 = vor.u32 %v10216_v21, %v8452_v24 }
 0x44a   :  { %6006 = vmatmul.bf16.vlgmr.msrb.gmra.mxu2 %v11416_v59  ;;  %6019 = vmatmul.bf16.vlgmr.msrb.gmra.mxu3 %v11418_v53  ;;  %v8983_v27 = vor.u32 %v10348_v51, %v8980_v52  ;;  %v8884_v51 = vld [vmem:[#allocation21 + $0x388] sm:$0xf0] }
 0x44b   :  { %v9316_v21 = vld [vmem:[#allocation21 + $0x6e8] sm:$0xf0] }
 0x44c   :  { %6029 = vmatpush.bf16.msrb.mxu0 %v9267_v63  ;;  %6042 = vmatpush.bf16.msrb.mxu1 %v9459_v10  ;;  %v10276_v63 = vld [vmem:[#allocation21 + $0x1f4] sm:$0xf]  ;;  %v8692_v10 = vld [vmem:[#allocation21 + $0x208] sm:$0xf0] }
 0x44d   :  { %6051 = vmatpush.bf16.msra.mxu2 %v8599_v1  ;;  %6064 = vmatpush.bf16.msra.mxu3 %v8791_v0  ;;  %v11461_v58 = vpop.f32.mrf.mxu2  ;;  %v11463_v60 = vpop.f32.mrf.mxu3  ;;  %v9148_v1 = vld [vmem:[#allocation21 + $0x598] sm:$0xf0]  ;;  %v8503_v0 = vor.u32 %v10228_v61, %v8500_v14  ;;  %v8695_v48 = vor.u32 %v10276_v63, %v8692_v10  ;;  %v9556_v63 = vld [vmem:[#allocation21 + $0x8c8] sm:$0xf0]  ;;  %v8887_v10 = vor.u32 %v10324_v29, %v8884_v51  ;;  %v10468_v51 = vld [vmem:[#allocation21 + $0x7f4] sm:$0xf] }
 0x44e   :  { %v9151_v56 = vor.u32 %v10390_v2, %v9148_v1  ;;  %v8860_v2 = vld [vmem:[#allocation21 + $0x358] sm:$0xf0]  ;;  %v9508_v24 = vld [vmem:[#allocation21 + $0x868] sm:$0xf0] }
 0x44f   :  { %v9268_v29 = vld [vmem:[#allocation21 + $0x688] sm:$0xf0] }
 0x450   :  { %6030 = vmatpush.bf16.msrb.mxu0 %v9243_v5  ;;  %6043 = vmatpush.bf16.msrb.mxu1 %v9435_v6  ;;  %v8668_v5 = vld [vmem:[#allocation21 + $0x1d8] sm:$0xf0]  ;;  %v10336_v6 = vld [vmem:[#allocation21 + $0x3d4] sm:$0xf] }
 0x451   :  { %6052 = vmatpush.bf16.msra.mxu2 %v8575_v13  ;;  %6065 = vmatpush.bf16.msra.mxu3 %v8767_v17  ;;  %v8479_v13 = vor.u32 %v10222_v26, %v8476_v3  ;;  %v8671_v17 = vor.u32 %v10270_v30, %v8668_v5  ;;  %v8935_v34 = vor.u32 %v10336_v6, %v8932_v36  ;;  %v9052_v26 = vld [vmem:[#allocation21 + $0x4d8] sm:$0xf0]  ;;  %v10438_v3 = vld [vmem:[#allocation21 + $0x704] sm:$0xf]  ;;  %v10312_v36 = vld [vmem:[#allocation21 + $0x314] sm:$0xf] }
 0x452   :  { %v9532_v30 = vld [vmem:[#allocation21 + $0x898] sm:$0xf0]  ;;  %v8863_v5 = vor.u32 %v10318_v18, %v8860_v2  ;;  %v10506_v2 = vld [vmem:[#allocation24 + $0x20] sm:$0xff] }
 0x454   :  { %6031 = vmatpush.bf16.msrb.mxu0 %v9219_v28  ;;  %6044 = vmatpush.bf16.msrb.mxu1 %v9411_v40  ;;  %v11467_v9 = vpop.f32.mrf.mxu0  ;;  %v11469_v31 = vpop.f32.mrf.mxu1  ;;  %v9100_v28 = vld [vmem:[#allocation21 + $0x538] sm:$0xf0]  ;;  %v10450_v40 = vld [vmem:[#allocation21 + $0x764] sm:$0xf] }
 0x455   :  { %6053 = vmatpush.bf16.msra.mxu2 %v8551_v41  ;;  %6066 = vmatpush.bf16.msra.mxu3 %v8743_v42  ;;  %v5801_v55 = vpop.f32.mrf.mxu2  ;;  %v5814_v20 = vpop.f32.mrf.mxu3  ;;  %v9388_v41 = vld [vmem:[#allocation21 + $0x778] sm:$0xf0]  ;;  %v10498_v42 = vld [vmem:[#allocation21 + $0x8e4] sm:$0xf]  ;;  %v9103_v49 = vor.u32 %v10378_v50, %v9100_v28 }
 0x456   :  { %v9391_v52 = vor.u32 %v10450_v40, %v9388_v41  ;;  %v9583_v39 = vor.u32 %v10498_v42, %v9580_v43  ;;  %v9028_v55 = vld [vmem:[#allocation21 + $0x4a8] sm:$0xf0]  ;;  %v10432_v20 = vld [vmem:[#allocation21 + $0x6d4] sm:$0xf]  ;;  %v9292_v50 = vld [vmem:[#allocation21 + $0x6b8] sm:$0xf0] }
 0x457   :  { %6032 = vmatmul.bf16.vlgmr.msrb.gmra.mxu0 %v11422_v8  ;;  %6045 = vmatmul.bf16.vlgmr.msrb.gmra.mxu1 %v11424_v23  ;;  %v10474_v28 = vld [vmem:[#allocation21 + $0x824] sm:$0xf]  ;;  %v9484_v40 = vld [vmem:[#allocation21 + $0x838] sm:$0xf0] }
 0x458   :  { %6076 = vmatpush.bf16.msra.mxu0 %v9007_v46  ;;  %6089 = vmatpush.bf16.msra.mxu1 %v9199_v7  ;;  %v8647_v46 = vor.u32 %v10264_v25, %v8644_v37  ;;  %v8911_v7 = vor.u32 %v10330_v38, %v8908_v32  ;;  %v10509_v37 = vld [vmem:[#allocation24 + $0x38] sm:$0xff]  ;;  %v9487_v42 = vor.u32 %v10474_v28, %v9484_v40 }
 0x459   :  { %6054 = vmatpush.bf16.msra.mxu2 %v8527_v57  ;;  %6067 = vmatpush.bf16.msra.mxu3 %v8719_v47  ;;  %v9076_v57 = vld [vmem:[#allocation21 + $0x508] sm:$0xf0]  ;;  %v10444_v47 = vld [vmem:[#allocation21 + $0x734] sm:$0xf]  ;;  %v10517_v38 = vld [vmem:[#allocation24 + $0x78] sm:$0xff] }
 0x45a   :  { %v9079_v15 = vor.u32 %v10372_v11, %v9076_v57  ;;  %v10426_v32 = vld [vmem:[#allocation21 + $0x6a4] sm:$0xf]  ;;  %v10507_v57 = vld [vmem:[#allocation24 + $0x28] sm:$0xff] }
 0x45b   :  { %v9295_v41 = vor.u32 %v10426_v32, %v9292_v50 }
 0x45c   :  { %6077 = vmatpush.bf16.msra.mxu0 %v8983_v27  ;;  %6090 = vmatpush.bf16.msra.mxu1 %v9175_v62  ;;  %v5827_v61 = vpop.f32.mrf.mxu0  ;;  %v5840_v14 = vpop.f32.mrf.mxu1  ;;  %v9364_v27 = vld [vmem:[#allocation21 + $0x748] sm:$0xf0]  ;;  %v10492_v62 = vld [vmem:[#allocation21 + $0x8b4] sm:$0xf] }
 0x45d   :  { %6055 = vmatpush.bf16.msra.mxu2 %v8503_v0  ;;  %6068 = vmatpush.bf16.msra.mxu3 %v8695_v48  ;;  %v9367_v1 = vor.u32 %v10444_v47, %v9364_v27  ;;  %v9559_v0 = vor.u32 %v10492_v62, %v9556_v63  ;;  %v10366_v48 = vld [vmem:[#allocation21 + $0x4c4] sm:$0xf]  ;;  %v10515_v47 = vld [vmem:[#allocation24 + $0x68] sm:$0xff]  ;;  %v9244_v14 = vld [vmem:[#allocation21 + $0x658] sm:$0xf0] }
 0x45e   :  { %v9055_v6 = vor.u32 %v10366_v48, %v9052_v26  ;;  %v10414_v61 = vld [vmem:[#allocation21 + $0x644] sm:$0xf]  ;;  %v9436_v62 = vld [vmem:[#allocation21 + $0x7d8] sm:$0xf0]  ;;  %v9220_v48 = vld [vmem:[#allocation21 + $0x628] sm:$0xf0] }
 0x45f   :  { %v10462_v27 = vld [vmem:[#allocation21 + $0x7c4] sm:$0xf]  ;;  %v10456_v26 = vld [vmem:[#allocation21 + $0x794] sm:$0xf] }
 0x460   :  { %6078 = vmatpush.bf16.msra.mxu0 %v8959_v19  ;;  %6091 = vmatpush.bf16.msra.mxu1 %v9151_v56  ;;  %v9340_v19 = vld [vmem:[#allocation21 + $0x718] sm:$0xf0]  ;;  %v10486_v56 = vld [vmem:[#allocation21 + $0x884] sm:$0xf] }
 0x461   :  { %6056 = vmatpush.bf16.msra.mxu2 %v8479_v13  ;;  %6069 = vmatpush.bf16.msra.mxu3 %v8671_v17  ;;  %v9343_v16 = vor.u32 %v10438_v3, %v9340_v19  ;;  %v9535_v13 = vor.u32 %v10486_v56, %v9532_v30  ;;  %v10360_v17 = vld [vmem:[#allocation21 + $0x494] sm:$0xf]  ;;  %v9412_v3 = vld [vmem:[#allocation21 + $0x7a8] sm:$0xf0]  ;;  %v10505_v30 = vld [vmem:[#allocation24 + $0x18] sm:$0xff] }
 0x462   :  { %v9031_v25 = vor.u32 %v10360_v17, %v9028_v55  ;;  %v9415_v56 = vor.u32 %v10456_v26, %v9412_v3  ;;  %v10512_v17 = vld [vmem:[#allocation24 + $0x50] sm:$0xff]  ;;  %v5800_v55 = vadd.f32 %v11461_v58, %v11459_v4  ;;  %v10531_v4 = vld [vmem:[#allocation24 + $0xe8] sm:$0xff]  ;;  %v10537_v3 = vld [vmem:[#allocation24 + $0x118] sm:$0xff] }
 0x464   :  { %6079 = vmatpush.bf16.msra.mxu0 %v8935_v34  ;;  %6092 = vmatpush.bf16.msra.mxu1 %v9127_v35  ;;  %v9319_v34 = vor.u32 %v10432_v20, %v9316_v21  ;;  %v10524_v20 = vld [vmem:[#allocation24 + $0xb0] sm:$0xff] }
 0x465   :  { %6057 = vmatpush.bf16.msra.mxu2 %v8455_v44  ;;  %6070 = vmatpush.bf16.msra.mxu3 %v8647_v46  ;;  %v10508_v46 = vld [vmem:[#allocation24 + $0x30] sm:$0xff] }
 0x466   :  { %v10532_v21 = vld [vmem:[#allocation24 + $0xf0] sm:$0xff] }
 0x468   :  { %6080 = vmatpush.bf16.msra.mxu0 %v8911_v7  ;;  %6093 = vmatpush.bf16.msra.mxu1 %v9103_v49  ;;  %v10516_v7 = vld [vmem:[#allocation24 + $0x70] sm:$0xff] }
 0x469   :  { %6102 = vmatpush.bf16.msrb.mxu2 %v9391_v52  ;;  %6115 = vmatpush.bf16.msrb.mxu3 %v9583_v39  ;;  %v10420_v49 = vld [vmem:[#allocation21 + $0x674] sm:$0xf]  ;;  %v9460_v52 = vld [vmem:[#allocation21 + $0x808] sm:$0xf0] }
 0x46a   :  { %6058 = vmatmul.bf16.vlgmr.msra.gmra.mxu2 %v11404_v33  ;;  %6071 = vmatmul.bf16.vlgmr.msra.gmra.mxu3 %v11406_v54  ;;  %v10480_v33 = vld [vmem:[#allocation21 + $0x854] sm:$0xf]  ;;  %v8839_v54 = vor.u32 %v10312_v36, %v8836_v45  ;;  %v9271_v39 = vor.u32 %v10420_v49, %v9268_v29  ;;  %v9463_v11 = vor.u32 %v10468_v51, %v9460_v52  ;;  %v10533_v36 = vld [vmem:[#allocation24 + $0xf8] sm:$0xff] }
 0x46b   :  { %v9511_v35 = vor.u32 %v10480_v33, %v9508_v24  ;;  %v4210_v33 = vperm.slane %v11442_v12, 2  ;;  %v10503_v24 = vld [vmem:[#allocation24 + $0x8] sm:$0xff]  ;;  %v10510_v12 = vld [vmem:[#allocation24 + $0x40] sm:$0xff] }
 0x46c   :  { %6081 = vmatpush.bf16.msra.mxu0 %v8887_v10  ;;  %6094 = vmatpush.bf16.msra.mxu1 %v9079_v15  ;;  %v10519_v29 = vld [vmem:[#allocation24 + $0x88] sm:$0xff] }
 0x46d   :  { %6103 = vmatpush.bf16.msrb.mxu2 %v9367_v1  ;;  %6116 = vmatpush.bf16.msrb.mxu3 %v9559_v0  ;;  %v11473_v43 = vpop.f32.mrf.mxu2  ;;  %v11475_v44 = vpop.f32.mrf.mxu3  ;;  %v10514_v1 = vld [vmem:[#allocation24 + $0x60] sm:$0xff]  ;;  %v10408_v0 = vld [vmem:[#allocation21 + $0x614] sm:$0xf]  ;;  %v5826_v58 = vadd.f32 %v11467_v9, %v4210_v33  ;;  %v10521_v9 = vld [vmem:[#allocation24 + $0x98] sm:$0xff] }
 0x46e   :  { %v9223_v19 = vor.u32 %v10408_v0, %v9220_v48 }
 0x46f   :  { %v5839_v32 = vadd.f32 %v11469_v31, %v5826_v58  ;;  %v10528_v31 = vld [vmem:[#allocation24 + $0xd0] sm:$0xff]  ;;  %v10549_v58 = vld [vmem:[#allocation24 + $0x178] sm:$0xff] }
 0x470   :  { %6082 = vmatpush.bf16.msra.mxu0 %v8863_v5  ;;  %6095 = vmatpush.bf16.msra.mxu1 %v9055_v6  ;;  %v10513_v5 = vld [vmem:[#allocation24 + $0x58] sm:$0xff] }
 0x471   :  { %6104 = vmatpush.bf16.msrb.mxu2 %v9343_v16  ;;  %6117 = vmatpush.bf16.msrb.mxu3 %v9535_v13  ;;  %v10525_v6 = vld [vmem:[#allocation24 + $0xb8] sm:$0xff]  ;;  %v10504_v13 = vld [vmem:[#allocation24 + $0x10] sm:$0xff] }
 0x474   :  { %6083 = vmatpush.bf16.msra.mxu0 %v8839_v54  ;;  %6096 = vmatpush.bf16.msra.mxu1 %v9031_v25  ;;  %v11479_v63 = vpop.f32.mrf.mxu0  ;;  %v11481_v10 = vpop.f32.mrf.mxu1  ;;  %v10511_v54 = vld [vmem:[#allocation24 + $0x48] sm:$0xff]  ;;  %v5813_v25 = vadd.f32 %v11463_v60, %v5800_v55  ;;  %v5852_v60 = vadd.f32 %v11473_v43, %v5839_v32  ;;  %v10534_v55 = vld [vmem:[#allocation24 + $0x100] sm:$0xff]  ;;  %v10548_v32 = vld [vmem:[#allocation24 + $0x170] sm:$0xff] }
 0x475   :  { %6105 = vmatpush.bf16.msrb.mxu2 %v9319_v34  ;;  %6118 = vmatpush.bf16.msrb.mxu3 %v9511_v35  ;;  %v5853_v15 = vpop.f32.mrf.mxu2  ;;  %v5866_v18 = vpop.f32.mrf.mxu3  ;;  %v10523_v34 = vld [vmem:[#allocation24 + $0xa8] sm:$0xff]  ;;  %v10502_v35 = vld [vmem:[#allocation24] sm:$0xff] }
 0x477   :  { %6084 = vmatmul.bf16.vlgmr.msra.gmra.mxu0 %v11416_v59  ;;  %6097 = vmatmul.bf16.vlgmr.msra.gmra.mxu1 %v11418_v53  ;;  %v9247_v59 = vor.u32 %v10414_v61, %v9244_v14  ;;  %v9439_v53 = vor.u32 %v10462_v27, %v9436_v62  ;;  %v10540_v14 = vld [vmem:[#allocation24 + $0x130] sm:$0xff]  ;;  %v11496_v27 = vld [vmem:[#allocation23] sm:$0x3f] }
 0x478   :  { %6529 = vmatpush.bf16.msrb.mxu0 %v10509_v37  ;;  %6542 = vmatpush.bf16.msrb.mxu1 %v10517_v38  ;;  %v6129_v37 = vmax.f32 %v5813_v25, 0.0  ;;  %v10530_v38 = vld [vmem:[#allocation24 + $0xe0] sm:$0xff]  ;;  %v4211_v62 = vperm.slane %v11496_v27, 3  ;;  %v4212_v33 = vperm.slane %v11496_v27, 4 }
 0x479   :  { %6106 = vmatpush.bf16.msrb.mxu2 %v9295_v41  ;;  %6119 = vmatpush.bf16.msrb.mxu3 %v9487_v42  ;;  %v10529_v42 = vld [vmem:[#allocation24 + $0xd8] sm:$0xff] }
 0x47a   :  { %v6136_v28 = vpack.c.bf16 %v6129_v37, %v6129_v37 }
 0x47c   :  { %6530 = vmatpush.bf16.msrb.mxu0 %v10508_v46  ;;  %6543 = vmatpush.bf16.msrb.mxu1 %v10516_v7  ;;  %v5879_v45 = vpop.f32.mrf.mxu0  ;;  %v5892_v16 = vpop.f32.mrf.mxu1  ;;  %v10520_v46 = vld [vmem:[#allocation24 + $0x90] sm:$0xff] }
 0x47d   :  { %6107 = vmatpush.bf16.msrb.mxu2 %v9271_v39  ;;  %6120 = vmatpush.bf16.msrb.mxu3 %v9463_v11  ;;  %v10527_v39 = vld [vmem:[#allocation24 + $0xc8] sm:$0xff]  ;;  %v10541_v11 = vld [vmem:[#allocation24 + $0x138] sm:$0xff] }
 0x480   :  { %6531 = vmatpush.bf16.msrb.mxu0 %v10507_v57  ;;  %6544 = vmatpush.bf16.msrb.mxu1 %v10515_v47  ;;  %v10526_v47 = vld [vmem:[#allocation24 + $0xc0] sm:$0xff] }
 0x481   :  { %6108 = vmatpush.bf16.msrb.mxu2 %v9247_v59  ;;  %6121 = vmatpush.bf16.msrb.mxu3 %v9439_v53  ;;  %v10539_v53 = vld [vmem:[#allocation24 + $0x128] sm:$0xff] }
 0x484   :  { %6532 = vmatpush.bf16.msrb.mxu0 %v10506_v2  ;;  %6545 = vmatpush.bf16.msrb.mxu1 %v10514_v1 }
 0x485   :  { %6109 = vmatpush.bf16.msrb.mxu2 %v9223_v19  ;;  %6122 = vmatpush.bf16.msrb.mxu3 %v9415_v56  ;;  %v10536_v56 = vld [vmem:[#allocation24 + $0x110] sm:$0xff] }
 0x488   :  { %6533 = vmatpush.bf16.msrb.mxu0 %v10505_v30  ;;  %6546 = vmatpush.bf16.msrb.mxu1 %v10513_v5 }
 0x489   :  { %6555 = vmatpush.bf16.msra.mxu2 %v10525_v6  ;;  %6568 = vmatpush.bf16.msra.mxu3 %v10533_v36 }
 0x48a   :  { %6110 = vmatmul.bf16.vlgmr.msrb.gmra.mxu2 %v11422_v8  ;;  %6123 = vmatmul.bf16.vlgmr.msrb.gmra.mxu3 %v11424_v23  ;;  %v6128_v8 = vmax.f32 %v11454_v22, 0.0  ;;  %v10522_v23 = vld [vmem:[#allocation24 + $0xa0] sm:$0xff]  ;;  %v5865_v22 = vadd.f32 %v11475_v44, %v5852_v60 }
 0x48b   :  { %v10518_v44 = vld [vmem:[#allocation24 + $0x80] sm:$0xff] }
 0x48c   :  { %6534 = vmatpush.bf16.msrb.mxu0 %v10504_v13  ;;  %6547 = vmatpush.bf16.msrb.mxu1 %v10512_v17  ;;  %v6135_v50 = vpack.c.bf16 %v6128_v8, %v6128_v8  ;;  %v5878_v43 = vadd.f32 %v11479_v63, %v5865_v22  ;;  %v10535_v17 = vld [vmem:[#allocation24 + $0x108] sm:$0xff]  ;;  %v10545_v22 = vld [vmem:[#allocation24 + $0x158] sm:$0xff] }
 0x48d   :  { %6556 = vmatpush.bf16.msra.mxu2 %v10524_v20  ;;  %6569 = vmatpush.bf16.msra.mxu3 %v10532_v21  ;;  %v5903_v40 = vpop.f32.mrf.mxu2  ;;  %v5916_v41 = vpop.f32.mrf.mxu3 }
 0x48e   :  { %v5891_v57 = vadd.f32 %v11481_v10, %v5878_v43  ;;  %v5904_v18 = vadd.f32 %v5903_v40, %v4211_v62  ;;  %v10538_v10 = vld [vmem:[#allocation24 + $0x120] sm:$0xff] }
 0x490   :  { %6535 = vmatpush.bf16.msrb.mxu0 %v10503_v24  ;;  %6548 = vmatpush.bf16.msrb.mxu1 %v10511_v54  ;;  %v6130_v61 = vmax.f32 %v5891_v57, 0.0  ;;  %v5917_v2 = vadd.f32 %v5916_v41, %v5904_v18  ;;  %v10574_v18 = vld [vmem:[#allocation26] ss:$0 sm:$0xff] }
 0x491   :  { %6557 = vmatpush.bf16.msra.mxu2 %v10523_v34  ;;  %6570 = vmatpush.bf16.msra.mxu3 %v10531_v4 }
 0x492   :  { %v6137_v15 = vpack.c.bf16 %v6130_v61, %v6130_v61 }
 0x494   :  { %6536 = vmatpush.bf16.msrb.mxu0 %v10502_v35  ;;  %6549 = vmatpush.bf16.msrb.mxu1 %v10510_v12  ;;  %v5929_v7 = vpop.f32.mrf.mxu0  ;;  %v5942_v49 = vpop.f32.mrf.mxu1 }
 0x495   :  { %6558 = vmatpush.bf16.msra.mxu2 %v10522_v23  ;;  %6571 = vmatpush.bf16.msra.mxu3 %v10530_v38  ;;  %v5905_v51 = vpop.f32.mrf.mxu2  ;;  %v5918_v52 = vpop.f32.mrf.mxu3  ;;  %v5930_v1 = vadd.f32 %v5929_v7, %v5917_v2 }
 0x497   :  { %6537 = vmatmul.bf16.vlgmr.msrb.gmra.mxu0 %v6135_v50  ;;  %6550 = vmatmul.bf16.vlgmr.msrb.gmra.mxu1 %v6136_v28  ;;  %v5943_v0 = vadd.f32 %v5942_v49, %v5930_v1  ;;  %v10547_v28 = vld [vmem:[#allocation24 + $0x168] sm:$0xff]  ;;  %v10542_v49 = vld [vmem:[#allocation24 + $0x140] sm:$0xff] }
 0x498   :  { %6581 = vmatpush.bf16.msra.mxu0 %v10541_v11  ;;  %6594 = vmatpush.bf16.msra.mxu1 %v10549_v58  ;;  %v4213_v11 = vperm.slane %v11496_v27, 5 }
 0x499   :  { %6559 = vmatpush.bf16.msra.mxu2 %v10521_v9  ;;  %6572 = vmatpush.bf16.msra.mxu3 %v10529_v42  ;;  %v10546_v42 = vld [vmem:[#allocation24 + $0x160] sm:$0xff] }
 0x49c   :  { %v5931_v63 = vpop.f32.mrf.mxu0  ;;  %v5944_v59 = vpop.f32.mrf.mxu1  ;;  %6582 = vmatpush.bf16.msra.mxu0 %v10540_v14  ;;  %6595 = vmatpush.bf16.msra.mxu1 %v10548_v32 }
 0x49d   :  { %6560 = vmatpush.bf16.msra.mxu2 %v10520_v46  ;;  %6573 = vmatpush.bf16.msra.mxu3 %v10528_v31  ;;  %v10544_v46 = vld [vmem:[#allocation24 + $0x150] sm:$0xff]  ;;  %v10543_v31 = vld [vmem:[#allocation24 + $0x148] sm:$0xff] }
 0x4a0   :  { %6583 = vmatpush.bf16.msra.mxu0 %v10539_v53  ;;  %6596 = vmatpush.bf16.msra.mxu1 %v10547_v28 }
 0x4a1   :  { %6561 = vmatpush.bf16.msra.mxu2 %v10519_v29  ;;  %6574 = vmatpush.bf16.msra.mxu3 %v10527_v39 }
 0x4a4   :  { %6584 = vmatpush.bf16.msra.mxu0 %v10538_v10  ;;  %6597 = vmatpush.bf16.msra.mxu1 %v10546_v42 }
 0x4a5   :  { %6562 = vmatpush.bf16.msra.mxu2 %v10518_v44  ;;  %6575 = vmatpush.bf16.msra.mxu3 %v10526_v47 }
 0x4a8   :  { %6563 = vmatmul.bf16.vlgmr.msra.gmra.mxu2 %v6137_v15  ;;  %6585 = vmatpush.bf16.msra.mxu0 %v10537_v3 }
 0x4a9   :  { %6598 = vmatpush.bf16.msra.mxu1 %v10545_v22 }
 0x4ac   :  { %6586 = vmatpush.bf16.msra.mxu0 %v10536_v56 }
 0x4ad   :  { %v5955_v48 = vpop.f32.mrf.mxu2  ;;  %v5968_v26 = vpop.f32.mrf.mxu3  ;;  %6599 = vmatpush.bf16.msra.mxu1 %v10544_v46 }
 0x4ae   :  { %v5956_v19 = vadd.f32 %v5955_v48, %v5943_v0 }
 0x4b0   :  { %v5969_v30 = vadd.f32 %v5968_v26, %v5956_v19  ;;  %6587 = vmatpush.bf16.msra.mxu0 %v10535_v17 }
 0x4b1   :  { %6600 = vmatpush.bf16.msra.mxu1 %v10543_v31 }
 0x4b2   :  { %v6131_v5 = vmax.f32 %v5969_v30, 0.0 }
 0x4b4   :  { %v6138_v6 = vpack.c.bf16 %v6131_v5, %v6131_v5  ;;  %v5981_v36 = vpop.f32.mrf.mxu0  ;;  %v5994_v45 = vpop.f32.mrf.mxu1  ;;  %6588 = vmatpush.bf16.msra.mxu0 %v10534_v55 }
 0x4b5   :  { %v5957_v16 = vpop.f32.mrf.mxu2  ;;  %v5970_v13 = vpop.f32.mrf.mxu3  ;;  %v5982_v24 = vadd.f32 %v5981_v36, %v4212_v33  ;;  %6601 = vmatpush.bf16.msra.mxu1 %v10542_v49  ;;  %v6608_v33 = vstv %s11537_s21 }
 0x4b6   :  { %6576 = vmatmul.bf16.vlgmr.msra.gmra.mxu3 %v6138_v6 }
 0x4b7   :  { %v5995_v54 = vadd.f32 %v5994_v45, %v5982_v24 }
 0x4bc   :  { %v5983_v20 = vpop.f32.mrf.mxu0  ;;  %v5996_v21 = vpop.f32.mrf.mxu1 }
 0x4cd   :  { %v6007_v25 = vpop.f32.mrf.mxu2  ;;  %v6020_v34 = vpop.f32.mrf.mxu3 }
 0x4ce   :  { %v6008_v4 = vadd.f32 %v6007_v25, %v5995_v54 }
 0x4d0   :  { %v6021_v35 = vadd.f32 %v6020_v34, %v6008_v4 }
 0x4d4   :  { %v6033_v12 = vpop.f32.mrf.mxu0  ;;  %v6046_v8 = vpop.f32.mrf.mxu1 }
 0x4d5   :  { %v6034_v37 = vadd.f32 %v6033_v12, %v6021_v35  ;;  %v6009_v23 = vpop.f32.mrf.mxu2  ;;  %v6022_v38 = vpop.f32.mrf.mxu3 }
 0x4d7   :  { %v6047_v60 = vadd.f32 %v6046_v8, %v6034_v37 }
 0x4d9   :  { %v6132_v50 = vmax.f32 %v6047_v60, 0.0 }
 0x4db   :  { %v6139_v9 = vpack.c.bf16 %v6132_v50, %v6132_v50 }
 0x4dc   :  { %v6035_v40 = vpop.f32.mrf.mxu0  ;;  %v6048_v41 = vpop.f32.mrf.mxu1 }
 0x4dd   :  { %6589 = vmatmul.bf16.vlgmr.msra.gmra.mxu0 %v6139_v9 }
 0x4ed   :  { %v6059_v43 = vpop.f32.mrf.mxu2  ;;  %v6072_v7 = vpop.f32.mrf.mxu3 }
 0x4ee   :  { %v6060_v47 = vadd.f32 %v6059_v43, %v4213_v11 }
 0x4f0   :  { %v6073_v61 = vadd.f32 %v6072_v7, %v6060_v47 }
 0x4f4   :  { %v6085_v29 = vpop.f32.mrf.mxu0  ;;  %v6098_v51 = vpop.f32.mrf.mxu1 }
 0x4f5   :  { %v6061_v52 = vpop.f32.mrf.mxu2  ;;  %v6074_v39 = vpop.f32.mrf.mxu3  ;;  %v6086_v14 = vadd.f32 %v6085_v29, %v6073_v61 }
 0x4f7   :  { %v6099_v62 = vadd.f32 %v6098_v51, %v6086_v14 }
 0x4fc   :  { %v6087_v57 = vpop.f32.mrf.mxu0  ;;  %v6100_v44 = vpop.f32.mrf.mxu1 }
 0x50d   :  { %v6111_v63 = vpop.f32.mrf.mxu2  ;;  %v6124_v59 = vpop.f32.mrf.mxu3 }
 0x50e   :  { %v6112_v53 = vadd.f32 %v6111_v63, %v6099_v62 }
 0x510   :  { %v6125_v15 = vadd.f32 %v6124_v59, %v6112_v53 }
 0x512   :  { %v6133_v10 = vmax.f32 %v6125_v15, 0.0 }
 0x514   :  { %v6140_v2 = vpack.c.bf16 %v6133_v10, %v6133_v10  ;;  %v6538_v1 = vpop.f32.mrf.mxu0  ;;  %v6551_v0 = vpop.f32.mrf.mxu1 }
 0x515   :  { %v6539_v48 = vadd.f32 %v10574_v18, %v6538_v1  ;;  %v6113_v26 = vpop.f32.mrf.mxu2  ;;  %v6126_v3 = vpop.f32.mrf.mxu3 }
 0x516   :  { %6602 = vmatmul.bf16.vlgmr.msra.gmra.mxu1 %v6140_v2 }
 0x517   :  { %v6552_v27 = vadd.f32 %v6551_v0, %v6539_v48 }
 0x51c   :  { %v6540_v19 = vpop.f32.mrf.mxu0  ;;  %v6553_v56 = vpop.f32.mrf.mxu1 }
 0x52b   :  { %v6564_v30 = vpop.f32.mrf.mxu2 }
 0x52c   :  { %v6565_v5 = vadd.f32 %v6564_v30, %v6552_v27 }
 0x533   :  { %v6566_v6 = vpop.f32.mrf.mxu2 }
 0x539   :  { %v6577_v36 = vpop.f32.mrf.mxu3 }
 0x53a   :  { %v6578_v45 = vadd.f32 %v6577_v36, %v6565_v5 }
 0x541   :  { %v6579_v16 = vpop.f32.mrf.mxu3 }
 0x55a   :  { %v6590_v13 = vpop.f32.mrf.mxu0 }
 0x55b   :  { %v6591_v55 = vadd.f32 %v6590_v13, %v6578_v45 }
 0x562   :  { %v6592_v17 = vpop.f32.mrf.mxu0 }
 0x593   :  { %v6603_v20 = vpop.f32.mrf.mxu1 }
 0x594   :  { %v6604_v21 = vadd.f32 %v6603_v20, %v6591_v55 }
 0x596   :  { %10577 = vtanh.f32 %v6604_v21 }
 0x59b   :  { %v6605_v24 = vpop.f32.mrf.mxu1 }
 0x59c   :  { %v10578_v54 = vpop.eup %10577 }
 0x59d   :  { %v6609_v25 = vmul.f32 %v10578_v54, %v6608_v33 }
 0x59f   :  { %6610 = vst [vmem:[#allocation27] sm:$0xff] %v6609_v25 }
 0x5a0   :  { %6623 = dma.vmem_to_hbm [thread:$0]  %s6619_s14, 128, %s6621_s2, [#allocation5]  }
 0x5a1   :  { %11029 = dma.done.wait [#allocation5], 128  }
 0x5a2   :  { %11030 = vsyncadd [#allocation5], 4294967168 }
 0x5a3   :  { %11031 = dma.done.wait [#allocation29], 256  }
 0x5a4   :  { %11032 = vsyncadd [#allocation29], 4294967040 }
 0x5a5   :  { %6658 = vsyncpa [#allocation4], 1 }
 0x5a6   :  { %6659 = vsyncpa [#allocation7], 1 }
 0x5a7   :  { %6660 = vsyncpa [#allocation10], 1 }
 0x5a8   :  { %6661 = vsyncpa [#allocation13], 1 }
 0x5a9   :  { %6662 = vsyncpa [#allocation16], 1 }
 0x5aa   :  { %6663 = vsyncpa [#allocation19], 1 }
 0x5ab   :  { %6664 = vsyncpa [#allocation22], 1 }
 0x5ac   :  { %6665 = vsyncpa [#allocation25], 1 }
 0x5ad   :  { %6666 = vsyncpa [#allocation5], 1 }
 0x5ae   :  { %6667 = vsyncpa [#allocation29], 1 }

</bundles_post_ra>
